<compile_context>
chip_gen: v7x
topology: tpu7x:2x2x1
jax: 0.10.0
libtpu: 0.0.40
codegen_flags: <defaults>
</compile_context>

<pallas_src>
import functools
import math

import jax
import jax.numpy as jnp
from jax.experimental import pallas as pl
from jax.experimental.pallas import tpu as pltpu


def _reflect_pad_into(pad_ref, img, H, W):
    """Write a 1-px reflection-padded copy of img (H, W, C) into pad_ref (H+2, W+2, C)."""
    img = img.astype(jnp.float32)
    pad_ref[1:H + 1, 1:W + 1, :] = img
    pad_ref[0:1, 1:W + 1, :] = img[1:2, :, :]                 # top row  <- row 1
    pad_ref[H + 1:H + 2, 1:W + 1, :] = img[H - 2:H - 1, :, :]  # bottom   <- row H-2
    pad_ref[:, 0:1, :] = pad_ref[:, 2:3, :]                    # left col <- col 1
    pad_ref[:, W + 1:W + 2, :] = pad_ref[:, W - 1:W, :]        # right    <- col W-2


def _conv3x3_taps(pad_ref, w_ref, H, W, C):
    """3x3 stride-1 conv of the padded image in pad_ref as 9 tap matmuls (f32 acc).

    Only 3 column-shifted views are materialized (one per kw); the kh offset is a
    leading-dim slice (address offset, no relayout).
    """
    src = pad_ref[...]                                          # (H+2, W+2, C) f32
    cols = [src[:, dw:dw + W, :].astype(jnp.bfloat16) for dw in range(3)]
    acc = None
    for dh in range(3):
        for dw in range(3):
            patch = cols[dw][dh:dh + H].reshape(H * W, C)       # bf16 (H*W, C)
            d = jnp.dot(patch, w_ref[dh * 3 + dw],
                        preferred_element_type=jnp.float32)
            acc = d if acc is None else acc + d
    return acc                                                  # (H*W, C) f32


def _residual_block_kernel(x_ref, w1_ref, w2_ref,
                           s1_ref, b1_ref, s2_ref, b2_ref,
                           o_ref, pad_ref, *, H, W, C):
    """One batch element per grid step.

    x_ref    : (1, H, W, C) bf16   unpadded input (also the residual)
    w*_ref   : (9, C, C)    bf16   conv weights as 9 taps x Cin x Cout
    s*/b*_ref: (1, C)       f32    folded BN(+conv-bias) scale / shift
                                   (res_scale already folded into s2/b2)
    o_ref    : (1, H*W, C)  f32
    pad_ref  : VMEM scratch (H+2, W+2, C) f32, reused for both reflection pads
    """
    # ---- conv1: in-kernel reflection pad -> 3x3 conv -> folded BN -> ReLU ----
    _reflect_pad_into(pad_ref, x_ref[0], H, W)
    acc1 = _conv3x3_taps(pad_ref, w1_ref, H, W, C)
    h1 = jnp.maximum(acc1 * s1_ref[...] + b1_ref[...], 0.0).reshape(H, W, C)

    # ---- conv2: reflection pad of the intermediate (reuse scratch) -> conv -> BN ----
    _reflect_pad_into(pad_ref, h1, H, W)
    acc2 = _conv3x3_taps(pad_ref, w2_ref, H, W, C)

    # ---- residual: (conv2_bn)*res_scale + x, with res_scale folded into s2/b2 ----
    res = x_ref[0].astype(jnp.float32).reshape(H * W, C)
    o_ref[0] = acc2 * s2_ref[...] + b2_ref[...] + res


def residual_block(x_nchw, params, res_scale=1.0, eps=1e-5):
    (w1, b1c, g1, be1, m1, v1,
     w2, b2c, g2, be2, m2, v2) = params
    N, C, H, W = x_nchw.shape

    # single unpadded NHWC input, bf16 on the wire (halves input HBM traffic)
    x = jnp.transpose(x_nchw, (0, 2, 3, 1)).astype(jnp.bfloat16)

    # fold conv bias + BatchNorm (running stats) into per-channel scale/shift;
    # fold res_scale into the second pair so the kernel does a single FMA + add.
    s1 = (g1 / jnp.sqrt(v1 + eps)).astype(jnp.float32)
    sh1 = (be1 + (b1c - m1) * s1).astype(jnp.float32)
    s2 = g2 / jnp.sqrt(v2 + eps)
    sh2 = be2 + (b2c - m2) * s2
    s2 = (s2 * res_scale).astype(jnp.float32)
    sh2 = (sh2 * res_scale).astype(jnp.float32)

    # conv weights: PyTorch (Cout, Cin, kh, kw) -> (9, Cin, Cout), bf16 for the MXU
    w1t = jnp.transpose(w1, (2, 3, 1, 0)).reshape(9, C, C).astype(jnp.bfloat16)
    w2t = jnp.transpose(w2, (2, 3, 1, 0)).reshape(9, C, C).astype(jnp.bfloat16)

    kernel = functools.partial(_residual_block_kernel, H=H, W=W, C=C)

    out = pl.pallas_call(
        kernel,
        out_shape=jax.ShapeDtypeStruct((N, H * W, C), jnp.float32),
        grid_spec=pltpu.PrefetchScalarGridSpec(
            num_scalar_prefetch=0,
            grid=(N,),
            in_specs=[
                pl.BlockSpec((1, H, W, C), lambda b: (b, 0, 0, 0)),
                pl.BlockSpec((9, C, C), lambda b: (0, 0, 0)),
                pl.BlockSpec((9, C, C), lambda b: (0, 0, 0)),
                pl.BlockSpec((1, C), lambda b: (0, 0)),
                pl.BlockSpec((1, C), lambda b: (0, 0)),
                pl.BlockSpec((1, C), lambda b: (0, 0)),
                pl.BlockSpec((1, C), lambda b: (0, 0)),
            ],
            out_specs=pl.BlockSpec((1, H * W, C), lambda b: (b, 0, 0)),
            scratch_shapes=[pltpu.VMEM((H + 2, W + 2, C), jnp.float32)],
        ),
        compiler_params=pltpu.CompilerParams(
            dimension_semantics=("parallel",),
            vmem_limit_bytes=48 * 1024 * 1024,
        ),
    )(x, w1t, w2t,
      s1.reshape(1, C), sh1.reshape(1, C), s2.reshape(1, C), sh2.reshape(1, C))

    return jnp.transpose(out.reshape(N, H, W, C), (0, 3, 1, 2))  # back to NCHW


def _reference(x_nchw, params, res_scale=1.0, eps=1e-5):
    """Pure-JAX reference of the same forward, using the same bf16 quantization of
    x / weights / intermediate that the kernel applies (accumulation stays f32)."""
    (w1, b1c, g1, be1, m1, v1,
     w2, b2c, g2, be2, m2, v2) = params
    q = lambda a: a.astype(jnp.bfloat16).astype(jnp.float32)
    x = q(jnp.transpose(x_nchw, (0, 2, 3, 1)))

    def conv_bn(h, w, bc, g, be, m, v, relu):
        hp = jnp.pad(h, ((0, 0), (1, 1), (1, 1), (0, 0)), mode="reflect")
        y = jax.lax.conv_general_dilated(
            hp, q(jnp.transpose(w, (2, 3, 1, 0))), (1, 1), "VALID",
            dimension_numbers=("NHWC", "HWIO", "NHWC"),
            precision=jax.lax.Precision.HIGHEST) + bc
        y = (y - m) / jnp.sqrt(v + eps) * g + be
        return jnp.maximum(y, 0.0) if relu else y

    h = q(conv_bn(x, w1, b1c, g1, be1, m1, v1, True))
    h = conv_bn(h, w2, b2c, g2, be2, m2, v2, False)
    return jnp.transpose(h * res_scale + x, (0, 3, 1, 2))


if __name__ == "__main__":
    N, C, H, W = 2, 4, 16, 16
    key = jax.random.PRNGKey(0)
    ks = jax.random.split(key, 8)

    x = jax.random.normal(ks[0], (N, C, H, W), jnp.float32)

    # deterministic conv params (PyTorch-style uniform bound), default BN stats
    fan_in = C * 3 * 3
    bound = 1.0 / math.sqrt(fan_in)
    w1 = jax.random.uniform(ks[1], (C, C, 3, 3), jnp.float32, -bound, bound)
    b1 = jax.random.uniform(ks[2], (C,), jnp.float32, -bound, bound)
    w2 = jax.random.uniform(ks[3], (C, C, 3, 3), jnp.float32, -bound, bound)
    b2 = jax.random.uniform(ks[4], (C,), jnp.float32, -bound, bound)
    g1, be1 = jnp.ones((C,), jnp.float32), jnp.zeros((C,), jnp.float32)
    m1, v1 = jnp.zeros((C,), jnp.float32), jnp.ones((C,), jnp.float32)
    g2, be2 = jnp.ones((C,), jnp.float32), jnp.zeros((C,), jnp.float32)
    m2, v2 = jnp.zeros((C,), jnp.float32), jnp.ones((C,), jnp.float32)

    params = (w1, b1, g1, be1, m1, v1, w2, b2, g2, be2, m2, v2)

    out = residual_block(x, params, res_scale=1.0)
    out = jax.block_until_ready(out)

    ref = _reference(x, params, res_scale=1.0)
    max_err = float(jnp.max(jnp.abs(out - ref)))
    if not jnp.allclose(out, ref, atol=2e-3, rtol=2e-3):
        raise AssertionError(
            f"Pallas kernel does not match reference (max abs err {max_err})")

    print("KERNEL_OK")
</pallas_src>

<mosaic_0001>
module attributes {stable_mosaic.version = 11 : i64} {
  func.func @_residual_block_kernel(%arg0: i32, %arg1: memref<1x16x16x4xbf16, #tpu.memory_space<vmem>>, %arg2: memref<9x4x4xbf16, #tpu.memory_space<vmem>>, %arg3: memref<9x4x4xbf16, #tpu.memory_space<vmem>>, %arg4: memref<1x4xf32, #tpu.memory_space<vmem>>, %arg5: memref<1x4xf32, #tpu.memory_space<vmem>>, %arg6: memref<1x4xf32, #tpu.memory_space<vmem>>, %arg7: memref<1x4xf32, #tpu.memory_space<vmem>>, %arg8: memref<1x256x4xf32, #tpu.memory_space<vmem>>, %arg9: memref<18x18x4xf32, #tpu.memory_space<vmem>>) attributes {dimension_semantics = [#tpu.dimension_semantics<parallel>], iteration_bounds = array<i64: 2>, scalar_prefetch = 0 : i64, scratch_operands = 1 : i64, tpu.core_type = #tpu.core_type<tc>, window_params = [{transform_indices = @transform_0, window_bounds = array<i64: 1, 16, 16, 4>}, {pipeline_mode = #tpu.pipeline_mode<synchronous>, transform_indices = @transform_1, window_bounds = array<i64: 9, 4, 4>}, {pipeline_mode = #tpu.pipeline_mode<synchronous>, transform_indices = @transform_2, window_bounds = array<i64: 9, 4, 4>}, {pipeline_mode = #tpu.pipeline_mode<synchronous>, transform_indices = @transform_3, window_bounds = array<i64: 1, 4>}, {pipeline_mode = #tpu.pipeline_mode<synchronous>, transform_indices = @transform_4, window_bounds = array<i64: 1, 4>}, {pipeline_mode = #tpu.pipeline_mode<synchronous>, transform_indices = @transform_5, window_bounds = array<i64: 1, 4>}, {pipeline_mode = #tpu.pipeline_mode<synchronous>, transform_indices = @transform_6, window_bounds = array<i64: 1, 4>}, {transform_indices = @transform_7, window_bounds = array<i64: 1, 256, 4>}]} {
    %c0 = arith.constant 0 : index
    %c0_0 = arith.constant 0 : index
    %c0_1 = arith.constant 0 : index
    %c0_2 = arith.constant 0 : index
    %0 = vector.load %arg1[%c0, %c0_0, %c0_1, %c0_2] : memref<1x16x16x4xbf16, #tpu.memory_space<vmem>>, vector<1x16x16x4xbf16>
    %1 = vector.shape_cast %0 : vector<1x16x16x4xbf16> to vector<16x16x4xbf16>
    %2 = arith.extf %1 : vector<16x16x4xbf16> to vector<16x16x4xf32>
    %c1 = arith.constant 1 : index
    %c1_3 = arith.constant 1 : index
    %c0_4 = arith.constant 0 : index
    %3 = vector.load %arg9[%c1, %c1_3, %c0_4] : memref<18x18x4xf32, #tpu.memory_space<vmem>>, vector<16x16x4xf32>
    tpu.vector_store %arg9[%c1, %c1_3, %c0_4], %2 {strides = array<i32>} : memref<18x18x4xf32, #tpu.memory_space<vmem>>, vector<16x16x4xf32>,
    %4 = vector.extract_strided_slice %2 {offsets = [1, 0, 0], sizes = [1, 16, 4], strides = [1, 1, 1]} : vector<16x16x4xf32> to vector<1x16x4xf32>
    %c0_5 = arith.constant 0 : index
    %c1_6 = arith.constant 1 : index
    %c0_7 = arith.constant 0 : index
    %5 = vector.load %arg9[%c0_5, %c1_6, %c0_7] : memref<18x18x4xf32, #tpu.memory_space<vmem>>, vector<1x16x4xf32>
    tpu.vector_store %arg9[%c0_5, %c1_6, %c0_7], %4 {strides = array<i32>} : memref<18x18x4xf32, #tpu.memory_space<vmem>>, vector<1x16x4xf32>,
    %6 = vector.extract_strided_slice %2 {offsets = [14, 0, 0], sizes = [1, 16, 4], strides = [1, 1, 1]} : vector<16x16x4xf32> to vector<1x16x4xf32>
    %c17 = arith.constant 17 : index
    %c1_8 = arith.constant 1 : index
    %c0_9 = arith.constant 0 : index
    %7 = vector.load %arg9[%c17, %c1_8, %c0_9] : memref<18x18x4xf32, #tpu.memory_space<vmem>>, vector<1x16x4xf32>
    tpu.vector_store %arg9[%c17, %c1_8, %c0_9], %6 {strides = array<i32>} : memref<18x18x4xf32, #tpu.memory_space<vmem>>, vector<1x16x4xf32>,
    %c0_10 = arith.constant 0 : index
    %c2 = arith.constant 2 : index
    %c0_11 = arith.constant 0 : index
    %8 = vector.load %arg9[%c0_10, %c2, %c0_11] : memref<18x18x4xf32, #tpu.memory_space<vmem>>, vector<18x1x4xf32>
    %c0_12 = arith.constant 0 : index
    %c0_13 = arith.constant 0 : index
    %c0_14 = arith.constant 0 : index
    %9 = vector.load %arg9[%c0_12, %c0_13, %c0_14] : memref<18x18x4xf32, #tpu.memory_space<vmem>>, vector<18x1x4xf32>
    tpu.vector_store %arg9[%c0_12, %c0_13, %c0_14], %8 {strides = array<i32>} : memref<18x18x4xf32, #tpu.memory_space<vmem>>, vector<18x1x4xf32>,
    %c0_15 = arith.constant 0 : index
    %c15 = arith.constant 15 : index
    %c0_16 = arith.constant 0 : index
    %10 = vector.load %arg9[%c0_15, %c15, %c0_16] : memref<18x18x4xf32, #tpu.memory_space<vmem>>, vector<18x1x4xf32>
    %c0_17 = arith.constant 0 : index
    %c17_18 = arith.constant 17 : index
    %c0_19 = arith.constant 0 : index
    %11 = vector.load %arg9[%c0_17, %c17_18, %c0_19] : memref<18x18x4xf32, #tpu.memory_space<vmem>>, vector<18x1x4xf32>
    tpu.vector_store %arg9[%c0_17, %c17_18, %c0_19], %10 {strides = array<i32>} : memref<18x18x4xf32, #tpu.memory_space<vmem>>, vector<18x1x4xf32>,
    %c0_20 = arith.constant 0 : index
    %c0_21 = arith.constant 0 : index
    %c0_22 = arith.constant 0 : index
    %12 = vector.load %arg9[%c0_20, %c0_21, %c0_22] : memref<18x18x4xf32, #tpu.memory_space<vmem>>, vector<18x18x4xf32>
    %13 = vector.extract_strided_slice %12 {offsets = [0, 0, 0], sizes = [18, 16, 4], strides = [1, 1, 1]} : vector<18x18x4xf32> to vector<18x16x4xf32>
    %14 = arith.truncf %13 : vector<18x16x4xf32> to vector<18x16x4xbf16>
    %15 = vector.extract_strided_slice %12 {offsets = [0, 1, 0], sizes = [18, 16, 4], strides = [1, 1, 1]} : vector<18x18x4xf32> to vector<18x16x4xf32>
    %16 = arith.truncf %15 : vector<18x16x4xf32> to vector<18x16x4xbf16>
    %17 = vector.extract_strided_slice %12 {offsets = [0, 2, 0], sizes = [18, 16, 4], strides = [1, 1, 1]} : vector<18x18x4xf32> to vector<18x16x4xf32>
    %18 = arith.truncf %17 : vector<18x16x4xf32> to vector<18x16x4xbf16>
    %19 = vector.extract_strided_slice %14 {offsets = [0, 0, 0], sizes = [16, 16, 4], strides = [1, 1, 1]} : vector<18x16x4xbf16> to vector<16x16x4xbf16>
    %20 = vector.shape_cast %19 : vector<16x16x4xbf16> to vector<256x4xbf16>
    %c0_23 = arith.constant 0 : index
    %c0_24 = arith.constant 0 : index
    %c0_25 = arith.constant 0 : index
    %21 = vector.load %arg2[%c0_23, %c0_24, %c0_25] : memref<9x4x4xbf16, #tpu.memory_space<vmem>>, vector<1x4x4xbf16>
    %22 = vector.shape_cast %21 : vector<1x4x4xbf16> to vector<4x4xbf16>
    %cst = arith.constant dense<0.000000e+00> : vector<256x4xf32>
    %23 = tpu.matmul %20, %22, %cst {dimension_numbers = #tpu.dot_dimension_numbers<[1], [0], [0], [1], [0, 0, 1, 1], [], []>} : vector<256x4xbf16>, vector<4x4xbf16>, vector<256x4xf32> -> vector<256x4xf32>
    %24 = vector.extract_strided_slice %16 {offsets = [0, 0, 0], sizes = [16, 16, 4], strides = [1, 1, 1]} : vector<18x16x4xbf16> to vector<16x16x4xbf16>
    %25 = vector.shape_cast %24 : vector<16x16x4xbf16> to vector<256x4xbf16>
    %c1_26 = arith.constant 1 : index
    %c0_27 = arith.constant 0 : index
    %c0_28 = arith.constant 0 : index
    %26 = vector.load %arg2[%c1_26, %c0_27, %c0_28] : memref<9x4x4xbf16, #tpu.memory_space<vmem>>, vector<1x4x4xbf16>
    %27 = vector.shape_cast %26 : vector<1x4x4xbf16> to vector<4x4xbf16>
    %cst_29 = arith.constant dense<0.000000e+00> : vector<256x4xf32>
    %28 = tpu.matmul %25, %27, %cst_29 {dimension_numbers = #tpu.dot_dimension_numbers<[1], [0], [0], [1], [0, 0, 1, 1], [], []>} : vector<256x4xbf16>, vector<4x4xbf16>, vector<256x4xf32> -> vector<256x4xf32>
    %29 = arith.addf %23, %28 : vector<256x4xf32>
    %30 = vector.extract_strided_slice %18 {offsets = [0, 0, 0], sizes = [16, 16, 4], strides = [1, 1, 1]} : vector<18x16x4xbf16> to vector<16x16x4xbf16>
    %31 = vector.shape_cast %30 : vector<16x16x4xbf16> to vector<256x4xbf16>
    %c2_30 = arith.constant 2 : index
    %c0_31 = arith.constant 0 : index
    %c0_32 = arith.constant 0 : index
    %32 = vector.load %arg2[%c2_30, %c0_31, %c0_32] : memref<9x4x4xbf16, #tpu.memory_space<vmem>>, vector<1x4x4xbf16>
    %33 = vector.shape_cast %32 : vector<1x4x4xbf16> to vector<4x4xbf16>
    %cst_33 = arith.constant dense<0.000000e+00> : vector<256x4xf32>
    %34 = tpu.matmul %31, %33, %cst_33 {dimension_numbers = #tpu.dot_dimension_numbers<[1], [0], [0], [1], [0, 0, 1, 1], [], []>} : vector<256x4xbf16>, vector<4x4xbf16>, vector<256x4xf32> -> vector<256x4xf32>
    %35 = arith.addf %29, %34 : vector<256x4xf32>
    %36 = vector.extract_strided_slice %14 {offsets = [1, 0, 0], sizes = [16, 16, 4], strides = [1, 1, 1]} : vector<18x16x4xbf16> to vector<16x16x4xbf16>
    %37 = vector.shape_cast %36 : vector<16x16x4xbf16> to vector<256x4xbf16>
    %c3 = arith.constant 3 : index
    %c0_34 = arith.constant 0 : index
    %c0_35 = arith.constant 0 : index
    %38 = vector.load %arg2[%c3, %c0_34, %c0_35] : memref<9x4x4xbf16, #tpu.memory_space<vmem>>, vector<1x4x4xbf16>
    %39 = vector.shape_cast %38 : vector<1x4x4xbf16> to vector<4x4xbf16>
    %cst_36 = arith.constant dense<0.000000e+00> : vector<256x4xf32>
    %40 = tpu.matmul %37, %39, %cst_36 {dimension_numbers = #tpu.dot_dimension_numbers<[1], [0], [0], [1], [0, 0, 1, 1], [], []>} : vector<256x4xbf16>, vector<4x4xbf16>, vector<256x4xf32> -> vector<256x4xf32>
    %41 = arith.addf %35, %40 : vector<256x4xf32>
    %42 = vector.extract_strided_slice %16 {offsets = [1, 0, 0], sizes = [16, 16, 4], strides = [1, 1, 1]} : vector<18x16x4xbf16> to vector<16x16x4xbf16>
    %43 = vector.shape_cast %42 : vector<16x16x4xbf16> to vector<256x4xbf16>
    %c4 = arith.constant 4 : index
    %c0_37 = arith.constant 0 : index
    %c0_38 = arith.constant 0 : index
    %44 = vector.load %arg2[%c4, %c0_37, %c0_38] : memref<9x4x4xbf16, #tpu.memory_space<vmem>>, vector<1x4x4xbf16>
    %45 = vector.shape_cast %44 : vector<1x4x4xbf16> to vector<4x4xbf16>
    %cst_39 = arith.constant dense<0.000000e+00> : vector<256x4xf32>
    %46 = tpu.matmul %43, %45, %cst_39 {dimension_numbers = #tpu.dot_dimension_numbers<[1], [0], [0], [1], [0, 0, 1, 1], [], []>} : vector<256x4xbf16>, vector<4x4xbf16>, vector<256x4xf32> -> vector<256x4xf32>
    %47 = arith.addf %41, %46 : vector<256x4xf32>
    %48 = vector.extract_strided_slice %18 {offsets = [1, 0, 0], sizes = [16, 16, 4], strides = [1, 1, 1]} : vector<18x16x4xbf16> to vector<16x16x4xbf16>
    %49 = vector.shape_cast %48 : vector<16x16x4xbf16> to vector<256x4xbf16>
    %c5 = arith.constant 5 : index
    %c0_40 = arith.constant 0 : index
    %c0_41 = arith.constant 0 : index
    %50 = vector.load %arg2[%c5, %c0_40, %c0_41] : memref<9x4x4xbf16, #tpu.memory_space<vmem>>, vector<1x4x4xbf16>
    %51 = vector.shape_cast %50 : vector<1x4x4xbf16> to vector<4x4xbf16>
    %cst_42 = arith.constant dense<0.000000e+00> : vector<256x4xf32>
    %52 = tpu.matmul %49, %51, %cst_42 {dimension_numbers = #tpu.dot_dimension_numbers<[1], [0], [0], [1], [0, 0, 1, 1], [], []>} : vector<256x4xbf16>, vector<4x4xbf16>, vector<256x4xf32> -> vector<256x4xf32>
    %53 = arith.addf %47, %52 : vector<256x4xf32>
    %54 = vector.extract_strided_slice %14 {offsets = [2, 0, 0], sizes = [16, 16, 4], strides = [1, 1, 1]} : vector<18x16x4xbf16> to vector<16x16x4xbf16>
    %55 = vector.shape_cast %54 : vector<16x16x4xbf16> to vector<256x4xbf16>
    %c6 = arith.constant 6 : index
    %c0_43 = arith.constant 0 : index
    %c0_44 = arith.constant 0 : index
    %56 = vector.load %arg2[%c6, %c0_43, %c0_44] : memref<9x4x4xbf16, #tpu.memory_space<vmem>>, vector<1x4x4xbf16>
    %57 = vector.shape_cast %56 : vector<1x4x4xbf16> to vector<4x4xbf16>
    %cst_45 = arith.constant dense<0.000000e+00> : vector<256x4xf32>
    %58 = tpu.matmul %55, %57, %cst_45 {dimension_numbers = #tpu.dot_dimension_numbers<[1], [0], [0], [1], [0, 0, 1, 1], [], []>} : vector<256x4xbf16>, vector<4x4xbf16>, vector<256x4xf32> -> vector<256x4xf32>
    %59 = arith.addf %53, %58 : vector<256x4xf32>
    %60 = vector.extract_strided_slice %16 {offsets = [2, 0, 0], sizes = [16, 16, 4], strides = [1, 1, 1]} : vector<18x16x4xbf16> to vector<16x16x4xbf16>
    %61 = vector.shape_cast %60 : vector<16x16x4xbf16> to vector<256x4xbf16>
    %c7 = arith.constant 7 : index
    %c0_46 = arith.constant 0 : index
    %c0_47 = arith.constant 0 : index
    %62 = vector.load %arg2[%c7, %c0_46, %c0_47] : memref<9x4x4xbf16, #tpu.memory_space<vmem>>, vector<1x4x4xbf16>
    %63 = vector.shape_cast %62 : vector<1x4x4xbf16> to vector<4x4xbf16>
    %cst_48 = arith.constant dense<0.000000e+00> : vector<256x4xf32>
    %64 = tpu.matmul %61, %63, %cst_48 {dimension_numbers = #tpu.dot_dimension_numbers<[1], [0], [0], [1], [0, 0, 1, 1], [], []>} : vector<256x4xbf16>, vector<4x4xbf16>, vector<256x4xf32> -> vector<256x4xf32>
    %65 = arith.addf %59, %64 : vector<256x4xf32>
    %66 = vector.extract_strided_slice %18 {offsets = [2, 0, 0], sizes = [16, 16, 4], strides = [1, 1, 1]} : vector<18x16x4xbf16> to vector<16x16x4xbf16>
    %67 = vector.shape_cast %66 : vector<16x16x4xbf16> to vector<256x4xbf16>
    %c8 = arith.constant 8 : index
    %c0_49 = arith.constant 0 : index
    %c0_50 = arith.constant 0 : index
    %68 = vector.load %arg2[%c8, %c0_49, %c0_50] : memref<9x4x4xbf16, #tpu.memory_space<vmem>>, vector<1x4x4xbf16>
    %69 = vector.shape_cast %68 : vector<1x4x4xbf16> to vector<4x4xbf16>
    %cst_51 = arith.constant dense<0.000000e+00> : vector<256x4xf32>
    %70 = tpu.matmul %67, %69, %cst_51 {dimension_numbers = #tpu.dot_dimension_numbers<[1], [0], [0], [1], [0, 0, 1, 1], [], []>} : vector<256x4xbf16>, vector<4x4xbf16>, vector<256x4xf32> -> vector<256x4xf32>
    %71 = arith.addf %65, %70 : vector<256x4xf32>
    %c0_52 = arith.constant 0 : index
    %c0_53 = arith.constant 0 : index
    %72 = vector.load %arg4[%c0_52, %c0_53] : memref<1x4xf32, #tpu.memory_space<vmem>>, vector<1x4xf32>
    %73 = vector.broadcast %72 : vector<1x4xf32> to vector<256x4xf32>
    %74 = arith.mulf %71, %73 : vector<256x4xf32>
    %c0_54 = arith.constant 0 : index
    %c0_55 = arith.constant 0 : index
    %75 = vector.load %arg5[%c0_54, %c0_55] : memref<1x4xf32, #tpu.memory_space<vmem>>, vector<1x4xf32>
    %76 = vector.broadcast %75 : vector<1x4xf32> to vector<256x4xf32>
    %77 = arith.addf %74, %76 : vector<256x4xf32>
    %cst_56 = arith.constant 0.000000e+00 : f32
    %78 = vector.broadcast %cst_56 : f32 to vector<256x4xf32>
    %79 = arith.maximumf %77, %78 : vector<256x4xf32>
    %80 = vector.shape_cast %79 : vector<256x4xf32> to vector<16x16x4xf32>
    %c1_57 = arith.constant 1 : index
    %c1_58 = arith.constant 1 : index
    %c0_59 = arith.constant 0 : index
    %81 = vector.load %arg9[%c1_57, %c1_58, %c0_59] : memref<18x18x4xf32, #tpu.memory_space<vmem>>, vector<16x16x4xf32>
    tpu.vector_store %arg9[%c1_57, %c1_58, %c0_59], %80 {strides = array<i32>} : memref<18x18x4xf32, #tpu.memory_space<vmem>>, vector<16x16x4xf32>,
    %82 = vector.extract_strided_slice %80 {offsets = [1, 0, 0], sizes = [1, 16, 4], strides = [1, 1, 1]} : vector<16x16x4xf32> to vector<1x16x4xf32>
    %c0_60 = arith.constant 0 : index
    %c1_61 = arith.constant 1 : index
    %c0_62 = arith.constant 0 : index
    %83 = vector.load %arg9[%c0_60, %c1_61, %c0_62] : memref<18x18x4xf32, #tpu.memory_space<vmem>>, vector<1x16x4xf32>
    tpu.vector_store %arg9[%c0_60, %c1_61, %c0_62], %82 {strides = array<i32>} : memref<18x18x4xf32, #tpu.memory_space<vmem>>, vector<1x16x4xf32>,
    %84 = vector.extract_strided_slice %80 {offsets = [14, 0, 0], sizes = [1, 16, 4], strides = [1, 1, 1]} : vector<16x16x4xf32> to vector<1x16x4xf32>
    %c17_63 = arith.constant 17 : index
    %c1_64 = arith.constant 1 : index
    %c0_65 = arith.constant 0 : index
    %85 = vector.load %arg9[%c17_63, %c1_64, %c0_65] : memref<18x18x4xf32, #tpu.memory_space<vmem>>, vector<1x16x4xf32>
    tpu.vector_store %arg9[%c17_63, %c1_64, %c0_65], %84 {strides = array<i32>} : memref<18x18x4xf32, #tpu.memory_space<vmem>>, vector<1x16x4xf32>,
    %c0_66 = arith.constant 0 : index
    %c2_67 = arith.constant 2 : index
    %c0_68 = arith.constant 0 : index
    %86 = vector.load %arg9[%c0_66, %c2_67, %c0_68] : memref<18x18x4xf32, #tpu.memory_space<vmem>>, vector<18x1x4xf32>
    %c0_69 = arith.constant 0 : index
    %c0_70 = arith.constant 0 : index
    %c0_71 = arith.constant 0 : index
    %87 = vector.load %arg9[%c0_69, %c0_70, %c0_71] : memref<18x18x4xf32, #tpu.memory_space<vmem>>, vector<18x1x4xf32>
    tpu.vector_store %arg9[%c0_69, %c0_70, %c0_71], %86 {strides = array<i32>} : memref<18x18x4xf32, #tpu.memory_space<vmem>>, vector<18x1x4xf32>,
    %c0_72 = arith.constant 0 : index
    %c15_73 = arith.constant 15 : index
    %c0_74 = arith.constant 0 : index
    %88 = vector.load %arg9[%c0_72, %c15_73, %c0_74] : memref<18x18x4xf32, #tpu.memory_space<vmem>>, vector<18x1x4xf32>
    %c0_75 = arith.constant 0 : index
    %c17_76 = arith.constant 17 : index
    %c0_77 = arith.constant 0 : index
    %89 = vector.load %arg9[%c0_75, %c17_76, %c0_77] : memref<18x18x4xf32, #tpu.memory_space<vmem>>, vector<18x1x4xf32>
    tpu.vector_store %arg9[%c0_75, %c17_76, %c0_77], %88 {strides = array<i32>} : memref<18x18x4xf32, #tpu.memory_space<vmem>>, vector<18x1x4xf32>,
    %c0_78 = arith.constant 0 : index
    %c0_79 = arith.constant 0 : index
    %c0_80 = arith.constant 0 : index
    %90 = vector.load %arg9[%c0_78, %c0_79, %c0_80] : memref<18x18x4xf32, #tpu.memory_space<vmem>>, vector<18x18x4xf32>
    %91 = vector.extract_strided_slice %90 {offsets = [0, 0, 0], sizes = [18, 16, 4], strides = [1, 1, 1]} : vector<18x18x4xf32> to vector<18x16x4xf32>
    %92 = arith.truncf %91 : vector<18x16x4xf32> to vector<18x16x4xbf16>
    %93 = vector.extract_strided_slice %90 {offsets = [0, 1, 0], sizes = [18, 16, 4], strides = [1, 1, 1]} : vector<18x18x4xf32> to vector<18x16x4xf32>
    %94 = arith.truncf %93 : vector<18x16x4xf32> to vector<18x16x4xbf16>
    %95 = vector.extract_strided_slice %90 {offsets = [0, 2, 0], sizes = [18, 16, 4], strides = [1, 1, 1]} : vector<18x18x4xf32> to vector<18x16x4xf32>
    %96 = arith.truncf %95 : vector<18x16x4xf32> to vector<18x16x4xbf16>
    %97 = vector.extract_strided_slice %92 {offsets = [0, 0, 0], sizes = [16, 16, 4], strides = [1, 1, 1]} : vector<18x16x4xbf16> to vector<16x16x4xbf16>
    %98 = vector.shape_cast %97 : vector<16x16x4xbf16> to vector<256x4xbf16>
    %c0_81 = arith.constant 0 : index
    %c0_82 = arith.constant 0 : index
    %c0_83 = arith.constant 0 : index
    %99 = vector.load %arg3[%c0_81, %c0_82, %c0_83] : memref<9x4x4xbf16, #tpu.memory_space<vmem>>, vector<1x4x4xbf16>
    %100 = vector.shape_cast %99 : vector<1x4x4xbf16> to vector<4x4xbf16>
    %cst_84 = arith.constant dense<0.000000e+00> : vector<256x4xf32>
    %101 = tpu.matmul %98, %100, %cst_84 {dimension_numbers = #tpu.dot_dimension_numbers<[1], [0], [0], [1], [0, 0, 1, 1], [], []>} : vector<256x4xbf16>, vector<4x4xbf16>, vector<256x4xf32> -> vector<256x4xf32>
    %102 = vector.extract_strided_slice %94 {offsets = [0, 0, 0], sizes = [16, 16, 4], strides = [1, 1, 1]} : vector<18x16x4xbf16> to vector<16x16x4xbf16>
    %103 = vector.shape_cast %102 : vector<16x16x4xbf16> to vector<256x4xbf16>
    %c1_85 = arith.constant 1 : index
    %c0_86 = arith.constant 0 : index
    %c0_87 = arith.constant 0 : index
    %104 = vector.load %arg3[%c1_85, %c0_86, %c0_87] : memref<9x4x4xbf16, #tpu.memory_space<vmem>>, vector<1x4x4xbf16>
    %105 = vector.shape_cast %104 : vector<1x4x4xbf16> to vector<4x4xbf16>
    %cst_88 = arith.constant dense<0.000000e+00> : vector<256x4xf32>
    %106 = tpu.matmul %103, %105, %cst_88 {dimension_numbers = #tpu.dot_dimension_numbers<[1], [0], [0], [1], [0, 0, 1, 1], [], []>} : vector<256x4xbf16>, vector<4x4xbf16>, vector<256x4xf32> -> vector<256x4xf32>
    %107 = arith.addf %101, %106 : vector<256x4xf32>
    %108 = vector.extract_strided_slice %96 {offsets = [0, 0, 0], sizes = [16, 16, 4], strides = [1, 1, 1]} : vector<18x16x4xbf16> to vector<16x16x4xbf16>
    %109 = vector.shape_cast %108 : vector<16x16x4xbf16> to vector<256x4xbf16>
    %c2_89 = arith.constant 2 : index
    %c0_90 = arith.constant 0 : index
    %c0_91 = arith.constant 0 : index
    %110 = vector.load %arg3[%c2_89, %c0_90, %c0_91] : memref<9x4x4xbf16, #tpu.memory_space<vmem>>, vector<1x4x4xbf16>
    %111 = vector.shape_cast %110 : vector<1x4x4xbf16> to vector<4x4xbf16>
    %cst_92 = arith.constant dense<0.000000e+00> : vector<256x4xf32>
    %112 = tpu.matmul %109, %111, %cst_92 {dimension_numbers = #tpu.dot_dimension_numbers<[1], [0], [0], [1], [0, 0, 1, 1], [], []>} : vector<256x4xbf16>, vector<4x4xbf16>, vector<256x4xf32> -> vector<256x4xf32>
    %113 = arith.addf %107, %112 : vector<256x4xf32>
    %114 = vector.extract_strided_slice %92 {offsets = [1, 0, 0], sizes = [16, 16, 4], strides = [1, 1, 1]} : vector<18x16x4xbf16> to vector<16x16x4xbf16>
    %115 = vector.shape_cast %114 : vector<16x16x4xbf16> to vector<256x4xbf16>
    %c3_93 = arith.constant 3 : index
    %c0_94 = arith.constant 0 : index
    %c0_95 = arith.constant 0 : index
    %116 = vector.load %arg3[%c3_93, %c0_94, %c0_95] : memref<9x4x4xbf16, #tpu.memory_space<vmem>>, vector<1x4x4xbf16>
    %117 = vector.shape_cast %116 : vector<1x4x4xbf16> to vector<4x4xbf16>
    %cst_96 = arith.constant dense<0.000000e+00> : vector<256x4xf32>
    %118 = tpu.matmul %115, %117, %cst_96 {dimension_numbers = #tpu.dot_dimension_numbers<[1], [0], [0], [1], [0, 0, 1, 1], [], []>} : vector<256x4xbf16>, vector<4x4xbf16>, vector<256x4xf32> -> vector<256x4xf32>
    %119 = arith.addf %113, %118 : vector<256x4xf32>
    %120 = vector.extract_strided_slice %94 {offsets = [1, 0, 0], sizes = [16, 16, 4], strides = [1, 1, 1]} : vector<18x16x4xbf16> to vector<16x16x4xbf16>
    %121 = vector.shape_cast %120 : vector<16x16x4xbf16> to vector<256x4xbf16>
    %c4_97 = arith.constant 4 : index
    %c0_98 = arith.constant 0 : index
    %c0_99 = arith.constant 0 : index
    %122 = vector.load %arg3[%c4_97, %c0_98, %c0_99] : memref<9x4x4xbf16, #tpu.memory_space<vmem>>, vector<1x4x4xbf16>
    %123 = vector.shape_cast %122 : vector<1x4x4xbf16> to vector<4x4xbf16>
    %cst_100 = arith.constant dense<0.000000e+00> : vector<256x4xf32>
    %124 = tpu.matmul %121, %123, %cst_100 {dimension_numbers = #tpu.dot_dimension_numbers<[1], [0], [0], [1], [0, 0, 1, 1], [], []>} : vector<256x4xbf16>, vector<4x4xbf16>, vector<256x4xf32> -> vector<256x4xf32>
    %125 = arith.addf %119, %124 : vector<256x4xf32>
    %126 = vector.extract_strided_slice %96 {offsets = [1, 0, 0], sizes = [16, 16, 4], strides = [1, 1, 1]} : vector<18x16x4xbf16> to vector<16x16x4xbf16>
    %127 = vector.shape_cast %126 : vector<16x16x4xbf16> to vector<256x4xbf16>
    %c5_101 = arith.constant 5 : index
    %c0_102 = arith.constant 0 : index
    %c0_103 = arith.constant 0 : index
    %128 = vector.load %arg3[%c5_101, %c0_102, %c0_103] : memref<9x4x4xbf16, #tpu.memory_space<vmem>>, vector<1x4x4xbf16>
    %129 = vector.shape_cast %128 : vector<1x4x4xbf16> to vector<4x4xbf16>
    %cst_104 = arith.constant dense<0.000000e+00> : vector<256x4xf32>
    %130 = tpu.matmul %127, %129, %cst_104 {dimension_numbers = #tpu.dot_dimension_numbers<[1], [0], [0], [1], [0, 0, 1, 1], [], []>} : vector<256x4xbf16>, vector<4x4xbf16>, vector<256x4xf32> -> vector<256x4xf32>
    %131 = arith.addf %125, %130 : vector<256x4xf32>
    %132 = vector.extract_strided_slice %92 {offsets = [2, 0, 0], sizes = [16, 16, 4], strides = [1, 1, 1]} : vector<18x16x4xbf16> to vector<16x16x4xbf16>
    %133 = vector.shape_cast %132 : vector<16x16x4xbf16> to vector<256x4xbf16>
    %c6_105 = arith.constant 6 : index
    %c0_106 = arith.constant 0 : index
    %c0_107 = arith.constant 0 : index
    %134 = vector.load %arg3[%c6_105, %c0_106, %c0_107] : memref<9x4x4xbf16, #tpu.memory_space<vmem>>, vector<1x4x4xbf16>
    %135 = vector.shape_cast %134 : vector<1x4x4xbf16> to vector<4x4xbf16>
    %cst_108 = arith.constant dense<0.000000e+00> : vector<256x4xf32>
    %136 = tpu.matmul %133, %135, %cst_108 {dimension_numbers = #tpu.dot_dimension_numbers<[1], [0], [0], [1], [0, 0, 1, 1], [], []>} : vector<256x4xbf16>, vector<4x4xbf16>, vector<256x4xf32> -> vector<256x4xf32>
    %137 = arith.addf %131, %136 : vector<256x4xf32>
    %138 = vector.extract_strided_slice %94 {offsets = [2, 0, 0], sizes = [16, 16, 4], strides = [1, 1, 1]} : vector<18x16x4xbf16> to vector<16x16x4xbf16>
    %139 = vector.shape_cast %138 : vector<16x16x4xbf16> to vector<256x4xbf16>
    %c7_109 = arith.constant 7 : index
    %c0_110 = arith.constant 0 : index
    %c0_111 = arith.constant 0 : index
    %140 = vector.load %arg3[%c7_109, %c0_110, %c0_111] : memref<9x4x4xbf16, #tpu.memory_space<vmem>>, vector<1x4x4xbf16>
    %141 = vector.shape_cast %140 : vector<1x4x4xbf16> to vector<4x4xbf16>
    %cst_112 = arith.constant dense<0.000000e+00> : vector<256x4xf32>
    %142 = tpu.matmul %139, %141, %cst_112 {dimension_numbers = #tpu.dot_dimension_numbers<[1], [0], [0], [1], [0, 0, 1, 1], [], []>} : vector<256x4xbf16>, vector<4x4xbf16>, vector<256x4xf32> -> vector<256x4xf32>
    %143 = arith.addf %137, %142 : vector<256x4xf32>
    %144 = vector.extract_strided_slice %96 {offsets = [2, 0, 0], sizes = [16, 16, 4], strides = [1, 1, 1]} : vector<18x16x4xbf16> to vector<16x16x4xbf16>
    %145 = vector.shape_cast %144 : vector<16x16x4xbf16> to vector<256x4xbf16>
    %c8_113 = arith.constant 8 : index
    %c0_114 = arith.constant 0 : index
    %c0_115 = arith.constant 0 : index
    %146 = vector.load %arg3[%c8_113, %c0_114, %c0_115] : memref<9x4x4xbf16, #tpu.memory_space<vmem>>, vector<1x4x4xbf16>
    %147 = vector.shape_cast %146 : vector<1x4x4xbf16> to vector<4x4xbf16>
    %cst_116 = arith.constant dense<0.000000e+00> : vector<256x4xf32>
    %148 = tpu.matmul %145, %147, %cst_116 {dimension_numbers = #tpu.dot_dimension_numbers<[1], [0], [0], [1], [0, 0, 1, 1], [], []>} : vector<256x4xbf16>, vector<4x4xbf16>, vector<256x4xf32> -> vector<256x4xf32>
    %149 = arith.addf %143, %148 : vector<256x4xf32>
    %c0_117 = arith.constant 0 : index
    %c0_118 = arith.constant 0 : index
    %c0_119 = arith.constant 0 : index
    %c0_120 = arith.constant 0 : index
    %150 = vector.load %arg1[%c0_117, %c0_118, %c0_119, %c0_120] : memref<1x16x16x4xbf16, #tpu.memory_space<vmem>>, vector<1x16x16x4xbf16>
    %151 = vector.shape_cast %150 : vector<1x16x16x4xbf16> to vector<16x16x4xbf16>
    %152 = arith.extf %151 : vector<16x16x4xbf16> to vector<16x16x4xf32>
    %153 = vector.shape_cast %152 : vector<16x16x4xf32> to vector<256x4xf32>
    %c0_121 = arith.constant 0 : index
    %c0_122 = arith.constant 0 : index
    %154 = vector.load %arg6[%c0_121, %c0_122] : memref<1x4xf32, #tpu.memory_space<vmem>>, vector<1x4xf32>
    %155 = vector.broadcast %154 : vector<1x4xf32> to vector<256x4xf32>
    %156 = arith.mulf %149, %155 : vector<256x4xf32>
    %c0_123 = arith.constant 0 : index
    %c0_124 = arith.constant 0 : index
    %157 = vector.load %arg7[%c0_123, %c0_124] : memref<1x4xf32, #tpu.memory_space<vmem>>, vector<1x4xf32>
    %158 = vector.broadcast %157 : vector<1x4xf32> to vector<256x4xf32>
    %159 = arith.addf %156, %158 : vector<256x4xf32>
    %160 = arith.addf %159, %153 : vector<256x4xf32>
    %c0_125 = arith.constant 0 : index
    %c0_126 = arith.constant 0 : index
    %c0_127 = arith.constant 0 : index
    %161 = vector.load %arg8[%c0_125, %c0_126, %c0_127] : memref<1x256x4xf32, #tpu.memory_space<vmem>>, vector<1x256x4xf32>
    %162 = vector.shape_cast %161 : vector<1x256x4xf32> to vector<256x4xf32>
    %163 = vector.shape_cast %160 : vector<256x4xf32> to vector<1x256x4xf32>
    tpu.vector_store %arg8[%c0_125, %c0_126, %c0_127], %163 {strides = array<i32>} : memref<1x256x4xf32, #tpu.memory_space<vmem>>, vector<1x256x4xf32>,
    return
  }
  func.func @transform_0(%arg0: i32) -> (i32, i32, i32, i32) {
    %c0_i32 = arith.constant 0 : i32
    %c0_i32_0 = arith.constant 0 : i32
    %c0_i32_1 = arith.constant 0 : i32
    %c0_i32_2 = arith.constant 0 : i32
    return %arg0, %c0_i32, %c0_i32_0, %c0_i32_1 : i32, i32, i32, i32
  }
  func.func @transform_1(%arg0: i32) -> (i32, i32, i32) {
    %c0_i32 = arith.constant 0 : i32
    %c0_i32_0 = arith.constant 0 : i32
    %c0_i32_1 = arith.constant 0 : i32
    %c0_i32_2 = arith.constant 0 : i32
    return %c0_i32, %c0_i32_0, %c0_i32_1 : i32, i32, i32
  }
  func.func @transform_2(%arg0: i32) -> (i32, i32, i32) {
    %c0_i32 = arith.constant 0 : i32
    %c0_i32_0 = arith.constant 0 : i32
    %c0_i32_1 = arith.constant 0 : i32
    %c0_i32_2 = arith.constant 0 : i32
    return %c0_i32, %c0_i32_0, %c0_i32_1 : i32, i32, i32
  }
  func.func @transform_3(%arg0: i32) -> (i32, i32) {
    %c0_i32 = arith.constant 0 : i32
    %c0_i32_0 = arith.constant 0 : i32
    %c0_i32_1 = arith.constant 0 : i32
    return %c0_i32, %c0_i32_0 : i32, i32
  }
  func.func @transform_4(%arg0: i32) -> (i32, i32) {
    %c0_i32 = arith.constant 0 : i32
    %c0_i32_0 = arith.constant 0 : i32
    %c0_i32_1 = arith.constant 0 : i32
    return %c0_i32, %c0_i32_0 : i32, i32
  }
  func.func @transform_5(%arg0: i32) -> (i32, i32) {
    %c0_i32 = arith.constant 0 : i32
    %c0_i32_0 = arith.constant 0 : i32
    %c0_i32_1 = arith.constant 0 : i32
    return %c0_i32, %c0_i32_0 : i32, i32
  }
  func.func @transform_6(%arg0: i32) -> (i32, i32) {
    %c0_i32 = arith.constant 0 : i32
    %c0_i32_0 = arith.constant 0 : i32
    %c0_i32_1 = arith.constant 0 : i32
    return %c0_i32, %c0_i32_0 : i32, i32
  }
  func.func @transform_7(%arg0: i32) -> (i32, i32, i32) {
    %c0_i32 = arith.constant 0 : i32
    %c0_i32_0 = arith.constant 0 : i32
    %c0_i32_1 = arith.constant 0 : i32
    return %arg0, %c0_i32, %c0_i32_0 : i32, i32, i32
  }
}

</mosaic_0001>

<bundles_post_ra>
// kernel: tpu_custom_call.1
= control target key start
LH: loop header
LB: loop body
LE: loop exit
PB: predicated region body
PF: predicated region fallthrough
CT: control target
= control target key end

     0   :  { %s7435_s24 = smov 0   ;;  %s9021_s0 = inlined_call_operand.vmem [shape: bf16[2,16,16,4], index: 0, kind: input, shape index: {}]   ;;  %s9022_s1 = inlined_call_operand.vmem [shape: bf16[9,4,4], index: 1, kind: input, shape index: {}]   ;;  %s9023_s2 = inlined_call_operand.vmem [shape: bf16[9,4,4], index: 2, kind: input, shape index: {}]   ;;  %s9024_s3 = inlined_call_operand.vmem [shape: f32[1,4], index: 3, kind: input, shape index: {}]   ;;  %s9025_s4 = inlined_call_operand.vmem [shape: f32[1,4], index: 4, kind: input, shape index: {}]   ;;  %s9026_s5 = inlined_call_operand.vmem [shape: f32[1,4], index: 5, kind: input, shape index: {}]   ;;  %s9027_s6 = inlined_call_operand.vmem [shape: f32[1,4], index: 6, kind: input, shape index: {}]   ;;  %s9028_s7 = inlined_call_operand.vmem [shape: f32[2,256,4], index: 7, kind: output, shape index: {}]  }
   0x1 LB: > { %s5452_s25 = sadd.s32 4294967295, %s7393_s24   ;;  %p5456_p0 = scmp.ge.s32.totalorder %s7393_s24, 1  ;;  %s7393_s24 = sphi %s7435_s24, %s17_s24  }
   0x2   : > { %p237_p1 = scmp.lt.s32.totalorder %s7393_s24, 3 }
   0x4   : > { %p238_p2 = pnand %p5456_p0, %p237_p1 }
   0x5   : > { %v5461_v0 = vld [vmem:[%s9022_s1 + $0x2] sm:$0x3] (!%p238_p2)  ;;  %vm790_vm0 = vcmask (!%p238_p2), 1041408   ;;  %p269_p3 = scmp.lt.s32.totalorder (!%p238_p2), %s5452_s25, 1  ;;  %v7451_v2 = vld [vmem:[%s9022_s1] sm:$0x3] (!%p238_p2) }
   0x6   : > { %241 = sbr.rel (%p238_p2) target bundleno = 1605 (0x645), region = 48  ;;  %7361 = vmatprep.subr.msk.bf16.mxu0 (!%p238_p2), %vm790_vm0, %v5461_v0  ;;  %v792_v1 = vsel (!%p238_p2), %vm790_vm0, %v5461_v0, 0  ;;  %vm345_vm1 = vcmask (!%p238_p2), 31744   ;;  %vm401_vm2 = vcmask (!%p238_p2), 24576   ;;  %vm547_vm3 = vsmask.f32 (!%p238_p2), 7424 }
   0x7   : > { %6238 = vmatpush3.bf16.msra.mxu0 (!%p238_p2), %v792_v1  ;;  %vm1183_vm4 = vcmask (!%p238_p2), 1046528  }
   0x8   : > { %7362 = vmatprep.subr.msk.bf16.mxu0 (!%p238_p2), %vm790_vm0, %v7451_v2 }
   0xd   : > { %s9030_s25 = smov (!%p269_p3, %s5452_s25), 1 }
   0xe   : > { %s5771_s30 = sshll.u32 %s9030_s25, 7  ;;  %s5772_s11 = sshll.u32 %s9030_s25, 8 }
   0xf   : > { %s7461_s10 = scalar_lea.vmem %s9021_s0, %s5771_s30  ;;  %s8878_s25 = scalar_lea.vmem %s9028_s7, %s5772_s11 }
  0x10   : > { %v5901_v3 = vld [vmem:[%s7461_s10 + $0x8] sm:$0xff]   ;;  %v5774_v4 = vld [vmem:[%s7461_s10] sm:$0xff]   ;;  %v5902_v5 = vld [vmem:[%s7461_s10 + $0x10] sm:$0xff]  }
  0x11   : > { %v5779_v6 = vunpack.c.l.bf16 %v5901_v3  ;;  %v5780_v7 = vunpack.c.h.bf16 %v5901_v3  ;;  %v5775_v8 = vunpack.c.l.bf16 %v5774_v4  ;;  %v5776_v9 = vunpack.c.h.bf16 %v5774_v4  ;;  %v5903_v10 = vld [vmem:[%s7461_s10 + $0x18] sm:$0xff]   ;;  %v5904_v11 = vld [vmem:[%s7461_s10 + $0x20] sm:$0xff]   ;;  %v5905_v12 = vld [vmem:[%s7461_s10 + $0x28] sm:$0xff]  }
  0x12   : > { %v5783_v13 = vunpack.c.l.bf16 %v5902_v5  ;;  %v5784_v14 = vunpack.c.h.bf16 %v5902_v5  ;;  %v5787_v15 = vunpack.c.l.bf16 %v5903_v10  ;;  %v5788_v16 = vunpack.c.h.bf16 %v5903_v10  ;;  %v5906_v17 = vld [vmem:[%s7461_s10 + $0x30] sm:$0xff]   ;;  %v5907_v18 = vld [vmem:[%s7461_s10 + $0x38] sm:$0xff]   ;;  %v5908_v19 = vld [vmem:[%s7461_s10 + $0x40] sm:$0xff]  }
  0x13   : > { %348 = vst.msk [vmem:[#allocation2 + $0x31] sm:$0xff] %vm345_vm1, %v5779_v6  ;;  %378 = vst.msk [vmem:[#allocation2 + $0x1] sm:$0xff] %vm345_vm1, %v5779_v6  ;;  %v5791_v20 = vunpack.c.l.bf16 %v5904_v11  ;;  %v5792_v21 = vunpack.c.h.bf16 %v5904_v11  ;;  %v5795_v22 = vunpack.c.l.bf16 %v5905_v12  ;;  %v5796_v23 = vunpack.c.h.bf16 %v5905_v12  ;;  %v5909_v24 = vld [vmem:[%s7461_s10 + $0x48] sm:$0xff]   ;;  %v5910_v25 = vld [vmem:[%s7461_s10 + $0x50] sm:$0xff]  }
  0x14   : > { %379 = vst.msk [vmem:[#allocation2 + $0x9] sm:$0xff] %vm345_vm1, %v5780_v7  ;;  %349 = vst.msk [vmem:[#allocation2 + $0x39] sm:$0xff] %vm345_vm1, %v5780_v7  ;;  %v5911_v26 = vld [vmem:[%s7461_s10 + $0x58] sm:$0xff]   ;;  %v5799_v27 = vunpack.c.l.bf16 %v5906_v17  ;;  %v5800_v28 = vunpack.c.h.bf16 %v5906_v17  ;;  %v5803_v29 = vunpack.c.l.bf16 %v5907_v18  ;;  %v5804_v30 = vunpack.c.h.bf16 %v5907_v18  ;;  %v5912_v31 = vld [vmem:[%s7461_s10 + $0x60] sm:$0xff]  }
  0x15   : > { %346 = vst.msk [vmem:[#allocation2 + $0x19] sm:$0xff] %vm345_vm1, %v5775_v8  ;;  %347 = vst.msk [vmem:[#allocation2 + $0x21] sm:$0xff] %vm345_vm1, %v5776_v9  ;;  %v5913_v32 = vld [vmem:[%s7461_s10 + $0x68] sm:$0xff]   ;;  %v5807_v33 = vunpack.c.l.bf16 %v5908_v19  ;;  %v5808_v34 = vunpack.c.h.bf16 %v5908_v19  ;;  %v5811_v35 = vunpack.c.l.bf16 %v5909_v24  ;;  %v5812_v36 = vunpack.c.h.bf16 %v5909_v24  ;;  %v5914_v37 = vld [vmem:[%s7461_s10 + $0x70] sm:$0xff]  }
  0x16   : > { %350 = vst.msk [vmem:[#allocation2 + $0x49] sm:$0xff] %vm345_vm1, %v5783_v13  ;;  %351 = vst.msk [vmem:[#allocation2 + $0x51] sm:$0xff] %vm345_vm1, %v5784_v14  ;;  %v5815_v38 = vunpack.c.l.bf16 %v5910_v25  ;;  %v5816_v39 = vunpack.c.h.bf16 %v5910_v25  ;;  %v5819_v40 = vunpack.c.l.bf16 %v5911_v26  ;;  %v5820_v41 = vunpack.c.h.bf16 %v5911_v26 }
  0x17   : > { %352 = vst.msk [vmem:[#allocation2 + $0x61] sm:$0xff] %vm345_vm1, %v5787_v15  ;;  %353 = vst.msk [vmem:[#allocation2 + $0x69] sm:$0xff] %vm345_vm1, %v5788_v16  ;;  %v5823_v42 = vunpack.c.l.bf16 %v5912_v31  ;;  %v5824_v43 = vunpack.c.h.bf16 %v5912_v31  ;;  %v5827_v44 = vunpack.c.l.bf16 %v5913_v32  ;;  %v5828_v45 = vunpack.c.h.bf16 %v5913_v32 }
  0x18   : > { %354 = vst.msk [vmem:[#allocation2 + $0x79] sm:$0xff] %vm345_vm1, %v5791_v20  ;;  %355 = vst.msk [vmem:[#allocation2 + $0x81] sm:$0xff] %vm345_vm1, %v5792_v21  ;;  %v5831_v46 = vunpack.c.l.bf16 %v5914_v37  ;;  %v5832_v47 = vunpack.c.h.bf16 %v5914_v37  ;;  %v7539_v14 = vsel %vm790_vm0, %v7451_v2, 0 }
  0x19   : > { %356 = vst.msk [vmem:[#allocation2 + $0x91] sm:$0xff] %vm345_vm1, %v5795_v22  ;;  %357 = vst.msk [vmem:[#allocation2 + $0x99] sm:$0xff] %vm345_vm1, %v5796_v23 }
  0x1a   : > { %358 = vst.msk [vmem:[#allocation2 + $0xa9] sm:$0xff] %vm345_vm1, %v5799_v27  ;;  %359 = vst.msk [vmem:[#allocation2 + $0xb1] sm:$0xff] %vm345_vm1, %v5800_v28  ;;  %v383_v48 = vld [vmem:[#allocation2 + $0x2] sm:$0x1]  ;;  %v385_v52 = vld [vmem:[#allocation2 + $0x32] sm:$0x1] }
  0x1b   : > { %360 = vst.msk [vmem:[#allocation2 + $0xc1] sm:$0xff] %vm345_vm1, %v5803_v29  ;;  %361 = vst.msk [vmem:[#allocation2 + $0xc9] sm:$0xff] %vm345_vm1, %v5804_v30  ;;  %v420_v49 = vld [vmem:[#allocation2 + $0xf] sm:$0x1]  ;;  %v422_v53 = vld [vmem:[#allocation2 + $0x3f] sm:$0x1] }
  0x1c   : > { %362 = vst.msk [vmem:[#allocation2 + $0xd9] sm:$0xff] %vm345_vm1, %v5807_v33  ;;  %363 = vst.msk [vmem:[#allocation2 + $0xe1] sm:$0xff] %vm345_vm1, %v5808_v34  ;;  %v384_v50 = vld [vmem:[#allocation2 + $0x1a] sm:$0x1]  ;;  %v421_v51 = vld [vmem:[#allocation2 + $0x27] sm:$0x1] }
  0x1d   : > { %364 = vst.msk [vmem:[#allocation2 + $0xf1] sm:$0xff] %vm345_vm1, %v5811_v35  ;;  %365 = vst.msk [vmem:[#allocation2 + $0xf9] sm:$0xff] %vm345_vm1, %v5812_v36  ;;  %v386_v54 = vld [vmem:[#allocation2 + $0x4a] sm:$0x1]  ;;  %v423_v55 = vld [vmem:[#allocation2 + $0x57] sm:$0x1] }
  0x1e   : > { %366 = vst.msk [vmem:[#allocation2 + $0x109] sm:$0xff] %vm345_vm1, %v5815_v38  ;;  %367 = vst.msk [vmem:[#allocation2 + $0x111] sm:$0xff] %vm345_vm1, %v5816_v39  ;;  %v387_v56 = vld [vmem:[#allocation2 + $0x62] sm:$0x1]  ;;  %v424_v57 = vld [vmem:[#allocation2 + $0x6f] sm:$0x1] }
  0x1f   : > { %368 = vst.msk [vmem:[#allocation2 + $0x121] sm:$0xff] %vm345_vm1, %v5819_v40  ;;  %369 = vst.msk [vmem:[#allocation2 + $0x129] sm:$0xff] %vm345_vm1, %v5820_v41  ;;  %v457_v58 = vld [vmem:[#allocation2 + $0x8] sm:$0xff]  ;;  %v388_v59 = vld [vmem:[#allocation2 + $0x7a] sm:$0x1] }
  0x20   : > { %370 = vst.msk [vmem:[#allocation2 + $0x139] sm:$0xff] %vm345_vm1, %v5823_v42  ;;  %371 = vst.msk [vmem:[#allocation2 + $0x141] sm:$0xff] %vm345_vm1, %v5824_v43  ;;  %v425_v60 = vld [vmem:[#allocation2 + $0x87] sm:$0x1]  ;;  %v389_v62 = vld [vmem:[#allocation2 + $0x92] sm:$0x1] }
  0x21   : > { %372 = vst.msk [vmem:[#allocation2 + $0x151] sm:$0xff] %vm345_vm1, %v5827_v44  ;;  %373 = vst.msk [vmem:[#allocation2 + $0x159] sm:$0xff] %vm345_vm1, %v5828_v45  ;;  %v460_v61 = vld [vmem:[#allocation2 + $0x20] sm:$0xff]  ;;  %v426_v63 = vld [vmem:[#allocation2 + $0x9f] sm:$0x1] }
  0x22   : > { %374 = vst.msk [vmem:[#allocation2 + $0x169] sm:$0xff] %vm345_vm1, %v5831_v46  ;;  %375 = vst.msk [vmem:[#allocation2 + $0x171] sm:$0xff] %vm345_vm1, %v5832_v47  ;;  %v463_v0 = vld [vmem:[#allocation2 + $0x38] sm:$0xff]  ;;  %v390_v1 = vld [vmem:[#allocation2 + $0xaa] sm:$0x1] }
  0x23   : > { %381 = vst.msk [vmem:[#allocation2 + $0x199] sm:$0xff] %vm345_vm1, %v5831_v46  ;;  %382 = vst.msk [vmem:[#allocation2 + $0x1a1] sm:$0xff] %vm345_vm1, %v5832_v47  ;;  %v427_v3 = vld [vmem:[#allocation2 + $0xb7] sm:$0x1]  ;;  %v391_v6 = vld [vmem:[#allocation2 + $0xc2] sm:$0x1] }
  0x24   : > { %402 = vst.msk [vmem:[#allocation2] sm:$0x1] %vm401_vm2, %v383_v48  ;;  %438 = vst.msk [vmem:[#allocation2 + $0x11] sm:$0x1] %vm401_vm2, %v420_v49  ;;  %v428_v11 = vld [vmem:[#allocation2 + $0xcf] sm:$0x1] }
  0x25   : > { %403 = vst.msk [vmem:[#allocation2 + $0x18] sm:$0x1] %vm401_vm2, %v384_v50  ;;  %439 = vst.msk [vmem:[#allocation2 + $0x29] sm:$0x1] %vm401_vm2, %v421_v51  ;;  %v466_v22 = vld [vmem:[#allocation2 + $0x50] sm:$0xff]  ;;  %v469_v23 = vld [vmem:[#allocation2 + $0x68] sm:$0xff] }
  0x26   : > { %404 = vst.msk [vmem:[#allocation2 + $0x30] sm:$0x1] %vm401_vm2, %v385_v52  ;;  %440 = vst.msk [vmem:[#allocation2 + $0x41] sm:$0x1] %vm401_vm2, %v422_v53  ;;  %v472_v37 = vld [vmem:[#allocation2 + $0x80] sm:$0xff]  ;;  %v475_v44 = vld [vmem:[#allocation2 + $0x98] sm:$0xff] }
  0x27   : > { %405 = vst.msk [vmem:[#allocation2 + $0x48] sm:$0x1] %vm401_vm2, %v386_v54  ;;  %441 = vst.msk [vmem:[#allocation2 + $0x59] sm:$0x1] %vm401_vm2, %v423_v55  ;;  %v392_v50 = vld [vmem:[#allocation2 + $0xda] sm:$0x1] }
  0x28   : > { %406 = vst.msk [vmem:[#allocation2 + $0x60] sm:$0x1] %vm401_vm2, %v387_v56  ;;  %442 = vst.msk [vmem:[#allocation2 + $0x71] sm:$0x1] %vm401_vm2, %v424_v57  ;;  %v7566_v51 = vld [vmem:[%s9022_s1 + $0x4] sm:$0x3] }
  0x29   : > { %407 = vst.msk [vmem:[#allocation2 + $0x78] sm:$0x1] %vm401_vm2, %v388_v59  ;;  %443 = vst.msk [vmem:[#allocation2 + $0x89] sm:$0x1] %vm401_vm2, %v425_v60  ;;  %v429_v57 = vld [vmem:[#allocation2 + $0xe7] sm:$0x1] }
  0x2a   : > { %408 = vst.msk [vmem:[#allocation2 + $0x90] sm:$0x1] %vm401_vm2, %v389_v62  ;;  %444 = vst.msk [vmem:[#allocation2 + $0xa1] sm:$0x1] %vm401_vm2, %v426_v63  ;;  %v393_v62 = vld [vmem:[#allocation2 + $0xf2] sm:$0x1] }
  0x2b   : > { %v456_v4 = vld [vmem:[#allocation2] sm:$0xff]  ;;  %v458_v5 = vld [vmem:[#allocation2 + $0x10] sm:$0x3]  ;;  %409 = vst.msk [vmem:[#allocation2 + $0xa8] sm:$0x1] %vm401_vm2, %v390_v1 }
  0x2c   : > { %445 = vst.msk [vmem:[#allocation2 + $0xb9] sm:$0x1] %vm401_vm2, %v427_v3  ;;  %v7528_v7 = vpack.c.bf16 %v457_v58, %v456_v4  ;;  %v7530_v8 = vpack.c.bf16 %v458_v5, %v458_v5  ;;  %v459_v9 = vld [vmem:[#allocation2 + $0x18] sm:$0xff]  ;;  %v461_v10 = vld [vmem:[#allocation2 + $0x28] sm:$0x3]  ;;  %v478_v5 = vld [vmem:[#allocation2 + $0xb0] sm:$0xff] }
  0x2d   : > { %410 = vst.msk [vmem:[#allocation2 + $0xc0] sm:$0x1] %vm401_vm2, %v391_v6  ;;  %v7533_v12 = vpack.c.bf16 %v460_v61, %v459_v9  ;;  %v7535_v13 = vpack.c.bf16 %v461_v10, %v461_v10  ;;  %v462_v15 = vld [vmem:[#allocation2 + $0x30] sm:$0xff]  ;;  %v464_v16 = vld [vmem:[#allocation2 + $0x40] sm:$0x3] }
  0x2e   : > { %446 = vst.msk [vmem:[#allocation2 + $0xd1] sm:$0x1] %vm401_vm2, %v428_v11  ;;  %v549_v17 = vshrl.u32 %v7528_v7, 16  ;;  %v551_v18 = vshll.u32 %v7528_v7, 16  ;;  %v556_v19 = vshll.u32 %v7530_v8, 16  ;;  %v7545_v20 = vpack.c.bf16 %v463_v0, %v462_v15  ;;  %v465_v21 = vld [vmem:[#allocation2 + $0x48] sm:$0xff] }
  0x2f   : > { %v561_v24 = vshrl.u32 %v7533_v12, 16  ;;  %v563_v2 = vshll.u32 %v7533_v12, 16  ;;  %v568_v25 = vshll.u32 %v7535_v13, 16  ;;  %v467_v26 = vld [vmem:[#allocation2 + $0x58] sm:$0x3]  ;;  %v468_v27 = vld [vmem:[#allocation2 + $0x60] sm:$0xff]  ;;  %v7550_v30 = vpack.c.bf16 %v464_v16, %v464_v16 }
  0x30   : > { %v553_v28 = vrot.slane %v551_v18, 1  ;;  %v558_v29 = vrot.slane %v556_v19, 1  ;;  %v573_v31 = vshrl.u32 %v7545_v20, 16  ;;  %v575_v34 = vshll.u32 %v7545_v20, 16  ;;  %v470_v36 = vld [vmem:[#allocation2 + $0x70] sm:$0x3] }
  0x31   : > { %v565_v32 = vrot.slane %v563_v2, 1  ;;  %v570_v33 = vrot.slane %v568_v25, 1  ;;  %v7554_v35 = vpack.c.bf16 %v466_v22, %v465_v21  ;;  %v580_v39 = vshll.u32 %v7550_v30, 16  ;;  %v471_v42 = vld [vmem:[#allocation2 + $0x78] sm:$0xff]  ;;  %v473_v43 = vld [vmem:[#allocation2 + $0x88] sm:$0x3] }
  0x32   : > { %v554_v38 = vor.u32 %v553_v28, %v549_v17  ;;  %v7557_v40 = vpack.c.bf16 %v467_v26, %v467_v26  ;;  %v7559_v41 = vpack.c.bf16 %v469_v23, %v468_v27  ;;  %v577_v46 = vrot.slane %v575_v34, 1  ;;  %v474_v49 = vld [vmem:[#allocation2 + $0x90] sm:$0xff]  ;;  %v476_v56 = vld [vmem:[#allocation2 + $0xa0] sm:$0x3]  ;;  %411 = vst.msk [vmem:[#allocation2 + $0xd8] sm:$0x1] %vm401_vm2, %v392_v50 }
  0x33   : > { %v566_v45 = vor.u32 %v565_v32, %v561_v24  ;;  %v585_v47 = vshrl.u32 %v7554_v35, 16  ;;  %v587_v48 = vshll.u32 %v7554_v35, 16  ;;  %v582_v53 = vrot.slane %v580_v39, 1  ;;  %447 = vst.msk [vmem:[#allocation2 + $0xe9] sm:$0x1] %vm401_vm2, %v429_v57  ;;  %v481_v16 = vld [vmem:[#allocation2 + $0xc8] sm:$0xff] }
  0x34   : > { %v559_v52 = vsel %vm547_vm3, %v554_v38, %v558_v29  ;;  %v592_v54 = vshll.u32 %v7557_v40, 16  ;;  %v7570_v55 = vpack.c.bf16 %v470_v36, %v470_v36  ;;  %v578_v59 = vor.u32 %v577_v46, %v573_v31  ;;  %v430_v63 = vld [vmem:[#allocation2 + $0xff] sm:$0x1]  ;;  %412 = vst.msk [vmem:[#allocation2 + $0xf0] sm:$0x1] %vm401_vm2, %v393_v62  ;;  %v477_v22 = vld [vmem:[#allocation2 + $0xa8] sm:$0xff] }
  0x35   : > { %6239 = vmatprep.mubr.msk.bf16.mxu0 %vm345_vm1, %v559_v52  ;;  %v7575_v58 = vsel %vm547_vm3, %v566_v45, %v570_v33  ;;  %v589_v60 = vrot.slane %v587_v48, 1  ;;  %v597_v61 = vshrl.u32 %v7559_v41, 16  ;;  %v599_v1 = vshll.u32 %v7559_v41, 16  ;;  %448 = vst.msk [vmem:[#allocation2 + $0x101] sm:$0x1] %vm401_vm2, %v430_v63  ;;  %v480_v25 = vld [vmem:[#allocation2 + $0xc0] sm:$0xff] }
  0x36   : > { %6240 = vmatmul.mubr.msk.bf16.vlgmr.msra.gmra.mrb[0].mxu0 %vm345_vm1, %v7575_v58  ;;  %v594_v0 = vrot.slane %v592_v54, 1  ;;  %v604_v3 = vshll.u32 %v7570_v55, 16  ;;  %v7583_v4 = vpack.c.bf16 %v472_v37, %v471_v42  ;;  %v394_v6 = vld [vmem:[#allocation2 + $0x10a] sm:$0x1]  ;;  %v7589_v9 = vsel %vm547_vm3, %v578_v59, %v582_v53  ;;  %v431_v17 = vld [vmem:[#allocation2 + $0x117] sm:$0x1] }
  0x37   : > { %6272 = vmatpush3.bf16.msra.mxu0 %v7539_v14  ;;  %v590_v10 = vor.u32 %v589_v60, %v585_v47  ;;  %v7591_v11 = vpack.c.bf16 %v473_v43, %v473_v43  ;;  %v7593_v15 = vpack.c.bf16 %v475_v44, %v474_v49  ;;  %413 = vst.msk [vmem:[#allocation2 + $0x108] sm:$0x1] %vm401_vm2, %v394_v6  ;;  %v395_v18 = vld [vmem:[#allocation2 + $0x122] sm:$0x1]  ;;  %v601_v19 = vrot.slane %v599_v1, 1  ;;  %v487_v63 = vld [vmem:[#allocation2 + $0xf8] sm:$0xff] }
  0x38   : > { %6243 = vmatprep.mubr.msk.bf16.mxu0 %vm345_vm1, %v7589_v9  ;;  %v606_v21 = vrot.slane %v604_v3, 1  ;;  %v611_v14 = vshll.u32 %v7583_v4, 16  ;;  %449 = vst.msk [vmem:[#allocation2 + $0x119] sm:$0x1] %vm401_vm2, %v431_v17  ;;  %414 = vst.msk [vmem:[#allocation2 + $0x120] sm:$0x1] %vm401_vm2, %v395_v18  ;;  %7363 = vmatprep.subr.msk.bf16.mxu0 %vm790_vm0, %v7566_v51  ;;  %v7603_v24 = vpack.c.bf16 %v476_v56, %v476_v56 }
  0x39   : > { %v432_v23 = vld [vmem:[#allocation2 + $0x12f] sm:$0x1]  ;;  %v479_v2 = vld [vmem:[#allocation2 + $0xb8] sm:$0x3]  ;;  %v396_v26 = vld [vmem:[#allocation2 + $0x13a] sm:$0x1]  ;;  %v7607_v27 = vsel %vm547_vm3, %v590_v10, %v594_v0  ;;  %v602_v28 = vor.u32 %v601_v19, %v597_v61  ;;  %v7614_v38 = vpack.c.bf16 %v478_v5, %v477_v22  ;;  %v7622_v45 = vpack.c.bf16 %v481_v16, %v480_v25 }
  0x3a   : > { %450 = vst.msk [vmem:[#allocation2 + $0x131] sm:$0x1] %vm401_vm2, %v432_v23  ;;  %v609_v29 = vshrl.u32 %v7583_v4, 16  ;;  %v623_v31 = vshll.u32 %v7593_v15, 16  ;;  %415 = vst.msk [vmem:[#allocation2 + $0x138] sm:$0x1] %vm401_vm2, %v396_v26  ;;  %v7628_v48 = vpack.c.bf16 %v479_v2, %v479_v2 }
  0x3b   : > { %v433_v32 = vld [vmem:[#allocation2 + $0x147] sm:$0x1]  ;;  %v397_v33 = vld [vmem:[#allocation2 + $0x152] sm:$0x1]  ;;  %v613_v34 = vrot.slane %v611_v14, 1  ;;  %v616_v36 = vshll.u32 %v7591_v11, 16  ;;  %v7619_v42 = vsel %vm547_vm3, %v602_v28, %v606_v21 }
  0x3c   : > { %v621_v37 = vshrl.u32 %v7593_v15, 16  ;;  %451 = vst.msk [vmem:[#allocation2 + $0x149] sm:$0x1] %vm401_vm2, %v433_v32  ;;  %416 = vst.msk [vmem:[#allocation2 + $0x150] sm:$0x1] %vm401_vm2, %v397_v33  ;;  %v625_v43 = vrot.slane %v623_v31, 1 }
  0x3d   : > { %v434_v39 = vld [vmem:[#allocation2 + $0x15f] sm:$0x1]  ;;  %v628_v44 = vshll.u32 %v7603_v24, 16  ;;  %v398_v46 = vld [vmem:[#allocation2 + $0x16a] sm:$0x1]  ;;  %v614_v50 = vor.u32 %v613_v34, %v609_v29  ;;  %v618_v52 = vrot.slane %v616_v36, 1 }
  0x3e   : > { %452 = vst.msk [vmem:[#allocation2 + $0x161] sm:$0x1] %vm401_vm2, %v434_v39  ;;  %v482_v47 = vld [vmem:[#allocation2 + $0xd0] sm:$0x3]  ;;  %417 = vst.msk [vmem:[#allocation2 + $0x168] sm:$0x1] %vm401_vm2, %v398_v46  ;;  %6244 = vmatmul.mubr.msk.bf16.gmra.mrb[4].mxu0 %vm345_vm1, %v7607_v27  ;;  %v626_v54 = vor.u32 %v625_v43, %v621_v37 }
  0x3f   : > { %v435_v49 = vld [vmem:[#allocation2 + $0x177] sm:$0x1]  ;;  %6247 = vmatprep.mubr.msk.bf16.mxu0 %vm345_vm1, %v7619_v42  ;;  %v635_v53 = vshll.u32 %v7614_v38, 16  ;;  %v630_v56 = vrot.slane %v628_v44, 1  ;;  %v7634_v57 = vpack.c.bf16 %v482_v47, %v482_v47  ;;  %v647_v59 = vshll.u32 %v7622_v45, 16  ;;  %v483_v60 = vld [vmem:[#allocation2 + $0xd8] sm:$0xff] }
  0x40   : > { %453 = vst.msk [vmem:[#allocation2 + $0x179] sm:$0x1] %vm401_vm2, %v435_v49  ;;  %v484_v61 = vld [vmem:[#allocation2 + $0xe0] sm:$0xff]  ;;  %v486_v62 = vld [vmem:[#allocation2 + $0xf0] sm:$0xff]  ;;  %v633_v0 = vshrl.u32 %v7614_v38, 16  ;;  %v640_v1 = vshll.u32 %v7628_v48, 16  ;;  %v7640_v3 = vsel %vm547_vm3, %v614_v50, %v618_v52 }
  0x41   : > { %v637_v5 = vrot.slane %v635_v53, 1  ;;  %v645_v6 = vshrl.u32 %v7622_v45, 16  ;;  %v485_v10 = vld [vmem:[#allocation2 + $0xe8] sm:$0x3]  ;;  %v7643_v16 = vpack.c.bf16 %v484_v61, %v483_v60  ;;  %v7646_v17 = vsel %vm547_vm3, %v626_v54, %v630_v56  ;;  %v488_v14 = vld [vmem:[#allocation2 + $0x100] sm:$0x3] }
  0x42   : > { %v649_v18 = vrot.slane %v647_v59, 1  ;;  %v652_v19 = vshll.u32 %v7634_v57, 16  ;;  %v7649_v21 = vpack.c.bf16 %v487_v63, %v486_v62  ;;  %v7653_v22 = vpack.c.bf16 %v485_v10, %v485_v10  ;;  %v489_v32 = vld [vmem:[#allocation2 + $0x108] sm:$0xff]  ;;  %v490_v33 = vld [vmem:[#allocation2 + $0x110] sm:$0xff]  ;;  %v492_v34 = vld [vmem:[#allocation2 + $0x120] sm:$0xff] }
  0x43   : > { %v638_v23 = vor.u32 %v637_v5, %v633_v0  ;;  %v642_v2 = vrot.slane %v640_v1, 1  ;;  %v659_v25 = vshll.u32 %v7643_v16, 16  ;;  %v7658_v29 = vpack.c.bf16 %v488_v14, %v488_v14  ;;  %v493_v36 = vld [vmem:[#allocation2 + $0x128] sm:$0xff]  ;;  %v491_v47 = vld [vmem:[#allocation2 + $0x118] sm:$0x3]  ;;  %v496_v10 = vld [vmem:[#allocation2 + $0x140] sm:$0xff] }
  0x44   : > { %v650_v26 = vor.u32 %v649_v18, %v645_v6  ;;  %v654_v28 = vrot.slane %v652_v19, 1  ;;  %v671_v31 = vshll.u32 %v7649_v21, 16  ;;  %v657_v37 = vshrl.u32 %v7643_v16, 16  ;;  %v494_v56 = vld [vmem:[#allocation2 + $0x130] sm:$0x3]  ;;  %v495_v6 = vld [vmem:[#allocation2 + $0x138] sm:$0xff] }
  0x45   : > { %v664_v39 = vshll.u32 %v7653_v22, 16  ;;  %v7664_v43 = vsel %vm547_vm3, %v638_v23, %v642_v2  ;;  %v661_v44 = vrot.slane %v659_v25, 1  ;;  %v669_v46 = vshrl.u32 %v7649_v21, 16  ;;  %v498_v18 = vld [vmem:[#allocation2 + $0x150] sm:$0xff]  ;;  %v499_v19 = vld [vmem:[#allocation2 + $0x158] sm:$0xff] }
  0x46   : > { %6248 = vmatmul.mubr.msk.bf16.gmra.mrb[8].mxu0 %vm345_vm1, %v7640_v3  ;;  %v7667_v49 = vpack.c.bf16 %v490_v33, %v489_v32  ;;  %v7670_v50 = vsel %vm547_vm3, %v650_v26, %v654_v28  ;;  %v673_v52 = vrot.slane %v671_v31, 1  ;;  %v676_v53 = vshll.u32 %v7658_v29, 16 }
  0x47   : > { %6251 = vmatprep.mubr.msk.bf16.mxu0 %vm345_vm1, %v7646_v17  ;;  %v7673_v54 = vpack.c.bf16 %v493_v36, %v492_v34  ;;  %v7677_v59 = vpack.c.bf16 %v491_v47, %v491_v47  ;;  %v662_v60 = vor.u32 %v661_v44, %v657_v37  ;;  %v666_v61 = vrot.slane %v664_v39, 1  ;;  %v497_v34 = vld [vmem:[#allocation2 + $0x148] sm:$0x3]  ;;  %v500_v37 = vld [vmem:[#allocation2 + $0x160] sm:$0x3] }
  0x48   : > { %v683_v62 = vshll.u32 %v7667_v49, 16  ;;  %v674_v63 = vor.u32 %v673_v52, %v669_v46  ;;  %v678_v0 = vrot.slane %v676_v53, 1  ;;  %v7682_v1 = vpack.c.bf16 %v494_v56, %v494_v56 }
  0x49   : > { %v695_v5 = vshll.u32 %v7673_v54, 16  ;;  %v681_v14 = vshrl.u32 %v7667_v49, 16  ;;  %v688_v23 = vshll.u32 %v7677_v59, 16  ;;  %v7688_v2 = vsel %vm547_vm3, %v662_v60, %v666_v61  ;;  %v501_v61 = vld [vmem:[#allocation2 + $0x168] sm:$0xff] }
  0x4a   : > { %v685_v25 = vrot.slane %v683_v62, 1  ;;  %v693_v26 = vshrl.u32 %v7673_v54, 16  ;;  %v7691_v28 = vpack.c.bf16 %v496_v10, %v495_v6  ;;  %v7694_v31 = vsel %vm547_vm3, %v674_v63, %v678_v0  ;;  %v502_v62 = vld [vmem:[#allocation2 + $0x170] sm:$0xff] }
  0x4b   : > { %v697_v32 = vrot.slane %v695_v5, 1  ;;  %v700_v33 = vshll.u32 %v7682_v1, 16  ;;  %v7697_v36 = vpack.c.bf16 %v499_v19, %v498_v18  ;;  %v690_v44 = vrot.slane %v688_v23, 1 }
  0x4c   : > { %v686_v39 = vor.u32 %v685_v25, %v681_v14  ;;  %v7703_v46 = vpack.c.bf16 %v497_v34, %v497_v34  ;;  %v707_v47 = vshll.u32 %v7691_v28, 16  ;;  %v7706_v56 = vpack.c.bf16 %v500_v37, %v500_v37  ;;  %v503_v25 = vld [vmem:[#allocation2 + $0x178] sm:$0x3] }
  0x4d   : > { %v698_v52 = vor.u32 %v697_v32, %v693_v26  ;;  %v702_v53 = vrot.slane %v700_v33, 1  ;;  %v719_v60 = vshll.u32 %v7697_v36, 16  ;;  %v705_v63 = vshrl.u32 %v7691_v28, 16 }
  0x4e   : > { %6252 = vmatmul.mubr.msk.bf16.gmra.mrb[12].mxu0 %vm345_vm1, %v7664_v43  ;;  %v7711_v0 = vsel %vm547_vm3, %v686_v39, %v690_v44  ;;  %v709_v5 = vrot.slane %v707_v47, 1  ;;  %v712_v6 = vshll.u32 %v7703_v46, 16  ;;  %v7714_v10 = vpack.c.bf16 %v502_v62, %v501_v61 }
  0x4f   : > { %6255 = vmatprep.mubr.msk.bf16.mxu0 %vm345_vm1, %v7670_v50  ;;  %v7717_v18 = vsel %vm547_vm3, %v698_v52, %v702_v53  ;;  %v717_v19 = vshrl.u32 %v7697_v36, 16  ;;  %v721_v14 = vrot.slane %v719_v60, 1  ;;  %v724_v23 = vshll.u32 %v7706_v56, 16 }
  0x50   : > { %v710_v26 = vor.u32 %v709_v5, %v705_v63  ;;  %v714_v32 = vrot.slane %v712_v6, 1  ;;  %v7725_v33 = vpack.c.bf16 %v503_v25, %v503_v25  ;;  %v731_v34 = vshll.u32 %v7714_v10, 16  ;;  %v5511_v6 = vld [vmem:[%s9022_s1 + $0x6] sm:$0x3] }
  0x51   : > { %v722_v37 = vor.u32 %v721_v14, %v717_v19  ;;  %v726_v39 = vrot.slane %v724_v23, 1  ;;  %v729_v47 = vshrl.u32 %v7714_v10, 16  ;;  %v1283_v5 = vsel %vm790_vm0, %v7566_v51, 0  ;;  %v5915_v51 = vld [vmem:[%s7461_s10 + $0x78] sm:$0xff]  }
  0x52   : > { %v7729_v44 = vsel %vm547_vm3, %v710_v26, %v714_v32  ;;  %v733_v52 = vrot.slane %v731_v34, 1  ;;  %v736_v53 = vshll.u32 %v7725_v33, 16  ;;  %v5835_v19 = vunpack.c.l.bf16 %v5915_v51 }
  0x53   : > { %v7734_v60 = vsel %vm547_vm3, %v722_v37, %v726_v39  ;;  %v5836_v14 = vunpack.c.h.bf16 %v5915_v51  ;;  %v1184_v25 = vrot.slane %v7528_v7, 1  ;;  %v1185_v26 = vrot.slane %v7530_v8, 1 }
  0x54   : > { %v734_v61 = vor.u32 %v733_v52, %v729_v47  ;;  %v738_v62 = vrot.slane %v736_v53, 1  ;;  %376 = vst.msk [vmem:[#allocation2 + $0x181] sm:$0xff] %vm345_vm1, %v5835_v19  ;;  %v1188_v34 = vrot.slane %v7535_v13, 1  ;;  %v1187_v37 = vrot.slane %v7533_v12, 1  ;;  %v5528_v13 = vld [vmem:[%s9022_s1 + $0x8] sm:$0x3] }
  0x55   : > { %377 = vst.msk [vmem:[#allocation2 + $0x189] sm:$0xff] %vm345_vm1, %v5836_v14  ;;  %v1186_v32 = vsel %vm1183_vm4, %v1184_v25, %v1185_v26  ;;  %v1190_v39 = vrot.slane %v7545_v20, 1  ;;  %v1191_v47 = vrot.slane %v7550_v30, 1  ;;  %v1484_v8 = vsel %vm790_vm0, %v5511_v6, 0 }
  0x56   : > { %6256 = vmatmul.mubr.msk.bf16.gmra.mrb[16].mxu0 %vm345_vm1, %v7688_v2  ;;  %v7741_v63 = vsel %vm547_vm3, %v734_v61, %v738_v62  ;;  %v1193_v30 = vrot.slane %v7554_v35, 1  ;;  %v1194_v53 = vrot.slane %v7557_v40, 1  ;;  %v1196_v61 = vrot.slane %v7559_v41, 1 }
  0x57   : > { %6259 = vmatprep.mubr.msk.bf16.mxu0 %vm345_vm1, %v7694_v31  ;;  %v7800_v52 = vsel %vm1183_vm4, %v1190_v39, %v1191_v47  ;;  %v1197_v62 = vrot.slane %v7570_v55, 1  ;;  %v1199_v40 = vrot.slane %v7583_v4, 1  ;;  %v1200_v51 = vrot.slane %v7591_v11, 1 }
  0x58   : > { %v1202_v55 = vrot.slane %v7593_v15, 1  ;;  %v1203_v19 = vrot.slane %v7603_v24, 1  ;;  %v1205_v25 = vrot.slane %v7614_v38, 1  ;;  %v1206_v11 = vrot.slane %v7628_v48, 1 }
  0x59   : > { %v7829_v14 = vsel %vm1183_vm4, %v1199_v40, %v1200_v51  ;;  %v1208_v26 = vrot.slane %v7622_v45, 1  ;;  %v1209_v24 = vrot.slane %v7634_v57, 1  ;;  %v1212_v48 = vrot.slane %v7653_v22, 1 }
  0x5a   : > { %v1214_v39 = vrot.slane %v7649_v21, 1  ;;  %v1215_v57 = vrot.slane %v7658_v29, 1  ;;  %v1218_v22 = vrot.slane %v7677_v59, 1  ;;  %v1221_v29 = vrot.slane %v7682_v1, 1 }
  0x5b   : > { %v399_v23 = vld [vmem:[#allocation2 + $0x182] sm:$0x1]  ;;  %v1223_v51 = vrot.slane %v7691_v28, 1  ;;  %v1224_v59 = vrot.slane %v7703_v46, 1  ;;  %v1226_v1 = vrot.slane %v7697_v36, 1  ;;  %v1229_v46 = vrot.slane %v7714_v10, 1 }
  0x5c   : > { %418 = vst.msk [vmem:[#allocation2 + $0x180] sm:$0x1] %vm401_vm2, %v399_v23  ;;  %v7832_v23 = vsel %vm1183_vm4, %v1202_v55, %v1203_v19  ;;  %v436_v40 = vld [vmem:[#allocation2 + $0x18f] sm:$0x1]  ;;  %v1227_v55 = vrot.slane %v7706_v56, 1  ;;  %v1696_v56 = vsel %vm790_vm0, %v5528_v13, 0 }
  0x5d   : > { %454 = vst.msk [vmem:[#allocation2 + $0x191] sm:$0x1] %vm401_vm2, %v436_v40  ;;  %v7886_v19 = vsel %vm1183_vm4, %v1223_v51, %v1224_v59 }
  0x5e   : > { %6260 = vmatmul.mubr.msk.bf16.gmra.mrb[20].mxu0 %vm345_vm1, %v7711_v0 }
  0x5f   : > { %6263 = vmatprep.mubr.msk.bf16.mxu0 %vm345_vm1, %v7717_v18 }
  0x66   : > { %6264 = vmatmul.mubr.msk.bf16.gmra.mrb[24].mxu0 %vm345_vm1, %v7729_v44 }
  0x67   : > { %6267 = vmatprep.mubr.msk.bf16.mxu0 %vm345_vm1, %v7734_v60 }
  0x6e   : > { %6268 = vmatmul.mubr.msk.bf16.gmra.mrb[28].mxu0 %vm345_vm1, %v7741_v63 }
  0x6f   : > { %6273 = vmatprep.mubr.msk.bf16.mxu0 %vm345_vm1, %v7528_v7  ;;  %v7796_v7 = vsel %vm1183_vm4, %v1187_v37, %v1188_v34  ;;  %v7846_v34 = vsel %vm1183_vm4, %v1208_v26, %v1209_v24  ;;  %v1211_v37 = vrot.slane %v7643_v16, 1  ;;  %v5545_v24 = vld [vmem:[%s9022_s1 + $0xa] sm:$0x3] }
  0x71   : > { %v7857_v47 = vsel %vm1183_vm4, %v1211_v37, %v1212_v48  ;;  %v1902_v37 = vsel %vm790_vm0, %v5545_v24, 0  ;;  %v5562_v48 = vld [vmem:[%s9022_s1 + $0xc] sm:$0x3] }
  0x76   : > { %6274 = vmatmul.mubr.msk.bf16.vlgmr.msra.gmra.mrb[0].mxu0 %vm345_vm1, %v7533_v12 }
  0x77   : > { %6306 = vmatpush3.bf16.msra.mxu0 %v1283_v5  ;;  %6277 = vmatprep.mubr.msk.bf16.mxu0 %vm345_vm1, %v7545_v20  ;;  %v7815_v5 = vsel %vm1183_vm4, %v1193_v30, %v1194_v53  ;;  %v1217_v30 = vrot.slane %v7667_v49, 1  ;;  %v1220_v53 = vrot.slane %v7673_v54, 1 }
  0x78   : > { %7364 = vmatprep.subr.msk.bf16.mxu0 %vm790_vm0, %v5511_v6  ;;  %v7818_v6 = vsel %vm1183_vm4, %v1196_v61, %v1197_v62 }
  0x79   : > { %v7871_v61 = vsel %vm1183_vm4, %v1217_v30, %v1218_v22  ;;  %v7874_v62 = vsel %vm1183_vm4, %v1220_v53, %v1221_v29  ;;  %v400_v29 = vld [vmem:[#allocation2 + $0x19a] sm:$0x1] }
  0x7a   : > { %419 = vst.msk [vmem:[#allocation2 + $0x198] sm:$0x1] %vm401_vm2, %v400_v29 }
  0x7e   : > { %6278 = vmatmul.mubr.msk.bf16.gmra.mrb[4].mxu0 %vm345_vm1, %v7554_v35 }
  0x7f   : > { %6281 = vmatprep.mubr.msk.bf16.mxu0 %vm345_vm1, %v7559_v41 }
  0x86   : > { %6282 = vmatmul.mubr.msk.bf16.gmra.mrb[8].mxu0 %vm345_vm1, %v7583_v4 }
  0x87   : > { %6285 = vmatprep.mubr.msk.bf16.mxu0 %vm345_vm1, %v7593_v15 }
  0x8e   : > { %6286 = vmatmul.mubr.msk.bf16.gmra.mrb[12].mxu0 %vm345_vm1, %v7614_v38 }
  0x8f   : > { %6289 = vmatprep.mubr.msk.bf16.mxu0 %vm345_vm1, %v7622_v45 }
  0x96   : > { %6290 = vmatmul.mubr.msk.bf16.gmra.mrb[16].mxu0 %vm345_vm1, %v7643_v16 }
  0x97   : > { %6293 = vmatprep.mubr.msk.bf16.mxu0 %vm345_vm1, %v7649_v21 }
  0x9e   : > { %6294 = vmatmul.mubr.msk.bf16.gmra.mrb[20].mxu0 %vm345_vm1, %v7667_v49 }
  0x9f   : > { %6297 = vmatprep.mubr.msk.bf16.mxu0 %vm345_vm1, %v7673_v54 }
  0xa6   : > { %6298 = vmatmul.mubr.msk.bf16.gmra.mrb[24].mxu0 %vm345_vm1, %v7691_v28 }
  0xa7   : > { %6301 = vmatprep.mubr.msk.bf16.mxu0 %vm345_vm1, %v7697_v36 }
  0xae   : > { %6302 = vmatmul.mubr.msk.bf16.gmra.mrb[28].mxu0 %vm345_vm1, %v7714_v10 }
  0xaf   : > { %6307 = vmatprep.mubr.msk.bf16.mxu0 %vm345_vm1, %v1186_v32  ;;  %v7843_v32 = vsel %vm1183_vm4, %v1205_v25, %v1206_v11  ;;  %v7889_v25 = vsel %vm1183_vm4, %v1226_v1, %v1227_v55  ;;  %v1230_v11 = vrot.slane %v7725_v33, 1  ;;  %v505_v33 = vld [vmem:[#allocation2 + $0x188] sm:$0xff]  ;;  %v2103_v1 = vsel %vm790_vm0, %v5562_v48, 0 }
  0xb0   : > { %v5579_v55 = vld [vmem:[%s9022_s1 + $0xe] sm:$0x3] }
  0xb1   : > { %v7898_v26 = vsel %vm1183_vm4, %v1229_v46, %v1230_v11 }
  0xb6   : > { %6308 = vmatmul.mubr.msk.bf16.vlgmr.msra.gmra.mrb[0].mxu0 %vm345_vm1, %v7796_v7 }
  0xb7   : > { %6340 = vmatpush3.bf16.msra.mxu0 %v1484_v8  ;;  %6311 = vmatprep.mubr.msk.bf16.mxu0 %vm345_vm1, %v7800_v52  ;;  %v7860_v8 = vsel %vm1183_vm4, %v1214_v39, %v1215_v57 }
  0xb8   : > { %7365 = vmatprep.subr.msk.bf16.mxu0 %vm790_vm0, %v5528_v13 }
  0xbe   : > { %6312 = vmatmul.mubr.msk.bf16.gmra.mrb[4].mxu0 %vm345_vm1, %v7815_v5 }
  0xbf   : > { %6315 = vmatprep.mubr.msk.bf16.mxu0 %vm345_vm1, %v7818_v6 }
  0xc6   : > { %6316 = vmatmul.mubr.msk.bf16.gmra.mrb[8].mxu0 %vm345_vm1, %v7829_v14 }
  0xc7   : > { %6319 = vmatprep.mubr.msk.bf16.mxu0 %vm345_vm1, %v7832_v23 }
  0xce   : > { %6320 = vmatmul.mubr.msk.bf16.gmra.mrb[12].mxu0 %vm345_vm1, %v7843_v32 }
  0xcf   : > { %6323 = vmatprep.mubr.msk.bf16.mxu0 %vm345_vm1, %v7846_v34 }
  0xd6   : > { %6324 = vmatmul.mubr.msk.bf16.gmra.mrb[16].mxu0 %vm345_vm1, %v7857_v47 }
  0xd7   : > { %6327 = vmatprep.mubr.msk.bf16.mxu0 %vm345_vm1, %v7860_v8 }
  0xde   : > { %6328 = vmatmul.mubr.msk.bf16.gmra.mrb[20].mxu0 %vm345_vm1, %v7871_v61 }
  0xdf   : > { %6331 = vmatprep.mubr.msk.bf16.mxu0 %vm345_vm1, %v7874_v62 }
  0xe6   : > { %6332 = vmatmul.mubr.msk.bf16.gmra.mrb[24].mxu0 %vm345_vm1, %v7886_v19 }
  0xe7   : > { %6335 = vmatprep.mubr.msk.bf16.mxu0 %vm345_vm1, %v7889_v25 }
  0xee   : > { %6336 = vmatmul.mubr.msk.bf16.gmra.mrb[28].mxu0 %vm345_vm1, %v7898_v26 }
  0xef   : > { %6341 = vmatprep.mubr.msk.bf16.mxu0 %vm345_vm1, %v7533_v12  ;;  %v504_v12 = vld [vmem:[#allocation2 + $0x180] sm:$0xff] }
  0xf0   : > { %v7937_v13 = vpack.c.bf16 %v505_v33, %v504_v12  ;;  %v5596_v12 = vld [vmem:[%s9022_s1 + $0x10] sm:$0x3] }
  0xf2   : > { %v1681_v57 = vshll.u32 %v7937_v13, 16  ;;  %v1679_v30 = vshrl.u32 %v7937_v13, 16  ;;  %v1893_v46 = vrot.slane %v7937_v13, 1 }
  0xf4   : > { %v1683_v22 = vrot.slane %v1681_v57, 1 }
  0xf6   : > { %6342 = vmatmul.mubr.msk.bf16.vlgmr.msra.gmra.mrb[0].mxu0 %vm345_vm1, %v7545_v20  ;;  %v1684_v40 = vor.u32 %v1683_v22, %v1679_v30 }
  0xf7   : > { %6374 = vmatpush3.bf16.msra.mxu0 %v1696_v56  ;;  %6345 = vmatprep.mubr.msk.bf16.mxu0 %vm345_vm1, %v7554_v35 }
  0xf8   : > { %7366 = vmatprep.subr.msk.bf16.mxu0 %vm790_vm0, %v5545_v24  ;;  %v2315_v24 = vsel %vm790_vm0, %v5579_v55, 0 }
  0xfe   : > { %6346 = vmatmul.mubr.msk.bf16.gmra.mrb[4].mxu0 %vm345_vm1, %v7559_v41 }
  0xff   : > { %6349 = vmatprep.mubr.msk.bf16.mxu0 %vm345_vm1, %v7583_v4 }
 0x106   : > { %6350 = vmatmul.mubr.msk.bf16.gmra.mrb[8].mxu0 %vm345_vm1, %v7593_v15 }
 0x107   : > { %6353 = vmatprep.mubr.msk.bf16.mxu0 %vm345_vm1, %v7614_v38 }
 0x10e   : > { %6354 = vmatmul.mubr.msk.bf16.gmra.mrb[12].mxu0 %vm345_vm1, %v7622_v45 }
 0x10f   : > { %6357 = vmatprep.mubr.msk.bf16.mxu0 %vm345_vm1, %v7643_v16 }
 0x116   : > { %6358 = vmatmul.mubr.msk.bf16.gmra.mrb[16].mxu0 %vm345_vm1, %v7649_v21 }
 0x117   : > { %6361 = vmatprep.mubr.msk.bf16.mxu0 %vm345_vm1, %v7667_v49 }
 0x11e   : > { %6362 = vmatmul.mubr.msk.bf16.gmra.mrb[20].mxu0 %vm345_vm1, %v7673_v54 }
 0x11f   : > { %6365 = vmatprep.mubr.msk.bf16.mxu0 %vm345_vm1, %v7691_v28 }
 0x126   : > { %6366 = vmatmul.mubr.msk.bf16.gmra.mrb[24].mxu0 %vm345_vm1, %v7697_v36 }
 0x127   : > { %6369 = vmatprep.mubr.msk.bf16.mxu0 %vm345_vm1, %v7714_v10 }
 0x12e   : > { %6370 = vmatmul.mubr.msk.bf16.gmra.mrb[28].mxu0 %vm345_vm1, %v7937_v13 }
 0x12f   : > { %6375 = vmatprep.mubr.msk.bf16.mxu0 %vm345_vm1, %v7575_v58  ;;  %v506_v58 = vld [vmem:[#allocation2 + $0x190] sm:$0x3] }
 0x130   : > { %v544_v39 = vpack.c.bf16 %v506_v58, %v506_v58 }
 0x132   : > { %v1686_v53 = vshll.u32 %v544_v39, 16  ;;  %v1894_v11 = vrot.slane %v544_v39, 1 }
 0x134   : > { %v1688_v51 = vrot.slane %v1686_v53, 1  ;;  %v8022_v56 = vsel %vm1183_vm4, %v1893_v46, %v1894_v11 }
 0x136   : > { %6376 = vmatmul.mubr.msk.bf16.vlgmr.msra.gmra.mrb[0].mxu0 %vm345_vm1, %v7589_v9  ;;  %v7980_v59 = vsel %vm547_vm3, %v1684_v40, %v1688_v51 }
 0x137   : > { %6408 = vmatpush3.bf16.msra.mxu0 %v1902_v37  ;;  %6379 = vmatprep.mubr.msk.bf16.mxu0 %vm345_vm1, %v7607_v27 }
 0x138   : > { %7367 = vmatprep.subr.msk.bf16.mxu0 %vm790_vm0, %v5562_v48 }
 0x13e   : > { %6380 = vmatmul.mubr.msk.bf16.gmra.mrb[4].mxu0 %vm345_vm1, %v7619_v42 }
 0x13f   : > { %6383 = vmatprep.mubr.msk.bf16.mxu0 %vm345_vm1, %v7640_v3 }
 0x146   : > { %6384 = vmatmul.mubr.msk.bf16.gmra.mrb[8].mxu0 %vm345_vm1, %v7646_v17 }
 0x147   : > { %6387 = vmatprep.mubr.msk.bf16.mxu0 %vm345_vm1, %v7664_v43 }
 0x14e   : > { %6388 = vmatmul.mubr.msk.bf16.gmra.mrb[12].mxu0 %vm345_vm1, %v7670_v50 }
 0x14f   : > { %6391 = vmatprep.mubr.msk.bf16.mxu0 %vm345_vm1, %v7688_v2 }
 0x156   : > { %6392 = vmatmul.mubr.msk.bf16.gmra.mrb[16].mxu0 %vm345_vm1, %v7694_v31 }
 0x157   : > { %6395 = vmatprep.mubr.msk.bf16.mxu0 %vm345_vm1, %v7711_v0 }
 0x15e   : > { %6396 = vmatmul.mubr.msk.bf16.gmra.mrb[20].mxu0 %vm345_vm1, %v7717_v18 }
 0x15f   : > { %6399 = vmatprep.mubr.msk.bf16.mxu0 %vm345_vm1, %v7729_v44 }
 0x166   : > { %6400 = vmatmul.mubr.msk.bf16.gmra.mrb[24].mxu0 %vm345_vm1, %v7734_v60 }
 0x167   : > { %6403 = vmatprep.mubr.msk.bf16.mxu0 %vm345_vm1, %v7741_v63 }
 0x16e   : > { %6404 = vmatmul.mubr.msk.bf16.gmra.mrb[28].mxu0 %vm345_vm1, %v7980_v59 }
 0x16f   : > { %6409 = vmatprep.mubr.msk.bf16.mxu0 %vm345_vm1, %v7796_v7  ;;  %v437_v7 = vld [vmem:[#allocation2 + $0x1a7] sm:$0x1] }
 0x170   : > { %455 = vst.msk [vmem:[#allocation2 + $0x1a9] sm:$0x1] %vm401_vm2, %v437_v7 }
 0x176   : > { %6410 = vmatmul.mubr.msk.bf16.vlgmr.msra.gmra.mrb[0].mxu0 %vm345_vm1, %v7800_v52 }
 0x177   : > { %6442 = vmatpush3.bf16.msra.mxu0 %v2103_v1  ;;  %6413 = vmatprep.mubr.msk.bf16.mxu0 %vm345_vm1, %v7815_v5 }
 0x178   : > { %7368 = vmatprep.subr.msk.bf16.mxu0 %vm790_vm0, %v5579_v55 }
 0x17e   : > { %6414 = vmatmul.mubr.msk.bf16.gmra.mrb[4].mxu0 %vm345_vm1, %v7818_v6 }
 0x17f   : > { %6417 = vmatprep.mubr.msk.bf16.mxu0 %vm345_vm1, %v7829_v14 }
 0x186   : > { %6418 = vmatmul.mubr.msk.bf16.gmra.mrb[8].mxu0 %vm345_vm1, %v7832_v23 }
 0x187   : > { %6421 = vmatprep.mubr.msk.bf16.mxu0 %vm345_vm1, %v7843_v32 }
 0x18e   : > { %6422 = vmatmul.mubr.msk.bf16.gmra.mrb[12].mxu0 %vm345_vm1, %v7846_v34 }
 0x18f   : > { %6425 = vmatprep.mubr.msk.bf16.mxu0 %vm345_vm1, %v7857_v47 }
 0x196   : > { %6426 = vmatmul.mubr.msk.bf16.gmra.mrb[16].mxu0 %vm345_vm1, %v7860_v8 }
 0x197   : > { %6429 = vmatprep.mubr.msk.bf16.mxu0 %vm345_vm1, %v7871_v61 }
 0x19e   : > { %6430 = vmatmul.mubr.msk.bf16.gmra.mrb[20].mxu0 %vm345_vm1, %v7874_v62 }
 0x19f   : > { %6433 = vmatprep.mubr.msk.bf16.mxu0 %vm345_vm1, %v7886_v19 }
 0x1a6   : > { %6434 = vmatmul.mubr.msk.bf16.gmra.mrb[24].mxu0 %vm345_vm1, %v7889_v25 }
 0x1a7   : > { %6437 = vmatprep.mubr.msk.bf16.mxu0 %vm345_vm1, %v7898_v26 }
 0x1ae   : > { %6438 = vmatmul.mubr.msk.bf16.gmra.mrb[28].mxu0 %vm345_vm1, %v8022_v56 }
 0x1af   : > { %6443 = vmatprep.mubr.msk.bf16.mxu0 %vm345_vm1, %v7545_v20  ;;  %v507_v20 = vld [vmem:[#allocation2 + $0x198] sm:$0xff] }
 0x1b6   : > { %6444 = vmatmul.mubr.msk.bf16.vlgmr.msra.gmra.mrb[0].mxu0 %vm345_vm1, %v7554_v35  ;;  %v508_v35 = vld [vmem:[#allocation2 + $0x1a0] sm:$0xff] }
 0x1b7   : > { %6476 = vmatpush3.bf16.msra.mxu0 %v2315_v24  ;;  %6447 = vmatprep.mubr.msk.bf16.mxu0 %vm345_vm1, %v7559_v41  ;;  %v527_v41 = vpack.c.bf16 %v508_v35, %v507_v20 }
 0x1b8   : > { %7369 = vmatprep.subr.msk.bf16.mxu0 %vm790_vm0, %v5596_v12 }
 0x1be   : > { %6448 = vmatmul.mubr.msk.bf16.gmra.mrb[4].mxu0 %vm345_vm1, %v7583_v4  ;;  %v2521_v4 = vsel %vm790_vm0, %v5596_v12, 0 }
 0x1bf   : > { %6451 = vmatprep.mubr.msk.bf16.mxu0 %vm345_vm1, %v7593_v15 }
 0x1c6   : > { %6452 = vmatmul.mubr.msk.bf16.gmra.mrb[8].mxu0 %vm345_vm1, %v7614_v38  ;;  %v2298_v38 = vshrl.u32 %v527_v41, 16 }
 0x1c7   : > { %6455 = vmatprep.mubr.msk.bf16.mxu0 %vm345_vm1, %v7622_v45 }
 0x1ce   : > { %6456 = vmatmul.mubr.msk.bf16.gmra.mrb[12].mxu0 %vm345_vm1, %v7643_v16 }
 0x1cf   : > { %6459 = vmatprep.mubr.msk.bf16.mxu0 %vm345_vm1, %v7649_v21  ;;  %v2512_v21 = vrot.slane %v527_v41, 1 }
 0x1d6   : > { %6460 = vmatmul.mubr.msk.bf16.gmra.mrb[16].mxu0 %vm345_vm1, %v7667_v49 }
 0x1d7   : > { %6463 = vmatprep.mubr.msk.bf16.mxu0 %vm345_vm1, %v7673_v54 }
 0x1de   : > { %6464 = vmatmul.mubr.msk.bf16.gmra.mrb[20].mxu0 %vm345_vm1, %v7691_v28  ;;  %v8142_v28 = vld [vmem:[%s9024_s3] ss:$0 sm:$0xff] }
 0x1df   : > { %6467 = vmatprep.mubr.msk.bf16.mxu0 %vm345_vm1, %v7697_v36  ;;  %v8147_v36 = vld [vmem:[%s9025_s4] ss:$0 sm:$0xff] }
 0x1e6   : > { %6468 = vmatmul.mubr.msk.bf16.gmra.mrb[24].mxu0 %vm345_vm1, %v7714_v10 }
 0x1e7   : > { %6471 = vmatprep.mubr.msk.bf16.mxu0 %vm345_vm1, %v7937_v13 }
 0x1ee   : > { %6472 = vmatmul.mubr.msk.bf16.gmra.mrb[28].mxu0 %vm345_vm1, %v527_v41 }
 0x1ef   : > { %6477 = vmatprep.mubr.msk.bf16.mxu0 %vm345_vm1, %v7589_v9  ;;  %v509_v9 = vld [vmem:[#allocation2 + $0x1a8] sm:$0x3] }
 0x1f0   : > { %v545_v15 = vpack.c.bf16 %v509_v9, %v509_v9 }
 0x1f2   : > { %v2305_v45 = vshll.u32 %v545_v15, 16 }
 0x1f4   : > { %v2307_v16 = vrot.slane %v2305_v45, 1 }
 0x1f6   : > { %6478 = vmatmul.mubr.msk.bf16.vlgmr.msra.gmra.mrb[0].mxu0 %vm345_vm1, %v7607_v27  ;;  %v2300_v27 = vshll.u32 %v527_v41, 16 }
 0x1f7   : > { %6510 = vmatpush3.bf16.msra.mxu0 %v2521_v4  ;;  %6481 = vmatprep.mubr.msk.bf16.mxu0 %vm345_vm1, %v7619_v42 }
 0x1f8   : > { %v2302_v42 = vrot.slane %v2300_v27, 1 }
 0x1fe   : > { %6482 = vmatmul.mubr.msk.bf16.gmra.mrb[4].mxu0 %vm345_vm1, %v7640_v3  ;;  %v2303_v3 = vor.u32 %v2302_v42, %v2298_v38 }
 0x1ff   : > { %6485 = vmatprep.mubr.msk.bf16.mxu0 %vm345_vm1, %v7646_v17 }
 0x200   : > { %v2308_v17 = vsel %vm547_vm3, %v2303_v3, %v2307_v16 }
 0x206   : > { %6486 = vmatmul.mubr.msk.bf16.gmra.mrb[8].mxu0 %vm345_vm1, %v7664_v43  ;;  %v2513_v43 = vrot.slane %v545_v15, 1 }
 0x207   : > { %6489 = vmatprep.mubr.msk.bf16.mxu0 %vm345_vm1, %v7670_v50  ;;  %v5615_v50 = vld [vmem:[%s9023_s2 + $0x2] sm:$0x3] }
 0x208   : > { %v2514_v49 = vsel %vm1183_vm4, %v2512_v21, %v2513_v43  ;;  %7370 = vmatprep.subr.msk.bf16.mxu1 %vm790_vm0, %v5615_v50  ;;  %v3268_v54 = vsel %vm790_vm0, %v5615_v50, 0 }
 0x209   : > { %6544 = vmatpush3.bf16.msra.mxu1 %v3268_v54 }
 0x20e   : > { %6490 = vmatmul.mubr.msk.bf16.gmra.mrb[12].mxu0 %vm345_vm1, %v7688_v2  ;;  %v8135_v2 = vld [vmem:[%s9023_s2] sm:$0x3] }
 0x20f   : > { %6493 = vmatprep.mubr.msk.bf16.mxu0 %vm345_vm1, %v7694_v31  ;;  %7371 = vmatprep.subr.msk.bf16.mxu1 %vm790_vm0, %v8135_v2 }
 0x216   : > { %6494 = vmatmul.mubr.msk.bf16.gmra.mrb[16].mxu0 %vm345_vm1, %v7711_v0 }
 0x217   : > { %6497 = vmatprep.mubr.msk.bf16.mxu0 %vm345_vm1, %v7717_v18 }
 0x21e   : > { %6498 = vmatmul.mubr.msk.bf16.gmra.mrb[20].mxu0 %vm345_vm1, %v7729_v44 }
 0x21f   : > { %6501 = vmatprep.mubr.msk.bf16.mxu0 %vm345_vm1, %v7734_v60 }
 0x226   : > { %6502 = vmatmul.mubr.msk.bf16.gmra.mrb[24].mxu0 %vm345_vm1, %v7741_v63 }
 0x227   : > { %6505 = vmatprep.mubr.msk.bf16.mxu0 %vm345_vm1, %v7980_v59 }
 0x22e   : > { %6506 = vmatmul.mubr.msk.bf16.gmra.mrb[28].mxu0 %vm345_vm1, %v2308_v17 }
 0x22f   : > { %6511 = vmatprep.mubr.msk.bf16.mxu0 %vm345_vm1, %v7800_v52 }
 0x236   : > { %6512 = vmatmul.mubr.msk.bf16.vlgmr.msra.gmra.mrb[0].mxu0 %vm345_vm1, %v7815_v5 }
 0x237   : > { %6515 = vmatprep.mubr.msk.bf16.mxu0 %vm345_vm1, %v7818_v6 }
 0x23e   : > { %6516 = vmatmul.mubr.msk.bf16.gmra.mrb[4].mxu0 %vm345_vm1, %v7829_v14 }
 0x23f   : > { %6519 = vmatprep.mubr.msk.bf16.mxu0 %vm345_vm1, %v7832_v23 }
 0x246   : > { %6520 = vmatmul.mubr.msk.bf16.gmra.mrb[8].mxu0 %vm345_vm1, %v7843_v32 }
 0x247   : > { %6523 = vmatprep.mubr.msk.bf16.mxu0 %vm345_vm1, %v7846_v34 }
 0x24e   : > { %6524 = vmatmul.mubr.msk.bf16.gmra.mrb[12].mxu0 %vm345_vm1, %v7857_v47 }
 0x24f   : > { %6527 = vmatprep.mubr.msk.bf16.mxu0 %vm345_vm1, %v7860_v8 }
 0x256   : > { %6528 = vmatmul.mubr.msk.bf16.gmra.mrb[16].mxu0 %vm345_vm1, %v7871_v61 }
 0x257   : > { %6531 = vmatprep.mubr.msk.bf16.mxu0 %vm345_vm1, %v7874_v62 }
 0x25e   : > { %6532 = vmatmul.mubr.msk.bf16.gmra.mrb[20].mxu0 %vm345_vm1, %v7886_v19 }
 0x25f   : > { %6535 = vmatprep.mubr.msk.bf16.mxu0 %vm345_vm1, %v7889_v25 }
 0x266   : > { %6536 = vmatmul.mubr.msk.bf16.gmra.mrb[24].mxu0 %vm345_vm1, %v7898_v26 }
 0x267   : > { %6539 = vmatprep.mubr.msk.bf16.mxu0 %vm345_vm1, %v8022_v56 }
 0x26e   : > { %6540 = vmatmul.mubr.msk.bf16.gmra.mrb[28].mxu0 %vm345_vm1, %v2514_v49 }
 0x309   : > { %v6513_v31 = vpop.f32.mrb[0].mxu0 }
 0x30a   : > { %v2725_v0 = vmul.f32 %v6513_v31, %v8142_v28  ;;  %v2557_v10 = vpop.f32.mrb[1].mxu0 }
 0x30b   : > { %v2723_v18 = vmul.f32 %v8142_v28, %v2557_v10  ;;  %v6514_v44 = vpop.f32.mrb[2].mxu0 }
 0x30c   : > { %v2764_v60 = vadd.f32 %v8147_v36, %v2725_v0  ;;  %v2726_v63 = vmul.f32 %v6514_v44, %v8142_v28  ;;  %v2560_v52 = vpop.f32.mrb[3].mxu0 }
 0x30d   : > { %v2762_v5 = vadd.f32 %v8147_v36, %v2723_v18  ;;  %v2724_v6 = vmul.f32 %v8142_v28, %v2560_v52 }
 0x30e   : > { %v2796_v14 = vmax.f32 %v2764_v60, 0.0  ;;  %v2765_v23 = vadd.f32 %v8147_v36, %v2726_v63 }
 0x30f   : > { %v2794_v32 = vmax.f32 %v2762_v5, 0.0  ;;  %v2763_v34 = vadd.f32 %v8147_v36, %v2724_v6 }
 0x310   : > { %2828 = vst.msk [vmem:[#allocation2 + $0x31] sm:$0xff] %vm345_vm1, %v2796_v14  ;;  %2858 = vst.msk [vmem:[#allocation2 + $0x1] sm:$0xff] %vm345_vm1, %v2796_v14  ;;  %v2797_v47 = vmax.f32 %v2765_v23, 0.0 }
 0x311   : > { %2826 = vst.msk [vmem:[#allocation2 + $0x19] sm:$0xff] %vm345_vm1, %v2794_v32  ;;  %v2795_v8 = vmax.f32 %v2763_v34, 0.0  ;;  %v6517_v61 = vpop.f32.mrb[4].mxu0 }
 0x312   : > { %2829 = vst.msk [vmem:[#allocation2 + $0x39] sm:$0xff] %vm345_vm1, %v2797_v47  ;;  %2859 = vst.msk [vmem:[#allocation2 + $0x9] sm:$0xff] %vm345_vm1, %v2797_v47  ;;  %v2729_v62 = vmul.f32 %v6517_v61, %v8142_v28  ;;  %v2573_v19 = vpop.f32.mrb[5].mxu0 }
 0x313   : > { %2827 = vst.msk [vmem:[#allocation2 + $0x21] sm:$0xff] %vm345_vm1, %v2795_v8  ;;  %v2727_v25 = vmul.f32 %v8142_v28, %v2573_v19  ;;  %v6518_v26 = vpop.f32.mrb[6].mxu0 }
 0x314   : > { %v2768_v33 = vadd.f32 %v8147_v36, %v2729_v62  ;;  %v2730_v13 = vmul.f32 %v6518_v26, %v8142_v28  ;;  %v2576_v37 = vpop.f32.mrb[7].mxu0 }
 0x315   : > { %v2766_v48 = vadd.f32 %v8147_v36, %v2727_v25  ;;  %v2728_v58 = vmul.f32 %v8142_v28, %v2576_v37 }
 0x316   : > { %v2800_v39 = vmax.f32 %v2768_v33, 0.0  ;;  %v2769_v57 = vadd.f32 %v8147_v36, %v2730_v13 }
 0x317   : > { %v2864_v30 = vld [vmem:[#allocation2 + $0x32] sm:$0x1]  ;;  %v2798_v22 = vmax.f32 %v2766_v48, 0.0  ;;  %v2767_v53 = vadd.f32 %v8147_v36, %v2728_v58  ;;  %v2862_v29 = vld [vmem:[#allocation2 + $0x2] sm:$0x1] }
 0x318   : > { %2882 = vst.msk [vmem:[#allocation2 + $0x30] sm:$0x1] %vm401_vm2, %v2864_v30  ;;  %v2863_v40 = vld [vmem:[#allocation2 + $0x1a] sm:$0x1]  ;;  %v2801_v51 = vmax.f32 %v2769_v57, 0.0 }
 0x319   : > { %2832 = vst.msk [vmem:[#allocation2 + $0x61] sm:$0xff] %vm345_vm1, %v2800_v39  ;;  %2830 = vst.msk [vmem:[#allocation2 + $0x49] sm:$0xff] %vm345_vm1, %v2798_v22  ;;  %v2799_v59 = vmax.f32 %v2767_v53, 0.0  ;;  %v6521_v1 = vpop.f32.mrb[8].mxu0  ;;  %v2898_v55 = vld [vmem:[#allocation2 + $0xf] sm:$0x1] }
 0x31a   : > { %2880 = vst.msk [vmem:[#allocation2] sm:$0x1] %vm401_vm2, %v2862_v29  ;;  %2881 = vst.msk [vmem:[#allocation2 + $0x18] sm:$0x1] %vm401_vm2, %v2863_v40  ;;  %v2733_v7 = vmul.f32 %v6521_v1, %v8142_v28  ;;  %v2589_v46 = vpop.f32.mrb[9].mxu0  ;;  %v2935_v38 = vld [vmem:[#allocation2 + $0x8] sm:$0xff] }
 0x31b   : > { %2833 = vst.msk [vmem:[#allocation2 + $0x69] sm:$0xff] %vm345_vm1, %v2801_v51  ;;  %v2899_v11 = vld [vmem:[#allocation2 + $0x27] sm:$0x1]  ;;  %v2900_v56 = vld [vmem:[#allocation2 + $0x3f] sm:$0x1]  ;;  %2831 = vst.msk [vmem:[#allocation2 + $0x51] sm:$0xff] %vm345_vm1, %v2799_v59  ;;  %v2731_v24 = vmul.f32 %v8142_v28, %v2589_v46 }
 0x31c   : > { %2916 = vst.msk [vmem:[#allocation2 + $0x11] sm:$0x1] %vm401_vm2, %v2898_v55  ;;  %v6522_v12 = vpop.f32.mrb[10].mxu0  ;;  %2917 = vst.msk [vmem:[#allocation2 + $0x29] sm:$0x1] %vm401_vm2, %v2899_v11  ;;  %v2772_v20 = vadd.f32 %v8147_v36, %v2733_v7  ;;  %v2941_v42 = vld [vmem:[#allocation2 + $0x38] sm:$0xff] }
 0x31d   : > { %2918 = vst.msk [vmem:[#allocation2 + $0x41] sm:$0x1] %vm401_vm2, %v2900_v56  ;;  %v2734_v35 = vmul.f32 %v6522_v12, %v8142_v28  ;;  %v2592_v41 = vpop.f32.mrb[11].mxu0  ;;  %v2770_v4 = vadd.f32 %v8147_v36, %v2731_v24  ;;  %v2938_v31 = vld [vmem:[#allocation2 + $0x20] sm:$0xff] }
 0x31e   : > { %v2732_v9 = vmul.f32 %v8142_v28, %v2592_v41  ;;  %v2804_v15 = vmax.f32 %v2772_v20, 0.0  ;;  %v8224_v11 = vld [vmem:[%s9023_s2 + $0x4] sm:$0x3]  ;;  %v3464_v20 = vsel %vm790_vm0, %v8135_v2, 0 }
 0x31f   : > { %v2773_v27 = vadd.f32 %v8147_v36, %v2734_v35  ;;  %v2802_v3 = vmax.f32 %v2770_v4, 0.0  ;;  %v2940_v21 = vld [vmem:[#allocation2 + $0x30] sm:$0xff] }
 0x320   : > { %v2866_v45 = vld [vmem:[#allocation2 + $0x62] sm:$0x1]  ;;  %v2771_v16 = vadd.f32 %v8147_v36, %v2732_v9  ;;  %v2865_v43 = vld [vmem:[#allocation2 + $0x4a] sm:$0x1]  ;;  %2836 = vst.msk [vmem:[#allocation2 + $0x91] sm:$0xff] %vm345_vm1, %v2804_v15  ;;  %v8197_v60 = vpack.c.bf16 %v2941_v42, %v2940_v21 }
 0x321   : > { %v2934_v17 = vld [vmem:[#allocation2] sm:$0xff]  ;;  %2884 = vst.msk [vmem:[#allocation2 + $0x60] sm:$0x1] %vm401_vm2, %v2866_v45  ;;  %v2805_v49 = vmax.f32 %v2773_v27, 0.0  ;;  %v2937_v54 = vld [vmem:[#allocation2 + $0x18] sm:$0xff]  ;;  %v6525_v10 = vpop.f32.mrb[12].mxu0 }
 0x322   : > { %v8191_v50 = vpack.c.bf16 %v2935_v38, %v2934_v17  ;;  %2883 = vst.msk [vmem:[#allocation2 + $0x48] sm:$0x1] %vm401_vm2, %v2865_v43  ;;  %v2803_v0 = vmax.f32 %v2771_v16, 0.0  ;;  %v8195_v44 = vpack.c.bf16 %v2938_v31, %v2937_v54  ;;  %v2902_v63 = vld [vmem:[#allocation2 + $0x6f] sm:$0x1]  ;;  %v2737_v52 = vmul.f32 %v6525_v10, %v8142_v28  ;;  %v2605_v5 = vpop.f32.mrb[13].mxu0 }
 0x323   : > { %2834 = vst.msk [vmem:[#allocation2 + $0x79] sm:$0xff] %vm345_vm1, %v2802_v3  ;;  %v2936_v18 = vld [vmem:[#allocation2 + $0x10] sm:$0x3]  ;;  %2837 = vst.msk [vmem:[#allocation2 + $0x99] sm:$0xff] %vm345_vm1, %v2805_v49  ;;  %v2939_v32 = vld [vmem:[#allocation2 + $0x28] sm:$0x3]  ;;  %v2735_v34 = vmul.f32 %v8142_v28, %v2605_v5 }
 0x324   : > { %v8201_v6 = vpack.c.bf16 %v2936_v18, %v2936_v18  ;;  %v3026_v14 = vshrl.u32 %v8191_v50, 16  ;;  %v3028_v23 = vshll.u32 %v8191_v50, 16  ;;  %2920 = vst.msk [vmem:[#allocation2 + $0x71] sm:$0x1] %vm401_vm2, %v2902_v63  ;;  %v6526_v47 = vpop.f32.mrb[14].mxu0  ;;  %v8208_v8 = vpack.c.bf16 %v2939_v32, %v2939_v32  ;;  %v2944_v4 = vld [vmem:[#allocation2 + $0x50] sm:$0xff] }
 0x325   : > { %2835 = vst.msk [vmem:[#allocation2 + $0x81] sm:$0xff] %vm345_vm1, %v2803_v0  ;;  %v3038_v61 = vshrl.u32 %v8195_v44, 16  ;;  %v3040_v62 = vshll.u32 %v8195_v44, 16  ;;  %v2776_v19 = vadd.f32 %v8147_v36, %v2737_v52  ;;  %v2738_v25 = vmul.f32 %v6526_v47, %v8142_v28  ;;  %v2608_v26 = vpop.f32.mrb[15].mxu0  ;;  %v2901_v37 = vld [vmem:[#allocation2 + $0x57] sm:$0x1] }
 0x326   : > { %v3030_v33 = vrot.slane %v3028_v23, 1  ;;  %v3033_v13 = vshll.u32 %v8201_v6, 16  ;;  %v2774_v48 = vadd.f32 %v8147_v36, %v2735_v34  ;;  %v2736_v58 = vmul.f32 %v8142_v28, %v2608_v26  ;;  %v2942_v30 = vld [vmem:[#allocation2 + $0x40] sm:$0x3]  ;;  %2919 = vst.msk [vmem:[#allocation2 + $0x59] sm:$0x1] %vm401_vm2, %v2901_v37 }
 0x327   : > { %v3042_v39 = vrot.slane %v3040_v62, 1  ;;  %v3045_v57 = vshll.u32 %v8208_v8, 16  ;;  %v2808_v22 = vmax.f32 %v2776_v19, 0.0  ;;  %v2777_v53 = vadd.f32 %v8147_v36, %v2738_v25  ;;  %v2868_v51 = vld [vmem:[#allocation2 + $0x92] sm:$0x1]  ;;  %v2947_v42 = vld [vmem:[#allocation2 + $0x68] sm:$0xff] }
 0x328   : > { %v3031_v29 = vor.u32 %v3030_v33, %v3026_v14  ;;  %v3035_v40 = vrot.slane %v3033_v13, 1  ;;  %v2806_v59 = vmax.f32 %v2774_v48, 0.0  ;;  %v2775_v1 = vadd.f32 %v8147_v36, %v2736_v58  ;;  %v2946_v46 = vld [vmem:[#allocation2 + $0x60] sm:$0xff]  ;;  %2886 = vst.msk [vmem:[#allocation2 + $0x90] sm:$0x1] %vm401_vm2, %v2868_v51 }
 0x329   : > { %v3043_v55 = vor.u32 %v3042_v39, %v3038_v61  ;;  %v3047_v7 = vrot.slane %v3045_v57, 1  ;;  %2840 = vst.msk [vmem:[#allocation2 + $0xc1] sm:$0xff] %vm345_vm1, %v2808_v22  ;;  %v2809_v24 = vmax.f32 %v2777_v53, 0.0  ;;  %v8231_v35 = vpack.c.bf16 %v2942_v30, %v2942_v30  ;;  %v2943_v41 = vld [vmem:[#allocation2 + $0x48] sm:$0xff]  ;;  %v6529_v15 = vpop.f32.mrb[16].mxu0 }
 0x32a   : > { %v2867_v56 = vld [vmem:[#allocation2 + $0x7a] sm:$0x1]  ;;  %v3036_v12 = vsel %vm547_vm3, %v3031_v29, %v3035_v40  ;;  %2838 = vst.msk [vmem:[#allocation2 + $0xa9] sm:$0xff] %vm345_vm1, %v2806_v59  ;;  %v2807_v9 = vmax.f32 %v2775_v1, 0.0  ;;  %v3052_v38 = vshll.u32 %v8197_v60, 16  ;;  %v2741_v2 = vmul.f32 %v6529_v15, %v8142_v28  ;;  %v2621_v3 = vpop.f32.mrb[17].mxu0 }
 0x32b   : > { %2885 = vst.msk [vmem:[#allocation2 + $0x78] sm:$0x1] %vm401_vm2, %v2867_v56  ;;  %6545 = vmatprep.mubr.msk.bf16.mxu1 %vm345_vm1, %v3036_v12  ;;  %v8237_v27 = vsel %vm547_vm3, %v3043_v55, %v3047_v7  ;;  %v2948_v45 = vld [vmem:[#allocation2 + $0x70] sm:$0x3]  ;;  %v3057_v16 = vshll.u32 %v8231_v35, 16  ;;  %v8245_v17 = vpack.c.bf16 %v2944_v4, %v2943_v41  ;;  %v8247_v21 = vpack.c.bf16 %v2947_v42, %v2946_v46  ;;  %v6530_v54 = vpop.f32.mrb[18].mxu0 }
 0x32c   : > { %2841 = vst.msk [vmem:[#allocation2 + $0xc9] sm:$0xff] %vm345_vm1, %v2809_v24  ;;  %6546 = vmatmul.mubr.msk.bf16.vlgmr.msra.gmra.mrb[0].mxu1 %vm345_vm1, %v8237_v27  ;;  %v2903_v43 = vld [vmem:[#allocation2 + $0x87] sm:$0x1]  ;;  %2839 = vst.msk [vmem:[#allocation2 + $0xb1] sm:$0xff] %vm345_vm1, %v2807_v9  ;;  %v2739_v49 = vmul.f32 %v8142_v28, %v2621_v3  ;;  %v3050_v31 = vshrl.u32 %v8197_v60, 16  ;;  %v3054_v0 = vrot.slane %v3052_v38, 1  ;;  %v8252_v10 = vpack.c.bf16 %v2948_v45, %v2948_v45 }
 0x32d   : > { %6578 = vmatpush3.bf16.msra.mxu1 %v3464_v20  ;;  %2921 = vst.msk [vmem:[#allocation2 + $0x89] sm:$0x1] %vm401_vm2, %v2903_v43  ;;  %v2904_v18 = vld [vmem:[#allocation2 + $0x9f] sm:$0x1]  ;;  %v2780_v63 = vadd.f32 %v8147_v36, %v2741_v2  ;;  %v2742_v52 = vmul.f32 %v6530_v54, %v8142_v28  ;;  %v3059_v5 = vrot.slane %v3057_v16, 1  ;;  %v2624_v14 = vpop.f32.mrb[19].mxu0 }
 0x32e   : > { %v2945_v23 = vld [vmem:[#allocation2 + $0x58] sm:$0x3]  ;;  %v3062_v32 = vshrl.u32 %v8245_v17, 16  ;;  %2922 = vst.msk [vmem:[#allocation2 + $0xa1] sm:$0x1] %vm401_vm2, %v2904_v18  ;;  %7372 = vmatprep.subr.msk.bf16.mxu1 %vm790_vm0, %v8224_v11  ;;  %v2778_v34 = vadd.f32 %v8147_v36, %v2739_v49  ;;  %v3055_v47 = vor.u32 %v3054_v0, %v3050_v31  ;;  %v2740_v61 = vmul.f32 %v8142_v28, %v2624_v14  ;;  %v2950_v9 = vld [vmem:[#allocation2 + $0x80] sm:$0xff] }
 0x32f   : > { %v8263_v62 = vpack.c.bf16 %v2945_v23, %v2945_v23  ;;  %v2812_v19 = vmax.f32 %v2780_v63, 0.0  ;;  %v2781_v25 = vadd.f32 %v8147_v36, %v2742_v52  ;;  %v3064_v26 = vshll.u32 %v8245_v17, 16  ;;  %v2952_v57 = vld [vmem:[#allocation2 + $0x90] sm:$0xff]  ;;  %v2953_v30 = vld [vmem:[#allocation2 + $0x98] sm:$0xff] }
 0x330   : > { %v3074_v33 = vshrl.u32 %v8247_v21, 16  ;;  %v2870_v13 = vld [vmem:[#allocation2 + $0xc2] sm:$0x1]  ;;  %v2810_v37 = vmax.f32 %v2778_v34, 0.0  ;;  %v8269_v48 = vsel %vm547_vm3, %v3055_v47, %v3059_v5  ;;  %v2779_v58 = vadd.f32 %v8147_v36, %v2740_v61 }
 0x331   : > { %v3069_v39 = vshll.u32 %v8263_v62, 16  ;;  %2888 = vst.msk [vmem:[#allocation2 + $0xc0] sm:$0x1] %vm401_vm2, %v2870_v13  ;;  %v2869_v22 = vld [vmem:[#allocation2 + $0xaa] sm:$0x1]  ;;  %v2813_v53 = vmax.f32 %v2781_v25, 0.0  ;;  %6549 = vmatprep.mubr.msk.bf16.mxu1 %vm345_vm1, %v8269_v48  ;;  %v8281_v46 = vpack.c.bf16 %v2953_v30, %v2952_v57 }
 0x332   : > { %2844 = vst.msk [vmem:[#allocation2 + $0xf1] sm:$0xff] %vm345_vm1, %v2812_v19  ;;  %v3066_v29 = vrot.slane %v3064_v26, 1  ;;  %v3076_v40 = vshll.u32 %v8247_v21, 16  ;;  %v3081_v51 = vshll.u32 %v8252_v10, 16  ;;  %2842 = vst.msk [vmem:[#allocation2 + $0xd9] sm:$0xff] %vm345_vm1, %v2810_v37  ;;  %v2811_v59 = vmax.f32 %v2779_v58, 0.0 }
 0x333   : > { %2887 = vst.msk [vmem:[#allocation2 + $0xa8] sm:$0x1] %vm401_vm2, %v2869_v22  ;;  %v6533_v1 = vpop.f32.mrb[20].mxu0  ;;  %v3071_v55 = vrot.slane %v3069_v39, 1  ;;  %v2949_v7 = vld [vmem:[#allocation2 + $0x78] sm:$0xff]  ;;  %v3098_v3 = vshrl.u32 %v8281_v46, 16 }
 0x334   : > { %v2906_v56 = vld [vmem:[#allocation2 + $0xcf] sm:$0x1]  ;;  %2845 = vst.msk [vmem:[#allocation2 + $0xf9] sm:$0xff] %vm345_vm1, %v2813_v53  ;;  %v2745_v24 = vmul.f32 %v6533_v1, %v8142_v28  ;;  %v2637_v12 = vpop.f32.mrb[21].mxu0  ;;  %v3067_v20 = vor.u32 %v3066_v29, %v3062_v32  ;;  %v3078_v41 = vrot.slane %v3076_v40, 1  ;;  %v3083_v4 = vrot.slane %v3081_v51, 1 }
 0x335   : > { %v2951_v15 = vld [vmem:[#allocation2 + $0x88] sm:$0x3]  ;;  %2924 = vst.msk [vmem:[#allocation2 + $0xd1] sm:$0x1] %vm401_vm2, %v2906_v56  ;;  %v2743_v38 = vmul.f32 %v8142_v28, %v2637_v12  ;;  %v6534_v42 = vpop.f32.mrb[22].mxu0  ;;  %v8288_v45 = vpack.c.bf16 %v2950_v9, %v2949_v7  ;;  %v2956_v61 = vld [vmem:[#allocation2 + $0xb0] sm:$0xff] }
 0x336   : > { %2843 = vst.msk [vmem:[#allocation2 + $0xe1] sm:$0xff] %vm345_vm1, %v2811_v59  ;;  %v8290_v2 = vpack.c.bf16 %v2951_v15, %v2951_v15  ;;  %v2905_v16 = vld [vmem:[#allocation2 + $0xb7] sm:$0x1]  ;;  %v2784_v43 = vadd.f32 %v8147_v36, %v2745_v24  ;;  %v8295_v49 = vsel %vm547_vm3, %v3067_v20, %v3071_v55  ;;  %v2746_v54 = vmul.f32 %v6534_v42, %v8142_v28  ;;  %v2640_v0 = vpop.f32.mrb[23].mxu0  ;;  %v2954_v18 = vld [vmem:[#allocation2 + $0xa0] sm:$0x3] }
 0x337   : > { %v3079_v31 = vor.u32 %v3078_v41, %v3074_v33  ;;  %2923 = vst.msk [vmem:[#allocation2 + $0xb9] sm:$0x1] %vm401_vm2, %v2905_v16  ;;  %v2782_v63 = vadd.f32 %v8147_v36, %v2743_v38  ;;  %6550 = vmatmul.mubr.msk.bf16.gmra.mrb[4].mxu1 %vm345_vm1, %v8295_v49  ;;  %v2744_v52 = vmul.f32 %v8142_v28, %v2640_v0  ;;  %v3086_v5 = vshrl.u32 %v8288_v45, 16  ;;  %v2959_v58 = vld [vmem:[#allocation2 + $0xc8] sm:$0xff] }
 0x338   : > { %v3088_v14 = vshll.u32 %v8288_v45, 16  ;;  %v2816_v23 = vmax.f32 %v2784_v43, 0.0  ;;  %v2785_v32 = vadd.f32 %v8147_v36, %v2746_v54  ;;  %v3093_v47 = vshll.u32 %v8290_v2, 16  ;;  %v2958_v37 = vld [vmem:[#allocation2 + $0xc0] sm:$0xff] }
 0x339   : > { %v8307_v34 = vsel %vm547_vm3, %v3079_v31, %v3083_v4  ;;  %v2872_v19 = vld [vmem:[#allocation2 + $0xf2] sm:$0x1]  ;;  %v2814_v25 = vmax.f32 %v2782_v63, 0.0  ;;  %v2783_v26 = vadd.f32 %v8147_v36, %v2744_v52  ;;  %v8313_v13 = vpack.c.bf16 %v2954_v18, %v2954_v18  ;;  %v2871_v39 = vld [vmem:[#allocation2 + $0xda] sm:$0x1]  ;;  %v6537_v51 = vpop.f32.mrb[24].mxu0 }
 0x33a   : > { %6553 = vmatprep.mubr.msk.bf16.mxu1 %vm345_vm1, %v8307_v34  ;;  %v3090_v33 = vrot.slane %v3088_v14, 1  ;;  %2890 = vst.msk [vmem:[#allocation2 + $0xf0] sm:$0x1] %vm401_vm2, %v2872_v19  ;;  %v2817_v57 = vmax.f32 %v2785_v32, 0.0  ;;  %v3095_v30 = vrot.slane %v3093_v47, 1  ;;  %v3100_v22 = vshll.u32 %v8281_v46, 16 }
 0x33b   : > { %2848 = vst.msk [vmem:[#allocation2 + $0x121] sm:$0xff] %vm345_vm1, %v2816_v23  ;;  %v2955_v53 = vld [vmem:[#allocation2 + $0xa8] sm:$0xff]  ;;  %v8318_v29 = vpack.c.bf16 %v2959_v58, %v2958_v37  ;;  %2846 = vst.msk [vmem:[#allocation2 + $0x109] sm:$0xff] %vm345_vm1, %v2814_v25  ;;  %v2815_v40 = vmax.f32 %v2783_v26, 0.0  ;;  %v3105_v1 = vshll.u32 %v8313_v13, 16  ;;  %v2749_v56 = vmul.f32 %v6537_v51, %v8142_v28  ;;  %v2653_v24 = vpop.f32.mrb[25].mxu0 }
 0x33c   : > { %2889 = vst.msk [vmem:[#allocation2 + $0xd8] sm:$0x1] %vm401_vm2, %v2871_v39  ;;  %v3091_v59 = vor.u32 %v3090_v33, %v3086_v5  ;;  %v8323_v55 = vpack.c.bf16 %v2956_v61, %v2955_v53  ;;  %v2960_v7 = vld [vmem:[#allocation2 + $0xd0] sm:$0x3]  ;;  %v3102_v12 = vrot.slane %v3100_v22, 1  ;;  %v2747_v9 = vmul.f32 %v8142_v28, %v2653_v24  ;;  %v6538_v38 = vpop.f32.mrb[26].mxu0 }
 0x33d   : > { %2849 = vst.msk [vmem:[#allocation2 + $0x129] sm:$0xff] %vm345_vm1, %v2817_v57  ;;  %v8327_v20 = vpack.c.bf16 %v2960_v7, %v2960_v7  ;;  %v3122_v41 = vshrl.u32 %v8318_v29, 16  ;;  %v2907_v4 = vld [vmem:[#allocation2 + $0xe7] sm:$0x1]  ;;  %2847 = vst.msk [vmem:[#allocation2 + $0x111] sm:$0xff] %vm345_vm1, %v2815_v40  ;;  %v3107_v42 = vrot.slane %v3105_v1, 1  ;;  %v2788_v54 = vadd.f32 %v8147_v36, %v2749_v56 }
 0x33e   : > { %v8333_v15 = vsel %vm547_vm3, %v3091_v59, %v3095_v30  ;;  %v2957_v16 = vld [vmem:[#allocation2 + $0xb8] sm:$0x3]  ;;  %v3110_v43 = vshrl.u32 %v8323_v55, 16  ;;  %2925 = vst.msk [vmem:[#allocation2 + $0xe9] sm:$0x1] %vm401_vm2, %v2907_v4  ;;  %v2750_v31 = vmul.f32 %v6538_v38, %v8142_v28  ;;  %v3103_v0 = vor.u32 %v3102_v12, %v3098_v3  ;;  %v2656_v18 = vpop.f32.mrb[27].mxu0 }
 0x33f   : > { %v8339_v63 = vpack.c.bf16 %v2957_v16, %v2957_v16  ;;  %v2908_v52 = vld [vmem:[#allocation2 + $0xff] sm:$0x1]  ;;  %v2786_v5 = vadd.f32 %v8147_v36, %v2747_v9  ;;  %6554 = vmatmul.mubr.msk.bf16.gmra.mrb[8].mxu1 %vm345_vm1, %v8333_v15  ;;  %v2748_v14 = vmul.f32 %v8142_v28, %v2656_v18  ;;  %v3112_v23 = vshll.u32 %v8323_v55, 16  ;;  %v2962_v25 = vld [vmem:[#allocation2 + $0xe0] sm:$0xff] }
 0x340   : > { %v3124_v32 = vshll.u32 %v8318_v29, 16  ;;  %2926 = vst.msk [vmem:[#allocation2 + $0x101] sm:$0x1] %vm401_vm2, %v2908_v52  ;;  %v2820_v47 = vmax.f32 %v2788_v54, 0.0  ;;  %v2789_v3 = vadd.f32 %v8147_v36, %v2750_v31  ;;  %v8350_v61 = vsel %vm547_vm3, %v3103_v0, %v3107_v42  ;;  %v2965_v26 = vld [vmem:[#allocation2 + $0xf8] sm:$0xff] }
 0x341   : > { %v3117_v19 = vshll.u32 %v8339_v63, 16  ;;  %v2818_v37 = vmax.f32 %v2786_v5, 0.0  ;;  %6557 = vmatprep.mubr.msk.bf16.mxu1 %vm345_vm1, %v8350_v61  ;;  %v2787_v58 = vadd.f32 %v8147_v36, %v2748_v14  ;;  %v3114_v39 = vrot.slane %v3112_v23, 1  ;;  %v2964_v30 = vld [vmem:[#allocation2 + $0xf0] sm:$0xff]  ;;  %v6541_v56 = vpop.f32.mrb[28].mxu0 }
 0x342   : > { %v2874_v33 = vld [vmem:[#allocation2 + $0x122] sm:$0x1]  ;;  %v3126_v57 = vrot.slane %v3124_v32, 1  ;;  %v2873_v22 = vld [vmem:[#allocation2 + $0x10a] sm:$0x1]  ;;  %2852 = vst.msk [vmem:[#allocation2 + $0x151] sm:$0xff] %vm345_vm1, %v2820_v47  ;;  %v8359_v1 = vpack.c.bf16 %v2965_v26, %v2964_v30  ;;  %v2753_v38 = vmul.f32 %v6541_v56, %v8142_v28 }
 0x343   : > { %2892 = vst.msk [vmem:[#allocation2 + $0x120] sm:$0x1] %vm401_vm2, %v2874_v33  ;;  %v2821_v53 = vmax.f32 %v2789_v3, 0.0  ;;  %v3119_v40 = vrot.slane %v3117_v19, 1  ;;  %v3129_v51 = vshll.u32 %v8327_v20, 16  ;;  %v2961_v59 = vld [vmem:[#allocation2 + $0xd8] sm:$0xff]  ;;  %v3115_v24 = vor.u32 %v3114_v39, %v3110_v43 }
 0x344   : > { %2891 = vst.msk [vmem:[#allocation2 + $0x108] sm:$0x1] %vm401_vm2, %v2873_v22  ;;  %v2819_v7 = vmax.f32 %v2787_v58, 0.0  ;;  %v3127_v12 = vor.u32 %v3126_v57, %v3122_v41  ;;  %v8363_v4 = vpack.c.bf16 %v2962_v25, %v2961_v59  ;;  %v2910_v9 = vld [vmem:[#allocation2 + $0x12f] sm:$0x1]  ;;  %v2669_v42 = vpop.f32.mrb[29].mxu0  ;;  %v2792_v23 = vadd.f32 %v8147_v36, %v2753_v38 }
 0x345   : > { %2850 = vst.msk [vmem:[#allocation2 + $0x139] sm:$0xff] %vm345_vm1, %v2818_v37  ;;  %2853 = vst.msk [vmem:[#allocation2 + $0x159] sm:$0xff] %vm345_vm1, %v2821_v53  ;;  %v3131_v16 = vrot.slane %v3129_v51, 1  ;;  %v2963_v54 = vld [vmem:[#allocation2 + $0xe8] sm:$0x3]  ;;  %v3146_v31 = vshrl.u32 %v8359_v1, 16  ;;  %v2751_v41 = vmul.f32 %v8142_v28, %v2669_v42  ;;  %v8373_v43 = vsel %vm547_vm3, %v3115_v24, %v3119_v40 }
 0x346   : > { %v3148_v0 = vshll.u32 %v8359_v1, 16  ;;  %2928 = vst.msk [vmem:[#allocation2 + $0x131] sm:$0x1] %vm401_vm2, %v2910_v9  ;;  %v6542_v18 = vpop.f32.mrb[30].mxu0  ;;  %v8375_v52 = vpack.c.bf16 %v2963_v54, %v2963_v54  ;;  %v3134_v5 = vshrl.u32 %v8363_v4, 16  ;;  %v3136_v19 = vshll.u32 %v8363_v4, 16 }
 0x347   : > { %2851 = vst.msk [vmem:[#allocation2 + $0x141] sm:$0xff] %vm345_vm1, %v2819_v7  ;;  %v2909_v14 = vld [vmem:[#allocation2 + $0x117] sm:$0x1]  ;;  %v2754_v32 = vmul.f32 %v6542_v18, %v8142_v28  ;;  %v8381_v47 = vsel %vm547_vm3, %v3127_v12, %v3131_v16  ;;  %v2672_v3 = vpop.f32.mrb[31].mxu0  ;;  %v2966_v25 = vld [vmem:[#allocation2 + $0x100] sm:$0x3]  ;;  %v2790_v26 = vadd.f32 %v8147_v36, %v2751_v41  ;;  %6558 = vmatmul.mubr.msk.bf16.gmra.mrb[12].mxu1 %vm345_vm1, %v8373_v43 }
 0x348   : > { %2927 = vst.msk [vmem:[#allocation2 + $0x119] sm:$0x1] %vm401_vm2, %v2909_v14  ;;  %v2752_v33 = vmul.f32 %v8142_v28, %v2672_v3  ;;  %v3141_v37 = vshll.u32 %v8375_v52, 16  ;;  %v8390_v58 = vpack.c.bf16 %v2966_v25, %v2966_v25  ;;  %v2824_v39 = vmax.f32 %v2792_v23, 0.0  ;;  %6561 = vmatprep.mubr.msk.bf16.mxu1 %vm345_vm1, %v8381_v47  ;;  %v2971_v53 = vld [vmem:[#allocation2 + $0x128] sm:$0xff]  ;;  %v2968_v42 = vld [vmem:[#allocation2 + $0x110] sm:$0xff] }
 0x349   : > { %v2793_v57 = vadd.f32 %v8147_v36, %v2754_v32  ;;  %v3138_v30 = vrot.slane %v3136_v19, 1  ;;  %v3150_v22 = vrot.slane %v3148_v0, 1  ;;  %v2876_v40 = vld [vmem:[#allocation2 + $0x152] sm:$0x1]  ;;  %v2822_v51 = vmax.f32 %v2790_v26, 0.0 }
 0x34a   : > { %v2791_v59 = vadd.f32 %v8147_v36, %v2752_v33  ;;  %v3143_v7 = vrot.slane %v3141_v37, 1  ;;  %v3153_v28 = vshll.u32 %v8390_v58, 16  ;;  %v2970_v56 = vld [vmem:[#allocation2 + $0x120] sm:$0xff]  ;;  %2894 = vst.msk [vmem:[#allocation2 + $0x150] sm:$0x1] %vm401_vm2, %v2876_v40 }
 0x34b   : > { %2856 = vst.msk [vmem:[#allocation2 + $0x181] sm:$0xff] %vm345_vm1, %v2824_v39  ;;  %v2825_v12 = vmax.f32 %v2793_v57, 0.0  ;;  %v3139_v9 = vor.u32 %v3138_v30, %v3134_v5  ;;  %v2967_v38 = vld [vmem:[#allocation2 + $0x108] sm:$0xff]  ;;  %v8399_v16 = vpack.c.bf16 %v2971_v53, %v2970_v56  ;;  %2854 = vst.msk [vmem:[#allocation2 + $0x169] sm:$0xff] %vm345_vm1, %v2822_v51  ;;  %v3151_v54 = vor.u32 %v3150_v22, %v3146_v31 }
 0x34c   : > { %v2875_v24 = vld [vmem:[#allocation2 + $0x13a] sm:$0x1]  ;;  %2860 = vst.msk [vmem:[#allocation2 + $0x199] sm:$0xff] %vm345_vm1, %v2822_v51  ;;  %v2823_v36 = vmax.f32 %v2791_v59, 0.0  ;;  %v3155_v0 = vrot.slane %v3153_v28, 1  ;;  %v8404_v41 = vpack.c.bf16 %v2968_v42, %v2967_v38 }
 0x34d   : > { %2893 = vst.msk [vmem:[#allocation2 + $0x138] sm:$0x1] %vm401_vm2, %v2875_v24  ;;  %v2972_v18 = vld [vmem:[#allocation2 + $0x130] sm:$0x3]  ;;  %v2912_v14 = vld [vmem:[#allocation2 + $0x15f] sm:$0x1]  ;;  %v8408_v5 = vsel %vm547_vm3, %v3139_v9, %v3143_v7 }
 0x34e   : > { %2857 = vst.msk [vmem:[#allocation2 + $0x189] sm:$0xff] %vm345_vm1, %v2825_v12  ;;  %v8410_v23 = vpack.c.bf16 %v2972_v18, %v2972_v18  ;;  %v3172_v32 = vshll.u32 %v8399_v16, 16  ;;  %v2911_v3 = vld [vmem:[#allocation2 + $0x147] sm:$0x1]  ;;  %2855 = vst.msk [vmem:[#allocation2 + $0x171] sm:$0xff] %vm345_vm1, %v2823_v36  ;;  %v3160_v19 = vshll.u32 %v8404_v41, 16  ;;  %v8424_v37 = vsel %vm547_vm3, %v3151_v54, %v3155_v0 }
 0x34f   : > { %2930 = vst.msk [vmem:[#allocation2 + $0x161] sm:$0x1] %vm401_vm2, %v2912_v14  ;;  %v2969_v31 = vld [vmem:[#allocation2 + $0x118] sm:$0x3]  ;;  %2929 = vst.msk [vmem:[#allocation2 + $0x149] sm:$0x1] %vm401_vm2, %v2911_v3  ;;  %6562 = vmatmul.mubr.msk.bf16.gmra.mrb[16].mxu1 %vm345_vm1, %v8408_v5 }
 0x350   : > { %2861 = vst.msk [vmem:[#allocation2 + $0x1a1] sm:$0xff] %vm345_vm1, %v2823_v36  ;;  %v8418_v25 = vpack.c.bf16 %v2969_v31, %v2969_v31  ;;  %v3174_v26 = vrot.slane %v3172_v32, 1  ;;  %v3177_v33 = vshll.u32 %v8410_v23, 16  ;;  %v3158_v39 = vshrl.u32 %v8404_v41, 16  ;;  %6565 = vmatprep.mubr.msk.bf16.mxu1 %vm345_vm1, %v8424_v37  ;;  %v2977_v51 = vld [vmem:[#allocation2 + $0x158] sm:$0xff]  ;;  %v2974_v9 = vld [vmem:[#allocation2 + $0x140] sm:$0xff] }
 0x351   : > { %v3162_v57 = vrot.slane %v3160_v19, 1  ;;  %v3170_v22 = vshrl.u32 %v8399_v16, 16  ;;  %v2976_v40 = vld [vmem:[#allocation2 + $0x150] sm:$0xff] }
 0x352   : > { %v3165_v30 = vshll.u32 %v8418_v25, 16  ;;  %v2878_v59 = vld [vmem:[#allocation2 + $0x182] sm:$0x1]  ;;  %v2877_v7 = vld [vmem:[#allocation2 + $0x16a] sm:$0x1]  ;;  %v3179_v24 = vrot.slane %v3177_v33, 1  ;;  %v8431_v38 = vpack.c.bf16 %v2977_v51, %v2976_v40 }
 0x353   : > { %v3163_v53 = vor.u32 %v3162_v57, %v3158_v39  ;;  %v3175_v56 = vor.u32 %v3174_v26, %v3170_v22  ;;  %2896 = vst.msk [vmem:[#allocation2 + $0x180] sm:$0x1] %vm401_vm2, %v2878_v59  ;;  %2895 = vst.msk [vmem:[#allocation2 + $0x168] sm:$0x1] %vm401_vm2, %v2877_v7  ;;  %v2879_v26 = vld [vmem:[#allocation2 + $0x19a] sm:$0x1] }
 0x354   : > { %v3167_v28 = vrot.slane %v3165_v30, 1  ;;  %v2973_v12 = vld [vmem:[#allocation2 + $0x138] sm:$0xff]  ;;  %v3196_v32 = vshll.u32 %v8431_v38, 16  ;;  %2897 = vst.msk [vmem:[#allocation2 + $0x198] sm:$0x1] %vm401_vm2, %v2879_v26  ;;  %v3194_v7 = vshrl.u32 %v8431_v38, 16 }
 0x355   : > { %v8435_v42 = vpack.c.bf16 %v2974_v9, %v2973_v12  ;;  %v2914_v54 = vld [vmem:[#allocation2 + $0x18f] sm:$0x1]  ;;  %v2913_v3 = vld [vmem:[#allocation2 + $0x177] sm:$0x1]  ;;  %v8449_v33 = vsel %vm547_vm3, %v3175_v56, %v3179_v24 }
 0x356   : > { %v2978_v36 = vld [vmem:[#allocation2 + $0x160] sm:$0x3]  ;;  %v8438_v0 = vsel %vm547_vm3, %v3163_v53, %v3167_v28  ;;  %v2975_v18 = vld [vmem:[#allocation2 + $0x148] sm:$0x3]  ;;  %2932 = vst.msk [vmem:[#allocation2 + $0x191] sm:$0x1] %vm401_vm2, %v2914_v54 }
 0x357   : > { %v8440_v14 = vpack.c.bf16 %v2978_v36, %v2978_v36  ;;  %v8444_v31 = vpack.c.bf16 %v2975_v18, %v2975_v18  ;;  %v3184_v19 = vshll.u32 %v8435_v42, 16  ;;  %2931 = vst.msk [vmem:[#allocation2 + $0x179] sm:$0x1] %vm401_vm2, %v2913_v3  ;;  %v3182_v39 = vshrl.u32 %v8435_v42, 16  ;;  %v2915_v57 = vld [vmem:[#allocation2 + $0x1a7] sm:$0x1]  ;;  %6566 = vmatmul.mubr.msk.bf16.gmra.mrb[20].mxu1 %vm345_vm1, %v8438_v0 }
 0x358   : > { %v3198_v53 = vrot.slane %v3196_v32, 1  ;;  %2933 = vst.msk [vmem:[#allocation2 + $0x1a9] sm:$0x1] %vm401_vm2, %v2915_v57  ;;  %6569 = vmatprep.mubr.msk.bf16.mxu1 %vm345_vm1, %v8449_v33  ;;  %v2980_v56 = vld [vmem:[#allocation2 + $0x170] sm:$0xff] }
 0x359   : > { %v3186_v30 = vrot.slane %v3184_v19, 1  ;;  %v3189_v22 = vshll.u32 %v8444_v31, 16  ;;  %v3201_v40 = vshll.u32 %v8440_v14, 16 }
 0x35a   : > { %v2979_v28 = vld [vmem:[#allocation2 + $0x168] sm:$0xff]  ;;  %v3199_v24 = vor.u32 %v3198_v53, %v3194_v7  ;;  %v3758_v53 = vsel %vm790_vm0, %v8224_v11, 0  ;;  %v3660_v11 = vrot.slane %v8201_v6, 1  ;;  %v3663_v7 = vrot.slane %v8208_v8, 1 }
 0x35b   : > { %v3187_v51 = vor.u32 %v3186_v30, %v3182_v39  ;;  %v3191_v59 = vrot.slane %v3189_v22, 1  ;;  %v3203_v12 = vrot.slane %v3201_v40, 1  ;;  %v8461_v9 = vpack.c.bf16 %v2980_v56, %v2979_v28  ;;  %v5665_v40 = vld [vmem:[%s9023_s2 + $0x6] sm:$0x3] }
 0x35c   : > { %v3666_v28 = vrot.slane %v8231_v35, 1  ;;  %v3662_v56 = vrot.slane %v8195_v44, 1  ;;  %v3669_v35 = vrot.slane %v8263_v62, 1  ;;  %v3675_v62 = vrot.slane %v8290_v2, 1 }
 0x35d   : > { %v8464_v36 = vsel %vm547_vm3, %v3187_v51, %v3191_v59  ;;  %v3208_v32 = vshll.u32 %v8461_v9, 16  ;;  %v8472_v3 = vsel %vm547_vm3, %v3199_v24, %v3203_v12  ;;  %v3206_v19 = vshrl.u32 %v8461_v9, 16 }
 0x35e   : > { %v2981_v54 = vld [vmem:[#allocation2 + $0x178] sm:$0x3]  ;;  %v3659_v51 = vrot.slane %v8191_v50, 1  ;;  %v3959_v24 = vsel %vm790_vm0, %v5665_v40, 0  ;;  %v3665_v12 = vrot.slane %v8197_v60, 1  ;;  %v8531_v6 = vsel %vm1183_vm4, %v3662_v56, %v3663_v7 }
 0x35f   : > { %v8466_v18 = vpack.c.bf16 %v2981_v54, %v2981_v54  ;;  %6570 = vmatmul.mubr.msk.bf16.gmra.mrb[24].mxu1 %vm345_vm1, %v8464_v36  ;;  %v3210_v26 = vrot.slane %v3208_v32, 1  ;;  %v3672_v54 = vrot.slane %v8252_v10, 1  ;;  %v3668_v32 = vrot.slane %v8245_v17, 1 }
 0x360   : > { %6573 = vmatprep.mubr.msk.bf16.mxu1 %vm345_vm1, %v8472_v3  ;;  %v3661_v59 = vsel %vm1183_vm4, %v3659_v51, %v3660_v11  ;;  %v8539_v8 = vsel %vm1183_vm4, %v3665_v12, %v3666_v28  ;;  %v3678_v10 = vrot.slane %v8313_v13, 1  ;;  %v3681_v2 = vrot.slane %v8339_v63, 1 }
 0x361   : > { %v3213_v39 = vshll.u32 %v8466_v18, 16  ;;  %v3211_v57 = vor.u32 %v3210_v26, %v3206_v19  ;;  %v3671_v19 = vrot.slane %v8247_v21, 1  ;;  %v8549_v26 = vsel %vm1183_vm4, %v3668_v32, %v3669_v35 }
 0x362   : > { %v3684_v13 = vrot.slane %v8327_v20, 1  ;;  %v3680_v11 = vrot.slane %v8323_v55, 1  ;;  %v3683_v51 = vrot.slane %v8318_v29, 1  ;;  %v3687_v63 = vrot.slane %v8375_v52, 1 }
 0x363   : > { %v3215_v30 = vrot.slane %v3213_v39, 1  ;;  %v8554_v39 = vsel %vm1183_vm4, %v3671_v19, %v3672_v54  ;;  %v3690_v20 = vrot.slane %v8390_v58, 1  ;;  %v3686_v28 = vrot.slane %v8363_v4, 1 }
 0x364   : > { %v8582_v7 = vsel %vm1183_vm4, %v3683_v51, %v3684_v13  ;;  %v3689_v56 = vrot.slane %v8359_v1, 1  ;;  %v3693_v52 = vrot.slane %v8418_v25, 1  ;;  %v3696_v58 = vrot.slane %v8410_v23, 1 }
 0x365   : > { %v8479_v22 = vsel %vm547_vm3, %v3211_v57, %v3215_v30  ;;  %v3674_v57 = vrot.slane %v8288_v45, 1  ;;  %v3677_v30 = vrot.slane %v8281_v46, 1  ;;  %v3692_v35 = vrot.slane %v8404_v41, 1 }
 0x366   : > { %v8596_v12 = vsel %vm1183_vm4, %v3689_v56, %v3690_v20  ;;  %v3695_v54 = vrot.slane %v8399_v16, 1  ;;  %v3699_v25 = vrot.slane %v8444_v31, 1  ;;  %v3702_v23 = vrot.slane %v8440_v14, 1 }
 0x367   : > { %6574 = vmatmul.mubr.msk.bf16.gmra.mrb[28].mxu1 %vm345_vm1, %v8479_v22  ;;  %v8605_v32 = vsel %vm1183_vm4, %v3692_v35, %v3693_v52  ;;  %v3705_v31 = vrot.slane %v8466_v18, 1  ;;  %v3704_v14 = vrot.slane %v8461_v9, 1  ;;  %v2983_v18 = vld [vmem:[#allocation2 + $0x188] sm:$0xff] }
 0x368   : > { %6579 = vmatprep.mubr.msk.bf16.mxu1 %vm345_vm1, %v8191_v50  ;;  %v5682_v50 = vld [vmem:[%s9023_s2 + $0x8] sm:$0x3]  ;;  %v8610_v19 = vsel %vm1183_vm4, %v3695_v54, %v3696_v58 }
 0x369   : > { %v4171_v13 = vsel %vm790_vm0, %v5682_v50, 0 }
 0x36f   : > { %6580 = vmatmul.mubr.msk.bf16.vlgmr.msra.gmra.mrb[0].mxu1 %vm345_vm1, %v8195_v44 }
 0x370   : > { %6612 = vmatpush3.bf16.msra.mxu1 %v3758_v53  ;;  %6583 = vmatprep.mubr.msk.bf16.mxu1 %vm345_vm1, %v8197_v60  ;;  %v8563_v53 = vsel %vm1183_vm4, %v3674_v57, %v3675_v62  ;;  %v3698_v62 = vrot.slane %v8435_v42, 1 }
 0x371   : > { %7373 = vmatprep.subr.msk.bf16.mxu1 %vm790_vm0, %v5665_v40  ;;  %v8568_v40 = vsel %vm1183_vm4, %v3677_v30, %v3678_v10  ;;  %v3701_v10 = vrot.slane %v8431_v38, 1 }
 0x372   : > { %v8619_v57 = vsel %vm1183_vm4, %v3698_v62, %v3699_v25  ;;  %v5733_v62 = vld [vmem:[%s9023_s2 + $0xe] sm:$0x3] }
 0x373   : > { %v8624_v30 = vsel %vm1183_vm4, %v3701_v10, %v3702_v23 }
 0x377   : > { %6584 = vmatmul.mubr.msk.bf16.gmra.mrb[4].mxu1 %vm345_vm1, %v8245_v17 }
 0x378   : > { %6587 = vmatprep.mubr.msk.bf16.mxu1 %vm345_vm1, %v8247_v21 }
 0x37f   : > { %6588 = vmatmul.mubr.msk.bf16.gmra.mrb[8].mxu1 %vm345_vm1, %v8288_v45 }
 0x380   : > { %6591 = vmatprep.mubr.msk.bf16.mxu1 %vm345_vm1, %v8281_v46 }
 0x387   : > { %6592 = vmatmul.mubr.msk.bf16.gmra.mrb[12].mxu1 %vm345_vm1, %v8323_v55 }
 0x388   : > { %6595 = vmatprep.mubr.msk.bf16.mxu1 %vm345_vm1, %v8318_v29 }
 0x38f   : > { %6596 = vmatmul.mubr.msk.bf16.gmra.mrb[16].mxu1 %vm345_vm1, %v8363_v4 }
 0x390   : > { %6599 = vmatprep.mubr.msk.bf16.mxu1 %vm345_vm1, %v8359_v1 }
 0x397   : > { %6600 = vmatmul.mubr.msk.bf16.gmra.mrb[20].mxu1 %vm345_vm1, %v8404_v41 }
 0x398   : > { %6603 = vmatprep.mubr.msk.bf16.mxu1 %vm345_vm1, %v8399_v16 }
 0x39f   : > { %6604 = vmatmul.mubr.msk.bf16.gmra.mrb[24].mxu1 %vm345_vm1, %v8435_v42 }
 0x3a0   : > { %6607 = vmatprep.mubr.msk.bf16.mxu1 %vm345_vm1, %v8431_v38 }
 0x3a7   : > { %6608 = vmatmul.mubr.msk.bf16.gmra.mrb[28].mxu1 %vm345_vm1, %v8461_v9 }
 0x3a8   : > { %6613 = vmatprep.mubr.msk.bf16.mxu1 %vm345_vm1, %v3661_v59  ;;  %v8577_v59 = vsel %vm1183_vm4, %v3680_v11, %v3681_v2  ;;  %v8631_v2 = vsel %vm1183_vm4, %v3704_v14, %v3705_v31  ;;  %v5699_v11 = vld [vmem:[%s9023_s2 + $0xa] sm:$0x3]  ;;  %v4790_v14 = vsel %vm790_vm0, %v5733_v62, 0 }
 0x3a9   : > { %v4377_v51 = vsel %vm790_vm0, %v5699_v11, 0 }
 0x3af   : > { %6614 = vmatmul.mubr.msk.bf16.vlgmr.msra.gmra.mrb[0].mxu1 %vm345_vm1, %v8531_v6 }
 0x3b0   : > { %6646 = vmatpush3.bf16.msra.mxu1 %v3959_v24  ;;  %6617 = vmatprep.mubr.msk.bf16.mxu1 %vm345_vm1, %v8539_v8  ;;  %v8591_v24 = vsel %vm1183_vm4, %v3686_v28, %v3687_v63  ;;  %v5716_v63 = vld [vmem:[%s9023_s2 + $0xc] sm:$0x3] }
 0x3b1   : > { %7374 = vmatprep.subr.msk.bf16.mxu1 %vm790_vm0, %v5682_v50  ;;  %v4578_v23 = vsel %vm790_vm0, %v5716_v63, 0 }
 0x3b7   : > { %6618 = vmatmul.mubr.msk.bf16.gmra.mrb[4].mxu1 %vm345_vm1, %v8549_v26 }
 0x3b8   : > { %6621 = vmatprep.mubr.msk.bf16.mxu1 %vm345_vm1, %v8554_v39 }
 0x3bf   : > { %6622 = vmatmul.mubr.msk.bf16.gmra.mrb[8].mxu1 %vm345_vm1, %v8563_v53 }
 0x3c0   : > { %6625 = vmatprep.mubr.msk.bf16.mxu1 %vm345_vm1, %v8568_v40 }
 0x3c7   : > { %6626 = vmatmul.mubr.msk.bf16.gmra.mrb[12].mxu1 %vm345_vm1, %v8577_v59 }
 0x3c8   : > { %6629 = vmatprep.mubr.msk.bf16.mxu1 %vm345_vm1, %v8582_v7 }
 0x3cf   : > { %6630 = vmatmul.mubr.msk.bf16.gmra.mrb[16].mxu1 %vm345_vm1, %v8591_v24 }
 0x3d0   : > { %6633 = vmatprep.mubr.msk.bf16.mxu1 %vm345_vm1, %v8596_v12 }
 0x3d7   : > { %6634 = vmatmul.mubr.msk.bf16.gmra.mrb[20].mxu1 %vm345_vm1, %v8605_v32 }
 0x3d8   : > { %6637 = vmatprep.mubr.msk.bf16.mxu1 %vm345_vm1, %v8610_v19 }
 0x3df   : > { %6638 = vmatmul.mubr.msk.bf16.gmra.mrb[24].mxu1 %vm345_vm1, %v8619_v57 }
 0x3e0   : > { %6641 = vmatprep.mubr.msk.bf16.mxu1 %vm345_vm1, %v8624_v30 }
 0x3e7   : > { %6642 = vmatmul.mubr.msk.bf16.gmra.mrb[28].mxu1 %vm345_vm1, %v8631_v2 }
 0x3e8   : > { %6647 = vmatprep.mubr.msk.bf16.mxu1 %vm345_vm1, %v8195_v44  ;;  %v2982_v44 = vld [vmem:[#allocation2 + $0x180] sm:$0xff] }
 0x3e9   : > { %v8670_v50 = vpack.c.bf16 %v2983_v18, %v2982_v44 }
 0x3eb   : > { %v4156_v28 = vshll.u32 %v8670_v50, 16  ;;  %v4154_v58 = vshrl.u32 %v8670_v50, 16  ;;  %v4368_v10 = vrot.slane %v8670_v50, 1 }
 0x3ed   : > { %v4158_v56 = vrot.slane %v4156_v28, 1 }
 0x3ef   : > { %6648 = vmatmul.mubr.msk.bf16.vlgmr.msra.gmra.mrb[0].mxu1 %vm345_vm1, %v8197_v60  ;;  %v4159_v35 = vor.u32 %v4158_v56, %v4154_v58 }
 0x3f0   : > { %6680 = vmatpush3.bf16.msra.mxu1 %v4171_v13  ;;  %6651 = vmatprep.mubr.msk.bf16.mxu1 %vm345_vm1, %v8245_v17  ;;  %v5750_v13 = vld [vmem:[%s9023_s2 + $0x10] sm:$0x3] }
 0x3f1   : > { %7375 = vmatprep.subr.msk.bf16.mxu1 %vm790_vm0, %v5699_v11 }
 0x3f7   : > { %6652 = vmatmul.mubr.msk.bf16.gmra.mrb[4].mxu1 %vm345_vm1, %v8247_v21 }
 0x3f8   : > { %6655 = vmatprep.mubr.msk.bf16.mxu1 %vm345_vm1, %v8288_v45 }
 0x3ff   : > { %6656 = vmatmul.mubr.msk.bf16.gmra.mrb[8].mxu1 %vm345_vm1, %v8281_v46 }
 0x400   : > { %6659 = vmatprep.mubr.msk.bf16.mxu1 %vm345_vm1, %v8323_v55 }
 0x407   : > { %6660 = vmatmul.mubr.msk.bf16.gmra.mrb[12].mxu1 %vm345_vm1, %v8318_v29 }
 0x408   : > { %6663 = vmatprep.mubr.msk.bf16.mxu1 %vm345_vm1, %v8363_v4 }
 0x40f   : > { %6664 = vmatmul.mubr.msk.bf16.gmra.mrb[16].mxu1 %vm345_vm1, %v8359_v1 }
 0x410   : > { %6667 = vmatprep.mubr.msk.bf16.mxu1 %vm345_vm1, %v8404_v41 }
 0x417   : > { %6668 = vmatmul.mubr.msk.bf16.gmra.mrb[20].mxu1 %vm345_vm1, %v8399_v16 }
 0x418   : > { %6671 = vmatprep.mubr.msk.bf16.mxu1 %vm345_vm1, %v8435_v42 }
 0x41f   : > { %6672 = vmatmul.mubr.msk.bf16.gmra.mrb[24].mxu1 %vm345_vm1, %v8431_v38 }
 0x420   : > { %6675 = vmatprep.mubr.msk.bf16.mxu1 %vm345_vm1, %v8461_v9 }
 0x427   : > { %6676 = vmatmul.mubr.msk.bf16.gmra.mrb[28].mxu1 %vm345_vm1, %v8670_v50 }
 0x428   : > { %6681 = vmatprep.mubr.msk.bf16.mxu1 %vm345_vm1, %v8237_v27  ;;  %v2984_v27 = vld [vmem:[#allocation2 + $0x190] sm:$0x3] }
 0x429   : > { %v3022_v20 = vpack.c.bf16 %v2984_v27, %v2984_v27 }
 0x42b   : > { %v4161_v52 = vshll.u32 %v3022_v20, 16 }
 0x42d   : > { %v4163_v54 = vrot.slane %v4161_v52, 1 }
 0x42f   : > { %6682 = vmatmul.mubr.msk.bf16.vlgmr.msra.gmra.mrb[0].mxu1 %vm345_vm1, %v8269_v48  ;;  %v8712_v25 = vsel %vm547_vm3, %v4159_v35, %v4163_v54 }
 0x430   : > { %6714 = vmatpush3.bf16.msra.mxu1 %v4377_v51  ;;  %6685 = vmatprep.mubr.msk.bf16.mxu1 %vm345_vm1, %v8295_v49 }
 0x431   : > { %7376 = vmatprep.subr.msk.bf16.mxu1 %vm790_vm0, %v5716_v63 }
 0x437   : > { %6686 = vmatmul.mubr.msk.bf16.gmra.mrb[4].mxu1 %vm345_vm1, %v8307_v34 }
 0x438   : > { %6689 = vmatprep.mubr.msk.bf16.mxu1 %vm345_vm1, %v8333_v15 }
 0x43f   : > { %6690 = vmatmul.mubr.msk.bf16.gmra.mrb[8].mxu1 %vm345_vm1, %v8350_v61 }
 0x440   : > { %6693 = vmatprep.mubr.msk.bf16.mxu1 %vm345_vm1, %v8373_v43 }
 0x447   : > { %6694 = vmatmul.mubr.msk.bf16.gmra.mrb[12].mxu1 %vm345_vm1, %v8381_v47 }
 0x448   : > { %6697 = vmatprep.mubr.msk.bf16.mxu1 %vm345_vm1, %v8408_v5 }
 0x44f   : > { %6698 = vmatmul.mubr.msk.bf16.gmra.mrb[16].mxu1 %vm345_vm1, %v8424_v37 }
 0x450   : > { %6701 = vmatprep.mubr.msk.bf16.mxu1 %vm345_vm1, %v8438_v0 }
 0x457   : > { %6702 = vmatmul.mubr.msk.bf16.gmra.mrb[20].mxu1 %vm345_vm1, %v8449_v33 }
 0x458   : > { %6705 = vmatprep.mubr.msk.bf16.mxu1 %vm345_vm1, %v8464_v36 }
 0x45f   : > { %6706 = vmatmul.mubr.msk.bf16.gmra.mrb[24].mxu1 %vm345_vm1, %v8472_v3 }
 0x460   : > { %6709 = vmatprep.mubr.msk.bf16.mxu1 %vm345_vm1, %v8479_v22 }
 0x467   : > { %6710 = vmatmul.mubr.msk.bf16.gmra.mrb[28].mxu1 %vm345_vm1, %v8712_v25 }
 0x468   : > { %6715 = vmatprep.mubr.msk.bf16.mxu1 %vm345_vm1, %v8531_v6  ;;  %v4369_v6 = vrot.slane %v3022_v20, 1 }
 0x46a   : > { %v8753_v31 = vsel %vm1183_vm4, %v4368_v10, %v4369_v6  ;;  %v5920_v10 = vld [vmem:[%s7461_s10 + $0x28] sm:$0xff]  }
 0x46f   : > { %6716 = vmatmul.mubr.msk.bf16.vlgmr.msra.gmra.mrb[0].mxu1 %vm345_vm1, %v8539_v8 }
 0x470   : > { %6748 = vmatpush3.bf16.msra.mxu1 %v4578_v23  ;;  %6719 = vmatprep.mubr.msk.bf16.mxu1 %vm345_vm1, %v8549_v26 }
 0x471   : > { %7377 = vmatprep.subr.msk.bf16.mxu1 %vm790_vm0, %v5733_v62 }
 0x477   : > { %6720 = vmatmul.mubr.msk.bf16.gmra.mrb[4].mxu1 %vm345_vm1, %v8554_v39 }
 0x478   : > { %6723 = vmatprep.mubr.msk.bf16.mxu1 %vm345_vm1, %v8563_v53 }
 0x47f   : > { %6724 = vmatmul.mubr.msk.bf16.gmra.mrb[8].mxu1 %vm345_vm1, %v8568_v40 }
 0x480   : > { %6727 = vmatprep.mubr.msk.bf16.mxu1 %vm345_vm1, %v8577_v59 }
 0x487   : > { %6728 = vmatmul.mubr.msk.bf16.gmra.mrb[12].mxu1 %vm345_vm1, %v8582_v7 }
 0x488   : > { %6731 = vmatprep.mubr.msk.bf16.mxu1 %vm345_vm1, %v8591_v24 }
 0x48f   : > { %6732 = vmatmul.mubr.msk.bf16.gmra.mrb[16].mxu1 %vm345_vm1, %v8596_v12 }
 0x490   : > { %6735 = vmatprep.mubr.msk.bf16.mxu1 %vm345_vm1, %v8605_v32 }
 0x497   : > { %6736 = vmatmul.mubr.msk.bf16.gmra.mrb[20].mxu1 %vm345_vm1, %v8610_v19 }
 0x498   : > { %6739 = vmatprep.mubr.msk.bf16.mxu1 %vm345_vm1, %v8619_v57 }
 0x49f   : > { %6740 = vmatmul.mubr.msk.bf16.gmra.mrb[24].mxu1 %vm345_vm1, %v8624_v30 }
 0x4a0   : > { %6743 = vmatprep.mubr.msk.bf16.mxu1 %vm345_vm1, %v8631_v2 }
 0x4a7   : > { %6744 = vmatmul.mubr.msk.bf16.gmra.mrb[28].mxu1 %vm345_vm1, %v8753_v31 }
 0x4a8   : > { %6749 = vmatprep.mubr.msk.bf16.mxu1 %vm345_vm1, %v8197_v60  ;;  %v2985_v60 = vld [vmem:[#allocation2 + $0x198] sm:$0xff] }
 0x4af   : > { %6750 = vmatmul.mubr.msk.bf16.vlgmr.msra.gmra.mrb[0].mxu1 %vm345_vm1, %v8245_v17  ;;  %v2986_v17 = vld [vmem:[#allocation2 + $0x1a0] sm:$0xff] }
 0x4b0   : > { %6782 = vmatpush3.bf16.msra.mxu1 %v4790_v14  ;;  %6753 = vmatprep.mubr.msk.bf16.mxu1 %vm345_vm1, %v8247_v21  ;;  %v3005_v21 = vpack.c.bf16 %v2986_v17, %v2985_v60  ;;  %v5919_v14 = vld [vmem:[%s7461_s10 + $0x20] sm:$0xff]   ;;  %v5859_v17 = vunpack.c.l.bf16 %v5920_v10 }
 0x4b1   : > { %7378 = vmatprep.subr.msk.bf16.mxu1 %vm790_vm0, %v5750_v13 }
 0x4b7   : > { %6754 = vmatmul.mubr.msk.bf16.gmra.mrb[4].mxu1 %vm345_vm1, %v8288_v45 }
 0x4b8   : > { %6757 = vmatprep.mubr.msk.bf16.mxu1 %vm345_vm1, %v8281_v46  ;;  %v4996_v46 = vsel %vm790_vm0, %v5750_v13, 0 }
 0x4bf   : > { %6758 = vmatmul.mubr.msk.bf16.gmra.mrb[8].mxu1 %vm345_vm1, %v8323_v55  ;;  %v4773_v55 = vshrl.u32 %v3005_v21, 16 }
 0x4c0   : > { %6761 = vmatprep.mubr.msk.bf16.mxu1 %vm345_vm1, %v8318_v29 }
 0x4c7   : > { %6762 = vmatmul.mubr.msk.bf16.gmra.mrb[12].mxu1 %vm345_vm1, %v8363_v4 }
 0x4c8   : > { %6765 = vmatprep.mubr.msk.bf16.mxu1 %vm345_vm1, %v8359_v1 }
 0x4cf   : > { %6766 = vmatmul.mubr.msk.bf16.gmra.mrb[16].mxu1 %vm345_vm1, %v8404_v41  ;;  %v8862_v41 = vld [vmem:[%s9026_s5] ss:$0 sm:$0xff] }
 0x4d0   : > { %6769 = vmatprep.mubr.msk.bf16.mxu1 %vm345_vm1, %v8399_v16  ;;  %v5916_v16 = vld [vmem:[%s7461_s10 + $0x8] sm:$0xff]  }
 0x4d7   : > { %6770 = vmatmul.mubr.msk.bf16.gmra.mrb[20].mxu1 %vm345_vm1, %v8435_v42  ;;  %v5843_v42 = vunpack.c.l.bf16 %v5916_v16 }
 0x4d8   : > { %6773 = vmatprep.mubr.msk.bf16.mxu1 %vm345_vm1, %v8431_v38  ;;  %v8868_v38 = vld [vmem:[%s9027_s6] ss:$0 sm:$0xff] }
 0x4df   : > { %6774 = vmatmul.mubr.msk.bf16.gmra.mrb[24].mxu1 %vm345_vm1, %v8461_v9 }
 0x4e0   : > { %6777 = vmatprep.mubr.msk.bf16.mxu1 %vm345_vm1, %v8670_v50 }
 0x4e7   : > { %6778 = vmatmul.mubr.msk.bf16.gmra.mrb[28].mxu1 %vm345_vm1, %v3005_v21 }
 0x4e8   : > { %6783 = vmatprep.mubr.msk.bf16.mxu1 %vm345_vm1, %v8269_v48  ;;  %v2987_v48 = vld [vmem:[#allocation2 + $0x1a8] sm:$0x3] }
 0x4e9   : > { %v3023_v45 = vpack.c.bf16 %v2987_v48, %v2987_v48  ;;  %v5855_v48 = vunpack.c.l.bf16 %v5919_v14 }
 0x4eb   : > { %v4780_v29 = vshll.u32 %v3023_v45, 16  ;;  %v4988_v4 = vrot.slane %v3023_v45, 1 }
 0x4ef   : > { %6784 = vmatmul.mubr.msk.bf16.vlgmr.msra.gmra.mrb[0].mxu1 %vm345_vm1, %v8295_v49  ;;  %v4775_v49 = vshll.u32 %v3005_v21, 16 }
 0x4f0   : > { %6816 = vmatpush3.bf16.msra.mxu1 %v4996_v46  ;;  %6787 = vmatprep.mubr.msk.bf16.mxu1 %vm345_vm1, %v8307_v34 }
 0x4f1   : > { %v4777_v34 = vrot.slane %v4775_v49, 1 }
 0x4f7   : > { %6788 = vmatmul.mubr.msk.bf16.gmra.mrb[4].mxu1 %vm345_vm1, %v8333_v15  ;;  %v4778_v15 = vor.u32 %v4777_v34, %v4773_v55 }
 0x4f8   : > { %6791 = vmatprep.mubr.msk.bf16.mxu1 %vm345_vm1, %v8350_v61  ;;  %v4782_v61 = vrot.slane %v4780_v29, 1  ;;  %v5860_v29 = vunpack.c.h.bf16 %v5920_v10 }
 0x4fa   : > { %v4783_v1 = vsel %vm547_vm3, %v4778_v15, %v4782_v61 }
 0x4ff   : > { %6792 = vmatmul.mubr.msk.bf16.gmra.mrb[8].mxu1 %vm345_vm1, %v8373_v43  ;;  %v4987_v43 = vrot.slane %v3005_v21, 1 }
 0x500   : > { %6795 = vmatprep.mubr.msk.bf16.mxu1 %vm345_vm1, %v8381_v47 }
 0x501   : > { %v4989_v47 = vsel %vm1183_vm4, %v4987_v43, %v4988_v4 }
 0x507   : > { %6796 = vmatmul.mubr.msk.bf16.gmra.mrb[12].mxu1 %vm345_vm1, %v8408_v5  ;;  %v5838_v5 = vld [vmem:[%s7461_s10] sm:$0xff]  }
 0x508   : > { %6799 = vmatprep.mubr.msk.bf16.mxu1 %vm345_vm1, %v8424_v37  ;;  %v5839_v9 = vunpack.c.l.bf16 %v5838_v5 }
 0x50f   : > { %6800 = vmatmul.mubr.msk.bf16.gmra.mrb[16].mxu1 %vm345_vm1, %v8438_v0 }
 0x510   : > { %6803 = vmatprep.mubr.msk.bf16.mxu1 %vm345_vm1, %v8449_v33 }
 0x517   : > { %6804 = vmatmul.mubr.msk.bf16.gmra.mrb[20].mxu1 %vm345_vm1, %v8464_v36 }
 0x518   : > { %6807 = vmatprep.mubr.msk.bf16.mxu1 %vm345_vm1, %v8472_v3 }
 0x51f   : > { %6808 = vmatmul.mubr.msk.bf16.gmra.mrb[24].mxu1 %vm345_vm1, %v8479_v22 }
 0x520   : > { %6811 = vmatprep.mubr.msk.bf16.mxu1 %vm345_vm1, %v8712_v25 }
 0x527   : > { %6812 = vmatmul.mubr.msk.bf16.gmra.mrb[28].mxu1 %vm345_vm1, %v4783_v1  ;;  %v5856_v1 = vunpack.c.h.bf16 %v5919_v14 }
 0x528   : > { %6817 = vmatprep.mubr.msk.bf16.mxu1 %vm345_vm1, %v8539_v8  ;;  %v5844_v8 = vunpack.c.h.bf16 %v5916_v16 }
 0x52f   : > { %6818 = vmatmul.mubr.msk.bf16.vlgmr.msra.gmra.mrb[0].mxu1 %vm345_vm1, %v8549_v26 }
 0x530   : > { %6821 = vmatprep.mubr.msk.bf16.mxu1 %vm345_vm1, %v8554_v39 }
 0x537   : > { %6822 = vmatmul.mubr.msk.bf16.gmra.mrb[4].mxu1 %vm345_vm1, %v8563_v53 }
 0x538   : > { %6825 = vmatprep.mubr.msk.bf16.mxu1 %vm345_vm1, %v8568_v40  ;;  %v5840_v40 = vunpack.c.h.bf16 %v5838_v5 }
 0x53f   : > { %6826 = vmatmul.mubr.msk.bf16.gmra.mrb[8].mxu1 %vm345_vm1, %v8577_v59 }
 0x540   : > { %6829 = vmatprep.mubr.msk.bf16.mxu1 %vm345_vm1, %v8582_v7 }
 0x547   : > { %6830 = vmatmul.mubr.msk.bf16.gmra.mrb[12].mxu1 %vm345_vm1, %v8591_v24 }
 0x548   : > { %6833 = vmatprep.mubr.msk.bf16.mxu1 %vm345_vm1, %v8596_v12 }
 0x54f   : > { %6834 = vmatmul.mubr.msk.bf16.gmra.mrb[16].mxu1 %vm345_vm1, %v8605_v32 }
 0x550   : > { %6837 = vmatprep.mubr.msk.bf16.mxu1 %vm345_vm1, %v8610_v19  ;;  %v5918_v19 = vld [vmem:[%s7461_s10 + $0x18] sm:$0xff]  }
 0x551   : > { %v5851_v44 = vunpack.c.l.bf16 %v5918_v19  ;;  %v5852_v28 = vunpack.c.h.bf16 %v5918_v19 }
 0x557   : > { %6838 = vmatmul.mubr.msk.bf16.gmra.mrb[20].mxu1 %vm345_vm1, %v8619_v57 }
 0x558   : > { %6841 = vmatprep.mubr.msk.bf16.mxu1 %vm345_vm1, %v8624_v30  ;;  %v5917_v30 = vld [vmem:[%s7461_s10 + $0x10] sm:$0xff]  }
 0x559   : > { %v5847_v51 = vunpack.c.l.bf16 %v5917_v30  ;;  %v5848_v35 = vunpack.c.h.bf16 %v5917_v30 }
 0x55f   : > { %6842 = vmatmul.mubr.msk.bf16.gmra.mrb[24].mxu1 %vm345_vm1, %v8631_v2 }
 0x560   : > { %6845 = vmatprep.mubr.msk.bf16.mxu1 %vm345_vm1, %v8753_v31 }
 0x567   : > { %6846 = vmatmul.mubr.msk.bf16.gmra.mrb[28].mxu1 %vm345_vm1, %v4989_v47 }
 0x602   : > { %v6819_v37 = vpop.f32.mrb[0].mxu1 }
 0x603   : > { %v5264_v0 = vmul.f32 %v6819_v37, %v8862_v41  ;;  %v5032_v33 = vpop.f32.mrb[1].mxu1  ;;  %v5922_v37 = vld [vmem:[%s7461_s10 + $0x38] sm:$0xff]  }
 0x604   : > { %v5262_v36 = vmul.f32 %v8862_v41, %v5032_v33  ;;  %v6820_v3 = vpop.f32.mrb[2].mxu1 }
 0x605   : > { %v5303_v22 = vadd.f32 %v8868_v38, %v5264_v0  ;;  %v5265_v26 = vmul.f32 %v6820_v3, %v8862_v41  ;;  %v5035_v39 = vpop.f32.mrb[3].mxu1  ;;  %v5921_v0 = vld [vmem:[%s7461_s10 + $0x30] sm:$0xff]  }
 0x606   : > { %v5301_v53 = vadd.f32 %v8868_v38, %v5262_v36  ;;  %v5263_v59 = vmul.f32 %v8862_v41, %v5035_v39  ;;  %v5867_v36 = vunpack.c.l.bf16 %v5922_v37 }
 0x607   : > { %v5335_v7 = vadd.f32 %v5843_v42, %v5303_v22  ;;  %v5304_v24 = vadd.f32 %v8868_v38, %v5265_v26 }
 0x608   : > { %v5333_v12 = vadd.f32 %v5839_v9, %v5301_v53  ;;  %v5302_v32 = vadd.f32 %v8868_v38, %v5263_v59 }
 0x609   : > { %5367 = vst.msk [vmem:[%s8878_s25 + $0x10] sm:$0xff] %vm345_vm1, %v5335_v7  ;;  %v5336_v57 = vadd.f32 %v5844_v8, %v5304_v24  ;;  %v5863_v8 = vunpack.c.l.bf16 %v5921_v0 }
 0x60a   : > { %5365 = vst.msk [vmem:[%s8878_s25] sm:$0xff] %vm345_vm1, %v5333_v12  ;;  %v5334_v2 = vadd.f32 %v5840_v40, %v5302_v32  ;;  %v6823_v11 = vpop.f32.mrb[4].mxu1  ;;  %v5868_v40 = vunpack.c.h.bf16 %v5922_v37  ;;  %v5864_v12 = vunpack.c.h.bf16 %v5921_v0 }
 0x60b   : > { %5368 = vst.msk [vmem:[%s8878_s25 + $0x18] sm:$0xff] %vm345_vm1, %v5336_v57  ;;  %v5268_v18 = vmul.f32 %v6823_v11, %v8862_v41  ;;  %v5048_v50 = vpop.f32.mrb[5].mxu1  ;;  %v5924_v11 = vld [vmem:[%s7461_s10 + $0x48] sm:$0xff]  }
 0x60c   : > { %5366 = vst.msk [vmem:[%s8878_s25 + $0x8] sm:$0xff] %vm345_vm1, %v5334_v2  ;;  %v5266_v63 = vmul.f32 %v8862_v41, %v5048_v50  ;;  %v6824_v27 = vpop.f32.mrb[6].mxu1 }
 0x60d   : > { %v5307_v20 = vadd.f32 %v8868_v38, %v5268_v18  ;;  %v5269_v56 = vmul.f32 %v6824_v27, %v8862_v41  ;;  %v5051_v52 = vpop.f32.mrb[7].mxu1  ;;  %v5923_v18 = vld [vmem:[%s7461_s10 + $0x40] sm:$0xff]  }
 0x60e   : > { %v5305_v58 = vadd.f32 %v8868_v38, %v5266_v63  ;;  %v5267_v54 = vmul.f32 %v8862_v41, %v5051_v52  ;;  %v5875_v63 = vunpack.c.l.bf16 %v5924_v11 }
 0x60f   : > { %v5339_v25 = vadd.f32 %v5851_v44, %v5307_v20  ;;  %v5308_v23 = vadd.f32 %v8868_v38, %v5269_v56 }
 0x610   : > { %v5337_v62 = vadd.f32 %v5847_v51, %v5305_v58  ;;  %v5306_v6 = vadd.f32 %v8868_v38, %v5267_v54 }
 0x611   : > { %5371 = vst.msk [vmem:[%s8878_s25 + $0x30] sm:$0xff] %vm345_vm1, %v5339_v25  ;;  %v5340_v31 = vadd.f32 %v5852_v28, %v5308_v23  ;;  %v5871_v28 = vunpack.c.l.bf16 %v5923_v18 }
 0x612   : > { %5369 = vst.msk [vmem:[%s8878_s25 + $0x20] sm:$0xff] %vm345_vm1, %v5337_v62  ;;  %v5338_v13 = vadd.f32 %v5848_v35, %v5306_v6  ;;  %v6827_v60 = vpop.f32.mrb[8].mxu1  ;;  %v5876_v35 = vunpack.c.h.bf16 %v5924_v11  ;;  %v5872_v62 = vunpack.c.h.bf16 %v5923_v18 }
 0x613   : > { %5372 = vst.msk [vmem:[%s8878_s25 + $0x38] sm:$0xff] %vm345_vm1, %v5340_v31  ;;  %v5272_v21 = vmul.f32 %v6827_v60, %v8862_v41  ;;  %v5064_v46 = vpop.f32.mrb[9].mxu1  ;;  %v5926_v60 = vld [vmem:[%s7461_s10 + $0x58] sm:$0xff]  }
 0x614   : > { %5370 = vst.msk [vmem:[%s8878_s25 + $0x28] sm:$0xff] %vm345_vm1, %v5338_v13  ;;  %v5270_v45 = vmul.f32 %v8862_v41, %v5064_v46  ;;  %v6828_v49 = vpop.f32.mrb[10].mxu1 }
 0x615   : > { %v5311_v34 = vadd.f32 %v8868_v38, %v5272_v21  ;;  %v5273_v55 = vmul.f32 %v6828_v49, %v8862_v41  ;;  %v5067_v15 = vpop.f32.mrb[11].mxu1  ;;  %v5925_v21 = vld [vmem:[%s7461_s10 + $0x50] sm:$0xff]  }
 0x616   : > { %v5309_v61 = vadd.f32 %v8868_v38, %v5270_v45  ;;  %v5271_v4 = vmul.f32 %v8862_v41, %v5067_v15  ;;  %v5883_v45 = vunpack.c.l.bf16 %v5926_v60 }
 0x617   : > { %v5343_v43 = vadd.f32 %v5859_v17, %v5311_v34  ;;  %v5312_v47 = vadd.f32 %v8868_v38, %v5273_v55 }
 0x618   : > { %v5341_v16 = vadd.f32 %v5855_v48, %v5309_v61  ;;  %v5310_v5 = vadd.f32 %v8868_v38, %v5271_v4 }
 0x619   : > { %5375 = vst.msk [vmem:[%s8878_s25 + $0x50] sm:$0xff] %vm345_vm1, %v5343_v43  ;;  %v5344_v42 = vadd.f32 %v5860_v29, %v5312_v47  ;;  %v5879_v29 = vunpack.c.l.bf16 %v5925_v21 }
 0x61a   : > { %5373 = vst.msk [vmem:[%s8878_s25 + $0x40] sm:$0xff] %vm345_vm1, %v5341_v16  ;;  %v5342_v33 = vadd.f32 %v5856_v1, %v5310_v5  ;;  %v6831_v9 = vpop.f32.mrb[12].mxu1  ;;  %v5884_v1 = vunpack.c.h.bf16 %v5926_v60  ;;  %v5880_v16 = vunpack.c.h.bf16 %v5925_v21 }
 0x61b   : > { %5376 = vst.msk [vmem:[%s8878_s25 + $0x58] sm:$0xff] %vm345_vm1, %v5344_v42  ;;  %v5276_v3 = vmul.f32 %v6831_v9, %v8862_v41  ;;  %v5080_v22 = vpop.f32.mrb[13].mxu1  ;;  %v5928_v9 = vld [vmem:[%s7461_s10 + $0x68] sm:$0xff]  }
 0x61c   : > { %5374 = vst.msk [vmem:[%s8878_s25 + $0x48] sm:$0xff] %vm345_vm1, %v5342_v33  ;;  %v5274_v26 = vmul.f32 %v8862_v41, %v5080_v22  ;;  %v6832_v39 = vpop.f32.mrb[14].mxu1 }
 0x61d   : > { %v5315_v53 = vadd.f32 %v8868_v38, %v5276_v3  ;;  %v5277_v59 = vmul.f32 %v6832_v39, %v8862_v41  ;;  %v5083_v7 = vpop.f32.mrb[15].mxu1  ;;  %v5927_v3 = vld [vmem:[%s7461_s10 + $0x60] sm:$0xff]  }
 0x61e   : > { %v5313_v24 = vadd.f32 %v8868_v38, %v5274_v26  ;;  %v5275_v32 = vmul.f32 %v8862_v41, %v5083_v7  ;;  %v5891_v26 = vunpack.c.l.bf16 %v5928_v9 }
 0x61f   : > { %v5347_v19 = vadd.f32 %v5867_v36, %v5315_v53  ;;  %v5316_v57 = vadd.f32 %v8868_v38, %v5277_v59 }
 0x620   : > { %v5345_v30 = vadd.f32 %v5863_v8, %v5313_v24  ;;  %v5314_v2 = vadd.f32 %v8868_v38, %v5275_v32 }
 0x621   : > { %5379 = vst.msk [vmem:[%s8878_s25 + $0x70] sm:$0xff] %vm345_vm1, %v5347_v19  ;;  %v5348_v44 = vadd.f32 %v5868_v40, %v5316_v57  ;;  %v5887_v40 = vunpack.c.l.bf16 %v5927_v3 }
 0x622   : > { %5377 = vst.msk [vmem:[%s8878_s25 + $0x60] sm:$0xff] %vm345_vm1, %v5345_v30  ;;  %v5346_v50 = vadd.f32 %v5864_v12, %v5314_v2  ;;  %v6835_v51 = vpop.f32.mrb[16].mxu1  ;;  %v5892_v12 = vunpack.c.h.bf16 %v5928_v9  ;;  %v5888_v30 = vunpack.c.h.bf16 %v5927_v3 }
 0x623   : > { %5380 = vst.msk [vmem:[%s8878_s25 + $0x78] sm:$0xff] %vm345_vm1, %v5348_v44  ;;  %v5280_v27 = vmul.f32 %v6835_v51, %v8862_v41  ;;  %v5096_v20 = vpop.f32.mrb[17].mxu1  ;;  %v5930_v51 = vld [vmem:[%s7461_s10 + $0x78] sm:$0xff]  }
 0x624   : > { %5378 = vst.msk [vmem:[%s8878_s25 + $0x68] sm:$0xff] %vm345_vm1, %v5346_v50  ;;  %v5278_v56 = vmul.f32 %v8862_v41, %v5096_v20  ;;  %v6836_v52 = vpop.f32.mrb[18].mxu1 }
 0x625   : > { %v5319_v58 = vadd.f32 %v8868_v38, %v5280_v27  ;;  %v5281_v54 = vmul.f32 %v6836_v52, %v8862_v41  ;;  %v5099_v25 = vpop.f32.mrb[19].mxu1  ;;  %v5929_v27 = vld [vmem:[%s7461_s10 + $0x70] sm:$0xff]  }
 0x626   : > { %v5317_v23 = vadd.f32 %v8868_v38, %v5278_v56  ;;  %v5279_v6 = vmul.f32 %v8862_v41, %v5099_v25  ;;  %v5899_v56 = vunpack.c.l.bf16 %v5930_v51 }
 0x627   : > { %v5351_v10 = vadd.f32 %v5875_v63, %v5319_v58  ;;  %v5320_v31 = vadd.f32 %v8868_v38, %v5281_v54 }
 0x628   : > { %v5349_v14 = vadd.f32 %v5871_v28, %v5317_v23  ;;  %v5318_v13 = vadd.f32 %v8868_v38, %v5279_v6 }
 0x629   : > { %5383 = vst.msk [vmem:[%s8878_s25 + $0x90] sm:$0xff] %vm345_vm1, %v5351_v10  ;;  %v5352_v17 = vadd.f32 %v5876_v35, %v5320_v31  ;;  %v5895_v35 = vunpack.c.l.bf16 %v5929_v27 }
 0x62a   : > { %5381 = vst.msk [vmem:[%s8878_s25 + $0x80] sm:$0xff] %vm345_vm1, %v5349_v14  ;;  %v5350_v46 = vadd.f32 %v5872_v62, %v5318_v13  ;;  %v6839_v48 = vpop.f32.mrb[20].mxu1  ;;  %v5900_v62 = vunpack.c.h.bf16 %v5930_v51  ;;  %v5896_v14 = vunpack.c.h.bf16 %v5929_v27 }
 0x62b   : > { %5384 = vst.msk [vmem:[%s8878_s25 + $0x98] sm:$0xff] %vm345_vm1, %v5352_v17  ;;  %v5284_v49 = vmul.f32 %v6839_v48, %v8862_v41  ;;  %v5112_v34 = vpop.f32.mrb[21].mxu1 }
 0x62c   : > { %5382 = vst.msk [vmem:[%s8878_s25 + $0x88] sm:$0xff] %vm345_vm1, %v5350_v46  ;;  %v5282_v55 = vmul.f32 %v8862_v41, %v5112_v34  ;;  %v6840_v15 = vpop.f32.mrb[22].mxu1 }
 0x62d   : > { %v5323_v61 = vadd.f32 %v8868_v38, %v5284_v49  ;;  %v5285_v4 = vmul.f32 %v6840_v15, %v8862_v41  ;;  %v5115_v43 = vpop.f32.mrb[23].mxu1 }
 0x62e   : > { %v5321_v47 = vadd.f32 %v8868_v38, %v5282_v55  ;;  %v5283_v5 = vmul.f32 %v8862_v41, %v5115_v43 }
 0x62f   : > { %v5355_v37 = vadd.f32 %v5883_v45, %v5323_v61  ;;  %v5324_v42 = vadd.f32 %v8868_v38, %v5285_v4 }
 0x630   : > { %v5353_v0 = vadd.f32 %v5879_v29, %v5321_v47  ;;  %v5322_v33 = vadd.f32 %v8868_v38, %v5283_v5 }
 0x631   : > { %5387 = vst.msk [vmem:[%s8878_s25 + $0xb0] sm:$0xff] %vm345_vm1, %v5355_v37  ;;  %v5356_v36 = vadd.f32 %v5884_v1, %v5324_v42 }
 0x632   : > { %5385 = vst.msk [vmem:[%s8878_s25 + $0xa0] sm:$0xff] %vm345_vm1, %v5353_v0  ;;  %v5354_v22 = vadd.f32 %v5880_v16, %v5322_v33  ;;  %v6843_v8 = vpop.f32.mrb[24].mxu1 }
 0x633   : > { %5388 = vst.msk [vmem:[%s8878_s25 + $0xb8] sm:$0xff] %vm345_vm1, %v5356_v36  ;;  %v5288_v39 = vmul.f32 %v6843_v8, %v8862_v41  ;;  %v5128_v53 = vpop.f32.mrb[25].mxu1 }
 0x634   : > { %5386 = vst.msk [vmem:[%s8878_s25 + $0xa8] sm:$0xff] %vm345_vm1, %v5354_v22  ;;  %v5286_v59 = vmul.f32 %v8862_v41, %v5128_v53  ;;  %v6844_v7 = vpop.f32.mrb[26].mxu1 }
 0x635   : > { %v5327_v24 = vadd.f32 %v8868_v38, %v5288_v39  ;;  %v5289_v32 = vmul.f32 %v6844_v7, %v8862_v41  ;;  %v5131_v19 = vpop.f32.mrb[27].mxu1 }
 0x636   : > { %v5325_v57 = vadd.f32 %v8868_v38, %v5286_v59  ;;  %v5287_v2 = vmul.f32 %v8862_v41, %v5131_v19 }
 0x637   : > { %v5359_v11 = vadd.f32 %v5891_v26, %v5327_v24  ;;  %v5328_v44 = vadd.f32 %v8868_v38, %v5289_v32 }
 0x638   : > { %v5357_v18 = vadd.f32 %v5887_v40, %v5325_v57  ;;  %v5326_v50 = vadd.f32 %v8868_v38, %v5287_v2 }
 0x639   : > { %5391 = vst.msk [vmem:[%s8878_s25 + $0xd0] sm:$0xff] %vm345_vm1, %v5359_v11  ;;  %v5360_v63 = vadd.f32 %v5892_v12, %v5328_v44 }
 0x63a   : > { %5389 = vst.msk [vmem:[%s8878_s25 + $0xc0] sm:$0xff] %vm345_vm1, %v5357_v18  ;;  %v5358_v20 = vadd.f32 %v5888_v30, %v5326_v50  ;;  %v6847_v28 = vpop.f32.mrb[28].mxu1 }
 0x63b   : > { %5392 = vst.msk [vmem:[%s8878_s25 + $0xd8] sm:$0xff] %vm345_vm1, %v5360_v63  ;;  %v5292_v52 = vmul.f32 %v6847_v28, %v8862_v41  ;;  %v5144_v58 = vpop.f32.mrb[29].mxu1 }
 0x63c   : > { %5390 = vst.msk [vmem:[%s8878_s25 + $0xc8] sm:$0xff] %vm345_vm1, %v5358_v20  ;;  %v5290_v54 = vmul.f32 %v8862_v41, %v5144_v58  ;;  %v6848_v25 = vpop.f32.mrb[30].mxu1 }
 0x63d   : > { %v5331_v23 = vadd.f32 %v8868_v38, %v5292_v52  ;;  %v5293_v6 = vmul.f32 %v6848_v25, %v8862_v41  ;;  %v5147_v10 = vpop.f32.mrb[31].mxu1 }
 0x63e   : > { %v5329_v31 = vadd.f32 %v8868_v38, %v5290_v54  ;;  %v5291_v13 = vmul.f32 %v8862_v41, %v5147_v10 }
 0x63f   : > { %v5363_v60 = vadd.f32 %v5899_v56, %v5331_v23  ;;  %v5332_v17 = vadd.f32 %v8868_v38, %v5293_v6 }
 0x640   : > { %v5361_v21 = vadd.f32 %v5895_v35, %v5329_v31  ;;  %v5330_v46 = vadd.f32 %v8868_v38, %v5291_v13 }
 0x641   : > { %5395 = vst.msk [vmem:[%s8878_s25 + $0xf0] sm:$0xff] %vm345_vm1, %v5363_v60  ;;  %v5364_v48 = vadd.f32 %v5900_v62, %v5332_v17 }
 0x642   : > { %5393 = vst.msk [vmem:[%s8878_s25 + $0xe0] sm:$0xff] %vm345_vm1, %v5361_v21  ;;  %v5362_v45 = vadd.f32 %v5896_v14, %v5330_v46 }
 0x643   : > { %5396 = vst.msk [vmem:[%s8878_s25 + $0xf8] sm:$0xff] %vm345_vm1, %v5364_v48 }
 0x644   : > { %5394 = vst.msk [vmem:[%s8878_s25 + $0xe8] sm:$0xff] %vm345_vm1, %v5362_v45 }
 0x645 PF: > { %s17_s24 = sadd.s32 1, %s7393_s24  }
 0x646   : > { %p14_p4 = scmp.ge.s32.totalorder %s17_s24, 4  }
 0x648   :  { %16 = sbr.rel (!%p14_p4) target bundleno = 1 (0x1), region = 96 }

</bundles_post_ra>
